<compile_context>
chip_gen: v6e
topology: v6e:2x2x1
jax: 0.10.0
libtpu: 0.0.40
codegen_flags: <defaults>
</compile_context>

<pallas_src>
import functools

import jax
import jax.numpy as jnp
import numpy as np
from jax.experimental import pallas as pl
from jax.experimental.pallas import tpu as pltpu

# ----------------------------- model hyper-params ---------------------------
N_FEATS = 16
HIDDEN = 32
NUM_LAYERS = 2
NUM_CLASSES = 10
DROPOUT = 0.1                      # identity in eval mode
KSIZE = 10
PAD = KSIZE // 5                   # = 2
LN_EPS = 1e-5
DENSE_DIM = 128

BATCH = 2
SEQ_T = 16                         # input time length
T_OUT = SEQ_T + 2 * PAD - KSIZE + 1   # conv1d output length = 11


# ----------------------------- small math helpers ---------------------------
def _gelu(x):
    # exact (erf-based) GELU, matching torch.nn.functional.gelu default
    return 0.5 * x * (1.0 + jax.lax.erf(x * 0.7071067811865476))


def _layernorm(x, gamma, beta):
    # LayerNorm over the last dim, biased variance (PyTorch semantics)
    mean = jnp.mean(x, axis=-1, keepdims=True)
    var = jnp.mean(jnp.square(x - mean), axis=-1, keepdims=True)
    return (x - mean) * jax.lax.rsqrt(var + LN_EPS) * gamma + beta


def _lstm_step(gx_t, h_prev, c_prev, whh_t):
    """One LSTM timestep.  gx_t already holds x_t @ W_ih^T + b_ih + b_hh."""
    gates = gx_t + jnp.dot(h_prev, whh_t, preferred_element_type=jnp.float32)
    i_g = jax.nn.sigmoid(gates[:, 0 * HIDDEN:1 * HIDDEN])
    f_g = jax.nn.sigmoid(gates[:, 1 * HIDDEN:2 * HIDDEN])
    g_g = jnp.tanh(gates[:, 2 * HIDDEN:3 * HIDDEN])
    o_g = jax.nn.sigmoid(gates[:, 3 * HIDDEN:4 * HIDDEN])
    c_new = f_g * c_prev + i_g * g_g
    h_new = o_g * jnp.tanh(c_new)
    return h_new, c_new


# ----------------------------- the fused kernel ------------------------------
def _speech_fused_kernel(
    x_ref,                        # (T_pad*B, F)  zero-padded, time-major interleaved
    convw_ref,                    # (K, F_in, F_out)
    convb_ref,                    # (1, F)
    ln1g_ref, ln1b_ref,           # (1, F)
    d1w_ref, d1b_ref,             # (F, 128), (1, 128)
    d2w_ref, d2b_ref,             # (128, 128), (1, 128)
    wih0_ref, whh0_ref, lb0_ref,  # (128, 4H), (H, 4H), (1, 4H)
    wih1_ref, whh1_ref, lb1_ref,  # (H, 4H), (H, 4H), (1, 4H)
    ln2g_ref, ln2b_ref,           # (1, H)
    fcw_ref, fcb_ref,             # (H, C), (1, C)
    h0_ref, c0_ref,               # (L, B, H)
    logits_ref,                   # (T_out*B, C)
    hn_ref, cn_ref,               # (L, B, H)
    seq0_sc, seq1_sc,             # VMEM scratch (T_out*B, H)
    *, batch, t_out,
):
    rows = t_out * batch
    x = x_ref[...]                                     # (T_pad*B, F)

    # ---- Conv1d(F, F, K, padding=PAD), batched over B via interleaved rows.
    # Tap k of the conv reads the contiguous row window [k*B, k*B + rows).
    acc = jnp.zeros((rows, N_FEATS), jnp.float32)
    for k in range(KSIZE):
        acc = acc + jnp.dot(x[k * batch:k * batch + rows, :], convw_ref[k],
                            preferred_element_type=jnp.float32)
    acc = acc + convb_ref[...]

    # ---- ActDropNormCNN1D: LayerNorm(F) -> GELU -> Dropout(identity)
    act = _gelu(_layernorm(acc, ln1g_ref[...], ln1b_ref[...]))

    # ---- dense: Linear(F, 128) -> GELU -> Linear(128, 128)
    hdn = _gelu(jnp.dot(act, d1w_ref[...],
                        preferred_element_type=jnp.float32) + d1b_ref[...])
    dense_out = jnp.dot(hdn, d2w_ref[...],
                        preferred_element_type=jnp.float32) + d2b_ref[...]

    # ---- LSTM layer 0: hoisted input projection + unrolled time recurrence
    whh0 = whh0_ref[...]
    gx0 = jnp.dot(dense_out, wih0_ref[...],
                  preferred_element_type=jnp.float32) + lb0_ref[...]   # (rows, 4H)
    h = h0_ref[0]
    c = c0_ref[0]
    for t in range(t_out):
        h, c = _lstm_step(gx0[t * batch:(t + 1) * batch, :], h, c, whh0)
        seq0_sc[t * batch:(t + 1) * batch, :] = h
    hn_ref[0] = h
    cn_ref[0] = c

    # ---- LSTM layer 1: same structure, fed from layer-0 hidden sequence
    whh1 = whh1_ref[...]
    gx1 = jnp.dot(seq0_sc[...], wih1_ref[...],
                  preferred_element_type=jnp.float32) + lb1_ref[...]   # (rows, 4H)
    h = h0_ref[1]
    c = c0_ref[1]
    for t in range(t_out):
        h, c = _lstm_step(gx1[t * batch:(t + 1) * batch, :], h, c, whh1)
        seq1_sc[t * batch:(t + 1) * batch, :] = h
    hn_ref[1] = h
    cn_ref[1] = c

    # ---- head: LayerNorm(H) -> GELU -> Dropout(identity) -> Linear(H, C)
    y = _gelu(_layernorm(seq1_sc[...], ln2g_ref[...], ln2b_ref[...]))
    logits_ref[...] = jnp.dot(y, fcw_ref[...],
                              preferred_element_type=jnp.float32) + fcb_ref[...]


# ----------------------------- forward wrapper -------------------------------
def _forward_impl(kp, x, h0, c0):
    b, _, n_feats, t_in = x.shape
    t_out = t_in + 2 * PAD - KSIZE + 1
    t_pad = t_in + 2 * PAD

    # Single tiny (~2.5 KB) input-layout op: (B,1,F,T) -> zero-padded,
    # time-major interleaved rows (T_pad*B, F).  All inter-stage layout
    # handling happens inside the fused kernel.
    xt = jnp.transpose(x[:, 0], (2, 0, 1))            # (T, B, F)
    xp = jnp.pad(xt, ((PAD, PAD), (0, 0), (0, 0)))    # (T_pad, B, F)
    xflat = xp.reshape(t_pad * b, n_feats)            # free row-major reshape

    kernel = functools.partial(_speech_fused_kernel, batch=b, t_out=t_out)
    logits2d, hn, cn = pl.pallas_call(
        kernel,
        out_shape=(
            jax.ShapeDtypeStruct((t_out * b, NUM_CLASSES), jnp.float32),
            jax.ShapeDtypeStruct((NUM_LAYERS, b, HIDDEN), jnp.float32),
            jax.ShapeDtypeStruct((NUM_LAYERS, b, HIDDEN), jnp.float32),
        ),
        scratch_shapes=[
            pltpu.VMEM((t_out * b, HIDDEN), jnp.float32),   # layer-0 hidden seq
            pltpu.VMEM((t_out * b, HIDDEN), jnp.float32),   # layer-1 hidden seq
        ],
    )(xflat,
      kp["conv_w"], kp["conv_b"], kp["ln1_g"], kp["ln1_b"],
      kp["d1_wt"], kp["d1_b"], kp["d2_wt"], kp["d2_b"],
      kp["wih0_t"], kp["whh0_t"], kp["lb0"],
      kp["wih1_t"], kp["whh1_t"], kp["lb1"],
      kp["ln2_g"], kp["ln2_b"], kp["fc_wt"], kp["fc_b"],
      h0, c0)

    # (T_out*B, C) rows are already time-major (t, b): this reshape is a
    # free row-major bitcast to the PyTorch (T, B, C) output layout.
    logits = logits2d.reshape(t_out, b, NUM_CLASSES)
    return logits, (hn, cn)


speech_model_forward = jax.jit(_forward_impl)


# ----------------------------- parameter init / packing ---------------------
def init_params(key):
    """PyTorch-layout parameters (same init scheme as torch defaults)."""
    ks = iter(jax.random.split(key, 64))

    def unif(shape, fan_in):
        bound = 1.0 / np.sqrt(fan_in)
        return jax.random.uniform(next(ks), shape, jnp.float32, -bound, bound)

    p = {}
    # Conv1d(n_feats, n_feats, 10, padding=2): weight (F_out, F_in, K)
    p["conv_w"] = unif((N_FEATS, N_FEATS, KSIZE), N_FEATS * KSIZE)
    p["conv_b"] = unif((N_FEATS,), N_FEATS * KSIZE)
    # LayerNorm(n_feats)
    p["ln1_g"] = jnp.ones((N_FEATS,), jnp.float32)
    p["ln1_b"] = jnp.zeros((N_FEATS,), jnp.float32)
    # dense: Linear(F, 128), Linear(128, 128)
    p["d1_w"] = unif((DENSE_DIM, N_FEATS), N_FEATS)
    p["d1_b"] = unif((DENSE_DIM,), N_FEATS)
    p["d2_w"] = unif((DENSE_DIM, DENSE_DIM), DENSE_DIM)
    p["d2_b"] = unif((DENSE_DIM,), DENSE_DIM)
    # LSTM(input=128, hidden=HIDDEN, num_layers=NUM_LAYERS)
    p["lstm"] = []
    for layer in range(NUM_LAYERS):
        in_dim = DENSE_DIM if layer == 0 else HIDDEN
        p["lstm"].append({
            "w_ih": unif((4 * HIDDEN, in_dim), HIDDEN),
            "w_hh": unif((4 * HIDDEN, HIDDEN), HIDDEN),
            "b_ih": unif((4 * HIDDEN,), HIDDEN),
            "b_hh": unif((4 * HIDDEN,), HIDDEN),
        })
    # LayerNorm(hidden_size)
    p["ln2_g"] = jnp.ones((HIDDEN,), jnp.float32)
    p["ln2_b"] = jnp.zeros((HIDDEN,), jnp.float32)
    # final_fc: Linear(hidden, num_classes)
    p["fc_w"] = unif((NUM_CLASSES, HIDDEN), HIDDEN)
    p["fc_b"] = unif((NUM_CLASSES,), HIDDEN)
    return p


def pack_params(p):
    """One-time layout transforms to kernel-ready arrays (done outside jit)."""
    kp = {
        # conv weight as (K, F_in, F_out) so tap k is a (F_in, F_out) matmul
        "conv_w": jnp.transpose(p["conv_w"], (2, 1, 0)),
        "conv_b": p["conv_b"].reshape(1, -1),
        "ln1_g": p["ln1_g"].reshape(1, -1),
        "ln1_b": p["ln1_b"].reshape(1, -1),
        "d1_wt": p["d1_w"].T, "d1_b": p["d1_b"].reshape(1, -1),
        "d2_wt": p["d2_w"].T, "d2_b": p["d2_b"].reshape(1, -1),
        "ln2_g": p["ln2_g"].reshape(1, -1),
        "ln2_b": p["ln2_b"].reshape(1, -1),
        "fc_wt": p["fc_w"].T, "fc_b": p["fc_b"].reshape(1, -1),
    }
    for layer in range(NUM_LAYERS):
        lp = p["lstm"][layer]
        kp[f"wih{layer}_t"] = lp["w_ih"].T                     # (in_dim, 4H)
        kp[f"whh{layer}_t"] = lp["w_hh"].T                     # (H, 4H)
        kp[f"lb{layer}"] = (lp["b_ih"] + lp["b_hh"]).reshape(1, -1)
    return kp


# ----------------------------- main ------------------------------------------
if __name__ == "__main__":
    key = jax.random.PRNGKey(0)
    k_param, k_x = jax.random.split(key)
    params = init_params(k_param)
    kparams = pack_params(params)

    x = jax.random.normal(k_x, (BATCH, 1, N_FEATS, SEQ_T), jnp.float32)
    # _init_hidden(batch_size): zeros (num_layers, B, hidden)
    h0 = jnp.zeros((NUM_LAYERS, BATCH, HIDDEN), jnp.float32)
    c0 = jnp.zeros((NUM_LAYERS, BATCH, HIDDEN), jnp.float32)

    logits, (hn, cn) = speech_model_forward(kparams, x, h0, c0)
    jax.block_until_ready((logits, hn, cn))

    assert logits.shape == (T_OUT, BATCH, NUM_CLASSES)
    assert hn.shape == (NUM_LAYERS, BATCH, HIDDEN)
    assert cn.shape == (NUM_LAYERS, BATCH, HIDDEN)
    print("KERNEL_OK")
</pallas_src>

<mosaic_0001>
module attributes {stable_mosaic.version = 11 : i64} {
  func.func @_speech_fused_kernel(%arg0: memref<40x16xf32, #tpu.memory_space<vmem>>, %arg1: memref<10x16x16xf32, #tpu.memory_space<vmem>>, %arg2: memref<1x16xf32, #tpu.memory_space<vmem>>, %arg3: memref<1x16xf32, #tpu.memory_space<vmem>>, %arg4: memref<1x16xf32, #tpu.memory_space<vmem>>, %arg5: memref<16x128xf32, #tpu.memory_space<vmem>>, %arg6: memref<1x128xf32, #tpu.memory_space<vmem>>, %arg7: memref<128x128xf32, #tpu.memory_space<vmem>>, %arg8: memref<1x128xf32, #tpu.memory_space<vmem>>, %arg9: memref<128x128xf32, #tpu.memory_space<vmem>>, %arg10: memref<32x128xf32, #tpu.memory_space<vmem>>, %arg11: memref<1x128xf32, #tpu.memory_space<vmem>>, %arg12: memref<32x128xf32, #tpu.memory_space<vmem>>, %arg13: memref<32x128xf32, #tpu.memory_space<vmem>>, %arg14: memref<1x128xf32, #tpu.memory_space<vmem>>, %arg15: memref<1x32xf32, #tpu.memory_space<vmem>>, %arg16: memref<1x32xf32, #tpu.memory_space<vmem>>, %arg17: memref<32x10xf32, #tpu.memory_space<vmem>>, %arg18: memref<1x10xf32, #tpu.memory_space<vmem>>, %arg19: memref<2x2x32xf32, #tpu.memory_space<vmem>>, %arg20: memref<2x2x32xf32, #tpu.memory_space<vmem>>, %arg21: memref<22x10xf32, #tpu.memory_space<vmem>>, %arg22: memref<2x2x32xf32, #tpu.memory_space<vmem>>, %arg23: memref<2x2x32xf32, #tpu.memory_space<vmem>>, %arg24: memref<22x32xf32, #tpu.memory_space<vmem>>, %arg25: memref<22x32xf32, #tpu.memory_space<vmem>>) attributes {dimension_semantics = [], scalar_prefetch = 0 : i64, scratch_operands = 2 : i64, tpu.core_type = #tpu.core_type<tc>} {
    %c0 = arith.constant 0 : index
    %c0_0 = arith.constant 0 : index
    %0 = vector.load %arg0[%c0, %c0_0] : memref<40x16xf32, #tpu.memory_space<vmem>>, vector<40x16xf32>
    %cst = arith.constant 0.000000e+00 : f32
    %1 = vector.broadcast %cst : f32 to vector<22x16xf32>
    %2 = vector.extract_strided_slice %0 {offsets = [0, 0], sizes = [22, 16], strides = [1, 1]} : vector<40x16xf32> to vector<22x16xf32>
    %c0_1 = arith.constant 0 : index
    %c0_2 = arith.constant 0 : index
    %c0_3 = arith.constant 0 : index
    %3 = vector.load %arg1[%c0_1, %c0_2, %c0_3] : memref<10x16x16xf32, #tpu.memory_space<vmem>>, vector<1x16x16xf32>
    %4 = vector.shape_cast %3 : vector<1x16x16xf32> to vector<16x16xf32>
    %cst_4 = arith.constant dense<0.000000e+00> : vector<22x16xf32>
    %5 = tpu.matmul %2, %4, %cst_4 {dimension_numbers = #tpu.dot_dimension_numbers<[1], [0], [0], [1], [0, 0, 1, 1], [], []>} : vector<22x16xf32>, vector<16x16xf32>, vector<22x16xf32> -> vector<22x16xf32>
    %6 = arith.addf %1, %5 : vector<22x16xf32>
    %7 = vector.extract_strided_slice %0 {offsets = [2, 0], sizes = [22, 16], strides = [1, 1]} : vector<40x16xf32> to vector<22x16xf32>
    %c1 = arith.constant 1 : index
    %c0_5 = arith.constant 0 : index
    %c0_6 = arith.constant 0 : index
    %8 = vector.load %arg1[%c1, %c0_5, %c0_6] : memref<10x16x16xf32, #tpu.memory_space<vmem>>, vector<1x16x16xf32>
    %9 = vector.shape_cast %8 : vector<1x16x16xf32> to vector<16x16xf32>
    %cst_7 = arith.constant dense<0.000000e+00> : vector<22x16xf32>
    %10 = tpu.matmul %7, %9, %cst_7 {dimension_numbers = #tpu.dot_dimension_numbers<[1], [0], [0], [1], [0, 0, 1, 1], [], []>} : vector<22x16xf32>, vector<16x16xf32>, vector<22x16xf32> -> vector<22x16xf32>
    %11 = arith.addf %6, %10 : vector<22x16xf32>
    %12 = vector.extract_strided_slice %0 {offsets = [4, 0], sizes = [22, 16], strides = [1, 1]} : vector<40x16xf32> to vector<22x16xf32>
    %c2 = arith.constant 2 : index
    %c0_8 = arith.constant 0 : index
    %c0_9 = arith.constant 0 : index
    %13 = vector.load %arg1[%c2, %c0_8, %c0_9] : memref<10x16x16xf32, #tpu.memory_space<vmem>>, vector<1x16x16xf32>
    %14 = vector.shape_cast %13 : vector<1x16x16xf32> to vector<16x16xf32>
    %cst_10 = arith.constant dense<0.000000e+00> : vector<22x16xf32>
    %15 = tpu.matmul %12, %14, %cst_10 {dimension_numbers = #tpu.dot_dimension_numbers<[1], [0], [0], [1], [0, 0, 1, 1], [], []>} : vector<22x16xf32>, vector<16x16xf32>, vector<22x16xf32> -> vector<22x16xf32>
    %16 = arith.addf %11, %15 : vector<22x16xf32>
    %17 = vector.extract_strided_slice %0 {offsets = [6, 0], sizes = [22, 16], strides = [1, 1]} : vector<40x16xf32> to vector<22x16xf32>
    %c3 = arith.constant 3 : index
    %c0_11 = arith.constant 0 : index
    %c0_12 = arith.constant 0 : index
    %18 = vector.load %arg1[%c3, %c0_11, %c0_12] : memref<10x16x16xf32, #tpu.memory_space<vmem>>, vector<1x16x16xf32>
    %19 = vector.shape_cast %18 : vector<1x16x16xf32> to vector<16x16xf32>
    %cst_13 = arith.constant dense<0.000000e+00> : vector<22x16xf32>
    %20 = tpu.matmul %17, %19, %cst_13 {dimension_numbers = #tpu.dot_dimension_numbers<[1], [0], [0], [1], [0, 0, 1, 1], [], []>} : vector<22x16xf32>, vector<16x16xf32>, vector<22x16xf32> -> vector<22x16xf32>
    %21 = arith.addf %16, %20 : vector<22x16xf32>
    %22 = vector.extract_strided_slice %0 {offsets = [8, 0], sizes = [22, 16], strides = [1, 1]} : vector<40x16xf32> to vector<22x16xf32>
    %c4 = arith.constant 4 : index
    %c0_14 = arith.constant 0 : index
    %c0_15 = arith.constant 0 : index
    %23 = vector.load %arg1[%c4, %c0_14, %c0_15] : memref<10x16x16xf32, #tpu.memory_space<vmem>>, vector<1x16x16xf32>
    %24 = vector.shape_cast %23 : vector<1x16x16xf32> to vector<16x16xf32>
    %cst_16 = arith.constant dense<0.000000e+00> : vector<22x16xf32>
    %25 = tpu.matmul %22, %24, %cst_16 {dimension_numbers = #tpu.dot_dimension_numbers<[1], [0], [0], [1], [0, 0, 1, 1], [], []>} : vector<22x16xf32>, vector<16x16xf32>, vector<22x16xf32> -> vector<22x16xf32>
    %26 = arith.addf %21, %25 : vector<22x16xf32>
    %27 = vector.extract_strided_slice %0 {offsets = [10, 0], sizes = [22, 16], strides = [1, 1]} : vector<40x16xf32> to vector<22x16xf32>
    %c5 = arith.constant 5 : index
    %c0_17 = arith.constant 0 : index
    %c0_18 = arith.constant 0 : index
    %28 = vector.load %arg1[%c5, %c0_17, %c0_18] : memref<10x16x16xf32, #tpu.memory_space<vmem>>, vector<1x16x16xf32>
    %29 = vector.shape_cast %28 : vector<1x16x16xf32> to vector<16x16xf32>
    %cst_19 = arith.constant dense<0.000000e+00> : vector<22x16xf32>
    %30 = tpu.matmul %27, %29, %cst_19 {dimension_numbers = #tpu.dot_dimension_numbers<[1], [0], [0], [1], [0, 0, 1, 1], [], []>} : vector<22x16xf32>, vector<16x16xf32>, vector<22x16xf32> -> vector<22x16xf32>
    %31 = arith.addf %26, %30 : vector<22x16xf32>
    %32 = vector.extract_strided_slice %0 {offsets = [12, 0], sizes = [22, 16], strides = [1, 1]} : vector<40x16xf32> to vector<22x16xf32>
    %c6 = arith.constant 6 : index
    %c0_20 = arith.constant 0 : index
    %c0_21 = arith.constant 0 : index
    %33 = vector.load %arg1[%c6, %c0_20, %c0_21] : memref<10x16x16xf32, #tpu.memory_space<vmem>>, vector<1x16x16xf32>
    %34 = vector.shape_cast %33 : vector<1x16x16xf32> to vector<16x16xf32>
    %cst_22 = arith.constant dense<0.000000e+00> : vector<22x16xf32>
    %35 = tpu.matmul %32, %34, %cst_22 {dimension_numbers = #tpu.dot_dimension_numbers<[1], [0], [0], [1], [0, 0, 1, 1], [], []>} : vector<22x16xf32>, vector<16x16xf32>, vector<22x16xf32> -> vector<22x16xf32>
    %36 = arith.addf %31, %35 : vector<22x16xf32>
    %37 = vector.extract_strided_slice %0 {offsets = [14, 0], sizes = [22, 16], strides = [1, 1]} : vector<40x16xf32> to vector<22x16xf32>
    %c7 = arith.constant 7 : index
    %c0_23 = arith.constant 0 : index
    %c0_24 = arith.constant 0 : index
    %38 = vector.load %arg1[%c7, %c0_23, %c0_24] : memref<10x16x16xf32, #tpu.memory_space<vmem>>, vector<1x16x16xf32>
    %39 = vector.shape_cast %38 : vector<1x16x16xf32> to vector<16x16xf32>
    %cst_25 = arith.constant dense<0.000000e+00> : vector<22x16xf32>
    %40 = tpu.matmul %37, %39, %cst_25 {dimension_numbers = #tpu.dot_dimension_numbers<[1], [0], [0], [1], [0, 0, 1, 1], [], []>} : vector<22x16xf32>, vector<16x16xf32>, vector<22x16xf32> -> vector<22x16xf32>
    %41 = arith.addf %36, %40 : vector<22x16xf32>
    %42 = vector.extract_strided_slice %0 {offsets = [16, 0], sizes = [22, 16], strides = [1, 1]} : vector<40x16xf32> to vector<22x16xf32>
    %c8 = arith.constant 8 : index
    %c0_26 = arith.constant 0 : index
    %c0_27 = arith.constant 0 : index
    %43 = vector.load %arg1[%c8, %c0_26, %c0_27] : memref<10x16x16xf32, #tpu.memory_space<vmem>>, vector<1x16x16xf32>
    %44 = vector.shape_cast %43 : vector<1x16x16xf32> to vector<16x16xf32>
    %cst_28 = arith.constant dense<0.000000e+00> : vector<22x16xf32>
    %45 = tpu.matmul %42, %44, %cst_28 {dimension_numbers = #tpu.dot_dimension_numbers<[1], [0], [0], [1], [0, 0, 1, 1], [], []>} : vector<22x16xf32>, vector<16x16xf32>, vector<22x16xf32> -> vector<22x16xf32>
    %46 = arith.addf %41, %45 : vector<22x16xf32>
    %47 = vector.extract_strided_slice %0 {offsets = [18, 0], sizes = [22, 16], strides = [1, 1]} : vector<40x16xf32> to vector<22x16xf32>
    %c9 = arith.constant 9 : index
    %c0_29 = arith.constant 0 : index
    %c0_30 = arith.constant 0 : index
    %48 = vector.load %arg1[%c9, %c0_29, %c0_30] : memref<10x16x16xf32, #tpu.memory_space<vmem>>, vector<1x16x16xf32>
    %49 = vector.shape_cast %48 : vector<1x16x16xf32> to vector<16x16xf32>
    %cst_31 = arith.constant dense<0.000000e+00> : vector<22x16xf32>
    %50 = tpu.matmul %47, %49, %cst_31 {dimension_numbers = #tpu.dot_dimension_numbers<[1], [0], [0], [1], [0, 0, 1, 1], [], []>} : vector<22x16xf32>, vector<16x16xf32>, vector<22x16xf32> -> vector<22x16xf32>
    %51 = arith.addf %46, %50 : vector<22x16xf32>
    %c0_32 = arith.constant 0 : index
    %c0_33 = arith.constant 0 : index
    %52 = vector.load %arg2[%c0_32, %c0_33] : memref<1x16xf32, #tpu.memory_space<vmem>>, vector<1x16xf32>
    %53 = vector.broadcast %52 : vector<1x16xf32> to vector<22x16xf32>
    %54 = arith.addf %51, %53 : vector<22x16xf32>
    %c0_34 = arith.constant 0 : index
    %c0_35 = arith.constant 0 : index
    %55 = vector.load %arg3[%c0_34, %c0_35] : memref<1x16xf32, #tpu.memory_space<vmem>>, vector<1x16xf32>
    %c0_36 = arith.constant 0 : index
    %c0_37 = arith.constant 0 : index
    %56 = vector.load %arg4[%c0_36, %c0_37] : memref<1x16xf32, #tpu.memory_space<vmem>>, vector<1x16xf32>
    %cst_38 = arith.constant dense<0.000000e+00> : vector<22xf32>
    %57 = vector.multi_reduction <add>, %54, %cst_38 [1] : vector<22x16xf32> to vector<22xf32>
    %58 = vector.shape_cast %57 : vector<22xf32> to vector<22x1xf32>
    %cst_39 = arith.constant 1.600000e+01 : f32
    %59 = vector.broadcast %cst_39 : f32 to vector<22x1xf32>
    %60 = arith.divf %58, %59 : vector<22x1xf32>
    %61 = vector.broadcast %60 : vector<22x1xf32> to vector<22x16xf32>
    %62 = arith.subf %54, %61 : vector<22x16xf32>
    %63 = arith.mulf %62, %62 : vector<22x16xf32>
    %cst_40 = arith.constant dense<0.000000e+00> : vector<22xf32>
    %64 = vector.multi_reduction <add>, %63, %cst_40 [1] : vector<22x16xf32> to vector<22xf32>
    %65 = vector.shape_cast %64 : vector<22xf32> to vector<22x1xf32>
    %cst_41 = arith.constant 1.600000e+01 : f32
    %66 = vector.broadcast %cst_41 : f32 to vector<22x1xf32>
    %67 = arith.divf %65, %66 : vector<22x1xf32>
    %68 = vector.broadcast %60 : vector<22x1xf32> to vector<22x16xf32>
    %69 = arith.subf %54, %68 : vector<22x16xf32>
    %cst_42 = arith.constant 9.99999974E-6 : f32
    %70 = vector.broadcast %cst_42 : f32 to vector<22x1xf32>
    %71 = arith.addf %67, %70 : vector<22x1xf32>
    %72 = math.rsqrt %71 : vector<22x1xf32>
    %73 = vector.broadcast %72 : vector<22x1xf32> to vector<22x16xf32>
    %74 = arith.mulf %69, %73 : vector<22x16xf32>
    %75 = vector.broadcast %55 : vector<1x16xf32> to vector<22x16xf32>
    %76 = arith.mulf %74, %75 : vector<22x16xf32>
    %77 = vector.broadcast %56 : vector<1x16xf32> to vector<22x16xf32>
    %78 = arith.addf %76, %77 : vector<22x16xf32>
    %cst_43 = arith.constant 5.000000e-01 : f32
    %79 = vector.broadcast %cst_43 : f32 to vector<22x16xf32>
    %80 = arith.mulf %79, %78 : vector<22x16xf32>
    %cst_44 = arith.constant 0.707106769 : f32
    %81 = vector.broadcast %cst_44 : f32 to vector<22x16xf32>
    %82 = arith.mulf %78, %81 : vector<22x16xf32>
    %83 = math.erf %82 : vector<22x16xf32>
    %cst_45 = arith.constant 1.000000e+00 : f32
    %84 = vector.broadcast %cst_45 : f32 to vector<22x16xf32>
    %85 = arith.addf %84, %83 : vector<22x16xf32>
    %86 = arith.mulf %80, %85 : vector<22x16xf32>
    %c0_46 = arith.constant 0 : index
    %c0_47 = arith.constant 0 : index
    %87 = vector.load %arg5[%c0_46, %c0_47] : memref<16x128xf32, #tpu.memory_space<vmem>>, vector<16x128xf32>
    %cst_48 = arith.constant dense<0.000000e+00> : vector<22x128xf32>
    %88 = tpu.matmul %86, %87, %cst_48 {dimension_numbers = #tpu.dot_dimension_numbers<[1], [0], [0], [1], [0, 0, 1, 1], [], []>} : vector<22x16xf32>, vector<16x128xf32>, vector<22x128xf32> -> vector<22x128xf32>
    %c0_49 = arith.constant 0 : index
    %c0_50 = arith.constant 0 : index
    %89 = vector.load %arg6[%c0_49, %c0_50] : memref<1x128xf32, #tpu.memory_space<vmem>>, vector<1x128xf32>
    %90 = vector.broadcast %89 : vector<1x128xf32> to vector<22x128xf32>
    %91 = arith.addf %88, %90 : vector<22x128xf32>
    %cst_51 = arith.constant 5.000000e-01 : f32
    %92 = vector.broadcast %cst_51 : f32 to vector<22x128xf32>
    %93 = arith.mulf %92, %91 : vector<22x128xf32>
    %cst_52 = arith.constant 0.707106769 : f32
    %94 = vector.broadcast %cst_52 : f32 to vector<22x128xf32>
    %95 = arith.mulf %91, %94 : vector<22x128xf32>
    %96 = math.erf %95 : vector<22x128xf32>
    %cst_53 = arith.constant 1.000000e+00 : f32
    %97 = vector.broadcast %cst_53 : f32 to vector<22x128xf32>
    %98 = arith.addf %97, %96 : vector<22x128xf32>
    %99 = arith.mulf %93, %98 : vector<22x128xf32>
    %c0_54 = arith.constant 0 : index
    %c0_55 = arith.constant 0 : index
    %100 = vector.load %arg7[%c0_54, %c0_55] : memref<128x128xf32, #tpu.memory_space<vmem>>, vector<128x128xf32>
    %cst_56 = arith.constant dense<0.000000e+00> : vector<22x128xf32>
    %101 = tpu.matmul %99, %100, %cst_56 {dimension_numbers = #tpu.dot_dimension_numbers<[1], [0], [0], [1], [0, 0, 1, 1], [], []>} : vector<22x128xf32>, vector<128x128xf32>, vector<22x128xf32> -> vector<22x128xf32>
    %c0_57 = arith.constant 0 : index
    %c0_58 = arith.constant 0 : index
    %102 = vector.load %arg8[%c0_57, %c0_58] : memref<1x128xf32, #tpu.memory_space<vmem>>, vector<1x128xf32>
    %103 = vector.broadcast %102 : vector<1x128xf32> to vector<22x128xf32>
    %104 = arith.addf %101, %103 : vector<22x128xf32>
    %c0_59 = arith.constant 0 : index
    %c0_60 = arith.constant 0 : index
    %105 = vector.load %arg10[%c0_59, %c0_60] : memref<32x128xf32, #tpu.memory_space<vmem>>, vector<32x128xf32>
    %c0_61 = arith.constant 0 : index
    %c0_62 = arith.constant 0 : index
    %106 = vector.load %arg9[%c0_61, %c0_62] : memref<128x128xf32, #tpu.memory_space<vmem>>, vector<128x128xf32>
    %cst_63 = arith.constant dense<0.000000e+00> : vector<22x128xf32>
    %107 = tpu.matmul %104, %106, %cst_63 {dimension_numbers = #tpu.dot_dimension_numbers<[1], [0], [0], [1], [0, 0, 1, 1], [], []>} : vector<22x128xf32>, vector<128x128xf32>, vector<22x128xf32> -> vector<22x128xf32>
    %c0_64 = arith.constant 0 : index
    %c0_65 = arith.constant 0 : index
    %108 = vector.load %arg11[%c0_64, %c0_65] : memref<1x128xf32, #tpu.memory_space<vmem>>, vector<1x128xf32>
    %109 = vector.broadcast %108 : vector<1x128xf32> to vector<22x128xf32>
    %110 = arith.addf %107, %109 : vector<22x128xf32>
    %c0_66 = arith.constant 0 : index
    %c0_67 = arith.constant 0 : index
    %c0_68 = arith.constant 0 : index
    %111 = vector.load %arg19[%c0_66, %c0_67, %c0_68] : memref<2x2x32xf32, #tpu.memory_space<vmem>>, vector<1x2x32xf32>
    %112 = vector.shape_cast %111 : vector<1x2x32xf32> to vector<2x32xf32>
    %c0_69 = arith.constant 0 : index
    %c0_70 = arith.constant 0 : index
    %c0_71 = arith.constant 0 : index
    %113 = vector.load %arg20[%c0_69, %c0_70, %c0_71] : memref<2x2x32xf32, #tpu.memory_space<vmem>>, vector<1x2x32xf32>
    %114 = vector.shape_cast %113 : vector<1x2x32xf32> to vector<2x32xf32>
    %115 = vector.extract_strided_slice %110 {offsets = [0, 0], sizes = [2, 128], strides = [1, 1]} : vector<22x128xf32> to vector<2x128xf32>
    %cst_72 = arith.constant dense<0.000000e+00> : vector<2x128xf32>
    %116 = tpu.matmul %112, %105, %cst_72 {dimension_numbers = #tpu.dot_dimension_numbers<[1], [0], [0], [1], [0, 0, 1, 1], [], []>} : vector<2x32xf32>, vector<32x128xf32>, vector<2x128xf32> -> vector<2x128xf32>
    %117 = arith.addf %115, %116 : vector<2x128xf32>
    %118 = vector.extract_strided_slice %117 {offsets = [0, 0], sizes = [2, 32], strides = [1, 1]} : vector<2x128xf32> to vector<2x32xf32>
    %119 = arith.negf %118 : vector<2x32xf32>
    %120 = math.exp %119 : vector<2x32xf32>
    %cst_73 = arith.constant 1.000000e+00 : f32
    %121 = vector.broadcast %cst_73 : f32 to vector<2x32xf32>
    %122 = arith.addf %121, %120 : vector<2x32xf32>
    %123 = arith.divf %121, %122 : vector<2x32xf32>
    %124 = vector.extract_strided_slice %117 {offsets = [0, 32], sizes = [2, 32], strides = [1, 1]} : vector<2x128xf32> to vector<2x32xf32>
    %125 = arith.negf %124 : vector<2x32xf32>
    %126 = math.exp %125 : vector<2x32xf32>
    %cst_74 = arith.constant 1.000000e+00 : f32
    %127 = vector.broadcast %cst_74 : f32 to vector<2x32xf32>
    %128 = arith.addf %127, %126 : vector<2x32xf32>
    %129 = arith.divf %127, %128 : vector<2x32xf32>
    %130 = vector.extract_strided_slice %117 {offsets = [0, 64], sizes = [2, 32], strides = [1, 1]} : vector<2x128xf32> to vector<2x32xf32>
    %131 = math.tanh %130 : vector<2x32xf32>
    %132 = vector.extract_strided_slice %117 {offsets = [0, 96], sizes = [2, 32], strides = [1, 1]} : vector<2x128xf32> to vector<2x32xf32>
    %133 = arith.negf %132 : vector<2x32xf32>
    %134 = math.exp %133 : vector<2x32xf32>
    %cst_75 = arith.constant 1.000000e+00 : f32
    %135 = vector.broadcast %cst_75 : f32 to vector<2x32xf32>
    %136 = arith.addf %135, %134 : vector<2x32xf32>
    %137 = arith.divf %135, %136 : vector<2x32xf32>
    %138 = arith.mulf %129, %114 : vector<2x32xf32>
    %139 = arith.mulf %123, %131 : vector<2x32xf32>
    %140 = arith.addf %138, %139 : vector<2x32xf32>
    %141 = math.tanh %140 : vector<2x32xf32>
    %142 = arith.mulf %137, %141 : vector<2x32xf32>
    %c0_76 = arith.constant 0 : index
    %c0_77 = arith.constant 0 : index
    %143 = vector.load %arg24[%c0_76, %c0_77] : memref<22x32xf32, #tpu.memory_space<vmem>>, vector<2x32xf32>
    tpu.vector_store %arg24[%c0_76, %c0_77], %142 {strides = array<i32>} : memref<22x32xf32, #tpu.memory_space<vmem>>, vector<2x32xf32>,
    %144 = vector.extract_strided_slice %110 {offsets = [2, 0], sizes = [2, 128], strides = [1, 1]} : vector<22x128xf32> to vector<2x128xf32>
    %cst_78 = arith.constant dense<0.000000e+00> : vector<2x128xf32>
    %145 = tpu.matmul %142, %105, %cst_78 {dimension_numbers = #tpu.dot_dimension_numbers<[1], [0], [0], [1], [0, 0, 1, 1], [], []>} : vector<2x32xf32>, vector<32x128xf32>, vector<2x128xf32> -> vector<2x128xf32>
    %146 = arith.addf %144, %145 : vector<2x128xf32>
    %147 = vector.extract_strided_slice %146 {offsets = [0, 0], sizes = [2, 32], strides = [1, 1]} : vector<2x128xf32> to vector<2x32xf32>
    %148 = arith.negf %147 : vector<2x32xf32>
    %149 = math.exp %148 : vector<2x32xf32>
    %cst_79 = arith.constant 1.000000e+00 : f32
    %150 = vector.broadcast %cst_79 : f32 to vector<2x32xf32>
    %151 = arith.addf %150, %149 : vector<2x32xf32>
    %152 = arith.divf %150, %151 : vector<2x32xf32>
    %153 = vector.extract_strided_slice %146 {offsets = [0, 32], sizes = [2, 32], strides = [1, 1]} : vector<2x128xf32> to vector<2x32xf32>
    %154 = arith.negf %153 : vector<2x32xf32>
    %155 = math.exp %154 : vector<2x32xf32>
    %cst_80 = arith.constant 1.000000e+00 : f32
    %156 = vector.broadcast %cst_80 : f32 to vector<2x32xf32>
    %157 = arith.addf %156, %155 : vector<2x32xf32>
    %158 = arith.divf %156, %157 : vector<2x32xf32>
    %159 = vector.extract_strided_slice %146 {offsets = [0, 64], sizes = [2, 32], strides = [1, 1]} : vector<2x128xf32> to vector<2x32xf32>
    %160 = math.tanh %159 : vector<2x32xf32>
    %161 = vector.extract_strided_slice %146 {offsets = [0, 96], sizes = [2, 32], strides = [1, 1]} : vector<2x128xf32> to vector<2x32xf32>
    %162 = arith.negf %161 : vector<2x32xf32>
    %163 = math.exp %162 : vector<2x32xf32>
    %cst_81 = arith.constant 1.000000e+00 : f32
    %164 = vector.broadcast %cst_81 : f32 to vector<2x32xf32>
    %165 = arith.addf %164, %163 : vector<2x32xf32>
    %166 = arith.divf %164, %165 : vector<2x32xf32>
    %167 = arith.mulf %158, %140 : vector<2x32xf32>
    %168 = arith.mulf %152, %160 : vector<2x32xf32>
    %169 = arith.addf %167, %168 : vector<2x32xf32>
    %170 = math.tanh %169 : vector<2x32xf32>
    %171 = arith.mulf %166, %170 : vector<2x32xf32>
    %c2_82 = arith.constant 2 : index
    %c0_83 = arith.constant 0 : index
    %172 = vector.load %arg24[%c2_82, %c0_83] : memref<22x32xf32, #tpu.memory_space<vmem>>, vector<2x32xf32>
    tpu.vector_store %arg24[%c2_82, %c0_83], %171 {strides = array<i32>} : memref<22x32xf32, #tpu.memory_space<vmem>>, vector<2x32xf32>,
    %173 = vector.extract_strided_slice %110 {offsets = [4, 0], sizes = [2, 128], strides = [1, 1]} : vector<22x128xf32> to vector<2x128xf32>
    %cst_84 = arith.constant dense<0.000000e+00> : vector<2x128xf32>
    %174 = tpu.matmul %171, %105, %cst_84 {dimension_numbers = #tpu.dot_dimension_numbers<[1], [0], [0], [1], [0, 0, 1, 1], [], []>} : vector<2x32xf32>, vector<32x128xf32>, vector<2x128xf32> -> vector<2x128xf32>
    %175 = arith.addf %173, %174 : vector<2x128xf32>
    %176 = vector.extract_strided_slice %175 {offsets = [0, 0], sizes = [2, 32], strides = [1, 1]} : vector<2x128xf32> to vector<2x32xf32>
    %177 = arith.negf %176 : vector<2x32xf32>
    %178 = math.exp %177 : vector<2x32xf32>
    %cst_85 = arith.constant 1.000000e+00 : f32
    %179 = vector.broadcast %cst_85 : f32 to vector<2x32xf32>
    %180 = arith.addf %179, %178 : vector<2x32xf32>
    %181 = arith.divf %179, %180 : vector<2x32xf32>
    %182 = vector.extract_strided_slice %175 {offsets = [0, 32], sizes = [2, 32], strides = [1, 1]} : vector<2x128xf32> to vector<2x32xf32>
    %183 = arith.negf %182 : vector<2x32xf32>
    %184 = math.exp %183 : vector<2x32xf32>
    %cst_86 = arith.constant 1.000000e+00 : f32
    %185 = vector.broadcast %cst_86 : f32 to vector<2x32xf32>
    %186 = arith.addf %185, %184 : vector<2x32xf32>
    %187 = arith.divf %185, %186 : vector<2x32xf32>
    %188 = vector.extract_strided_slice %175 {offsets = [0, 64], sizes = [2, 32], strides = [1, 1]} : vector<2x128xf32> to vector<2x32xf32>
    %189 = math.tanh %188 : vector<2x32xf32>
    %190 = vector.extract_strided_slice %175 {offsets = [0, 96], sizes = [2, 32], strides = [1, 1]} : vector<2x128xf32> to vector<2x32xf32>
    %191 = arith.negf %190 : vector<2x32xf32>
    %192 = math.exp %191 : vector<2x32xf32>
    %cst_87 = arith.constant 1.000000e+00 : f32
    %193 = vector.broadcast %cst_87 : f32 to vector<2x32xf32>
    %194 = arith.addf %193, %192 : vector<2x32xf32>
    %195 = arith.divf %193, %194 : vector<2x32xf32>
    %196 = arith.mulf %187, %169 : vector<2x32xf32>
    %197 = arith.mulf %181, %189 : vector<2x32xf32>
    %198 = arith.addf %196, %197 : vector<2x32xf32>
    %199 = math.tanh %198 : vector<2x32xf32>
    %200 = arith.mulf %195, %199 : vector<2x32xf32>
    %c4_88 = arith.constant 4 : index
    %c0_89 = arith.constant 0 : index
    %201 = vector.load %arg24[%c4_88, %c0_89] : memref<22x32xf32, #tpu.memory_space<vmem>>, vector<2x32xf32>
    tpu.vector_store %arg24[%c4_88, %c0_89], %200 {strides = array<i32>} : memref<22x32xf32, #tpu.memory_space<vmem>>, vector<2x32xf32>,
    %202 = vector.extract_strided_slice %110 {offsets = [6, 0], sizes = [2, 128], strides = [1, 1]} : vector<22x128xf32> to vector<2x128xf32>
    %cst_90 = arith.constant dense<0.000000e+00> : vector<2x128xf32>
    %203 = tpu.matmul %200, %105, %cst_90 {dimension_numbers = #tpu.dot_dimension_numbers<[1], [0], [0], [1], [0, 0, 1, 1], [], []>} : vector<2x32xf32>, vector<32x128xf32>, vector<2x128xf32> -> vector<2x128xf32>
    %204 = arith.addf %202, %203 : vector<2x128xf32>
    %205 = vector.extract_strided_slice %204 {offsets = [0, 0], sizes = [2, 32], strides = [1, 1]} : vector<2x128xf32> to vector<2x32xf32>
    %206 = arith.negf %205 : vector<2x32xf32>
    %207 = math.exp %206 : vector<2x32xf32>
    %cst_91 = arith.constant 1.000000e+00 : f32
    %208 = vector.broadcast %cst_91 : f32 to vector<2x32xf32>
    %209 = arith.addf %208, %207 : vector<2x32xf32>
    %210 = arith.divf %208, %209 : vector<2x32xf32>
    %211 = vector.extract_strided_slice %204 {offsets = [0, 32], sizes = [2, 32], strides = [1, 1]} : vector<2x128xf32> to vector<2x32xf32>
    %212 = arith.negf %211 : vector<2x32xf32>
    %213 = math.exp %212 : vector<2x32xf32>
    %cst_92 = arith.constant 1.000000e+00 : f32
    %214 = vector.broadcast %cst_92 : f32 to vector<2x32xf32>
    %215 = arith.addf %214, %213 : vector<2x32xf32>
    %216 = arith.divf %214, %215 : vector<2x32xf32>
    %217 = vector.extract_strided_slice %204 {offsets = [0, 64], sizes = [2, 32], strides = [1, 1]} : vector<2x128xf32> to vector<2x32xf32>
    %218 = math.tanh %217 : vector<2x32xf32>
    %219 = vector.extract_strided_slice %204 {offsets = [0, 96], sizes = [2, 32], strides = [1, 1]} : vector<2x128xf32> to vector<2x32xf32>
    %220 = arith.negf %219 : vector<2x32xf32>
    %221 = math.exp %220 : vector<2x32xf32>
    %cst_93 = arith.constant 1.000000e+00 : f32
    %222 = vector.broadcast %cst_93 : f32 to vector<2x32xf32>
    %223 = arith.addf %222, %221 : vector<2x32xf32>
    %224 = arith.divf %222, %223 : vector<2x32xf32>
    %225 = arith.mulf %216, %198 : vector<2x32xf32>
    %226 = arith.mulf %210, %218 : vector<2x32xf32>
    %227 = arith.addf %225, %226 : vector<2x32xf32>
    %228 = math.tanh %227 : vector<2x32xf32>
    %229 = arith.mulf %224, %228 : vector<2x32xf32>
    %c6_94 = arith.constant 6 : index
    %c0_95 = arith.constant 0 : index
    %230 = vector.load %arg24[%c6_94, %c0_95] : memref<22x32xf32, #tpu.memory_space<vmem>>, vector<2x32xf32>
    tpu.vector_store %arg24[%c6_94, %c0_95], %229 {strides = array<i32>} : memref<22x32xf32, #tpu.memory_space<vmem>>, vector<2x32xf32>,
    %231 = vector.extract_strided_slice %110 {offsets = [8, 0], sizes = [2, 128], strides = [1, 1]} : vector<22x128xf32> to vector<2x128xf32>
    %cst_96 = arith.constant dense<0.000000e+00> : vector<2x128xf32>
    %232 = tpu.matmul %229, %105, %cst_96 {dimension_numbers = #tpu.dot_dimension_numbers<[1], [0], [0], [1], [0, 0, 1, 1], [], []>} : vector<2x32xf32>, vector<32x128xf32>, vector<2x128xf32> -> vector<2x128xf32>
    %233 = arith.addf %231, %232 : vector<2x128xf32>
    %234 = vector.extract_strided_slice %233 {offsets = [0, 0], sizes = [2, 32], strides = [1, 1]} : vector<2x128xf32> to vector<2x32xf32>
    %235 = arith.negf %234 : vector<2x32xf32>
    %236 = math.exp %235 : vector<2x32xf32>
    %cst_97 = arith.constant 1.000000e+00 : f32
    %237 = vector.broadcast %cst_97 : f32 to vector<2x32xf32>
    %238 = arith.addf %237, %236 : vector<2x32xf32>
    %239 = arith.divf %237, %238 : vector<2x32xf32>
    %240 = vector.extract_strided_slice %233 {offsets = [0, 32], sizes = [2, 32], strides = [1, 1]} : vector<2x128xf32> to vector<2x32xf32>
    %241 = arith.negf %240 : vector<2x32xf32>
    %242 = math.exp %241 : vector<2x32xf32>
    %cst_98 = arith.constant 1.000000e+00 : f32
    %243 = vector.broadcast %cst_98 : f32 to vector<2x32xf32>
    %244 = arith.addf %243, %242 : vector<2x32xf32>
    %245 = arith.divf %243, %244 : vector<2x32xf32>
    %246 = vector.extract_strided_slice %233 {offsets = [0, 64], sizes = [2, 32], strides = [1, 1]} : vector<2x128xf32> to vector<2x32xf32>
    %247 = math.tanh %246 : vector<2x32xf32>
    %248 = vector.extract_strided_slice %233 {offsets = [0, 96], sizes = [2, 32], strides = [1, 1]} : vector<2x128xf32> to vector<2x32xf32>
    %249 = arith.negf %248 : vector<2x32xf32>
    %250 = math.exp %249 : vector<2x32xf32>
    %cst_99 = arith.constant 1.000000e+00 : f32
    %251 = vector.broadcast %cst_99 : f32 to vector<2x32xf32>
    %252 = arith.addf %251, %250 : vector<2x32xf32>
    %253 = arith.divf %251, %252 : vector<2x32xf32>
    %254 = arith.mulf %245, %227 : vector<2x32xf32>
    %255 = arith.mulf %239, %247 : vector<2x32xf32>
    %256 = arith.addf %254, %255 : vector<2x32xf32>
    %257 = math.tanh %256 : vector<2x32xf32>
    %258 = arith.mulf %253, %257 : vector<2x32xf32>
    %c8_100 = arith.constant 8 : index
    %c0_101 = arith.constant 0 : index
    %259 = vector.load %arg24[%c8_100, %c0_101] : memref<22x32xf32, #tpu.memory_space<vmem>>, vector<2x32xf32>
    tpu.vector_store %arg24[%c8_100, %c0_101], %258 {strides = array<i32>} : memref<22x32xf32, #tpu.memory_space<vmem>>, vector<2x32xf32>,
    %260 = vector.extract_strided_slice %110 {offsets = [10, 0], sizes = [2, 128], strides = [1, 1]} : vector<22x128xf32> to vector<2x128xf32>
    %cst_102 = arith.constant dense<0.000000e+00> : vector<2x128xf32>
    %261 = tpu.matmul %258, %105, %cst_102 {dimension_numbers = #tpu.dot_dimension_numbers<[1], [0], [0], [1], [0, 0, 1, 1], [], []>} : vector<2x32xf32>, vector<32x128xf32>, vector<2x128xf32> -> vector<2x128xf32>
    %262 = arith.addf %260, %261 : vector<2x128xf32>
    %263 = vector.extract_strided_slice %262 {offsets = [0, 0], sizes = [2, 32], strides = [1, 1]} : vector<2x128xf32> to vector<2x32xf32>
    %264 = arith.negf %263 : vector<2x32xf32>
    %265 = math.exp %264 : vector<2x32xf32>
    %cst_103 = arith.constant 1.000000e+00 : f32
    %266 = vector.broadcast %cst_103 : f32 to vector<2x32xf32>
    %267 = arith.addf %266, %265 : vector<2x32xf32>
    %268 = arith.divf %266, %267 : vector<2x32xf32>
    %269 = vector.extract_strided_slice %262 {offsets = [0, 32], sizes = [2, 32], strides = [1, 1]} : vector<2x128xf32> to vector<2x32xf32>
    %270 = arith.negf %269 : vector<2x32xf32>
    %271 = math.exp %270 : vector<2x32xf32>
    %cst_104 = arith.constant 1.000000e+00 : f32
    %272 = vector.broadcast %cst_104 : f32 to vector<2x32xf32>
    %273 = arith.addf %272, %271 : vector<2x32xf32>
    %274 = arith.divf %272, %273 : vector<2x32xf32>
    %275 = vector.extract_strided_slice %262 {offsets = [0, 64], sizes = [2, 32], strides = [1, 1]} : vector<2x128xf32> to vector<2x32xf32>
    %276 = math.tanh %275 : vector<2x32xf32>
    %277 = vector.extract_strided_slice %262 {offsets = [0, 96], sizes = [2, 32], strides = [1, 1]} : vector<2x128xf32> to vector<2x32xf32>
    %278 = arith.negf %277 : vector<2x32xf32>
    %279 = math.exp %278 : vector<2x32xf32>
    %cst_105 = arith.constant 1.000000e+00 : f32
    %280 = vector.broadcast %cst_105 : f32 to vector<2x32xf32>
    %281 = arith.addf %280, %279 : vector<2x32xf32>
    %282 = arith.divf %280, %281 : vector<2x32xf32>
    %283 = arith.mulf %274, %256 : vector<2x32xf32>
    %284 = arith.mulf %268, %276 : vector<2x32xf32>
    %285 = arith.addf %283, %284 : vector<2x32xf32>
    %286 = math.tanh %285 : vector<2x32xf32>
    %287 = arith.mulf %282, %286 : vector<2x32xf32>
    %c10 = arith.constant 10 : index
    %c0_106 = arith.constant 0 : index
    %288 = vector.load %arg24[%c10, %c0_106] : memref<22x32xf32, #tpu.memory_space<vmem>>, vector<2x32xf32>
    tpu.vector_store %arg24[%c10, %c0_106], %287 {strides = array<i32>} : memref<22x32xf32, #tpu.memory_space<vmem>>, vector<2x32xf32>,
    %289 = vector.extract_strided_slice %110 {offsets = [12, 0], sizes = [2, 128], strides = [1, 1]} : vector<22x128xf32> to vector<2x128xf32>
    %cst_107 = arith.constant dense<0.000000e+00> : vector<2x128xf32>
    %290 = tpu.matmul %287, %105, %cst_107 {dimension_numbers = #tpu.dot_dimension_numbers<[1], [0], [0], [1], [0, 0, 1, 1], [], []>} : vector<2x32xf32>, vector<32x128xf32>, vector<2x128xf32> -> vector<2x128xf32>
    %291 = arith.addf %289, %290 : vector<2x128xf32>
    %292 = vector.extract_strided_slice %291 {offsets = [0, 0], sizes = [2, 32], strides = [1, 1]} : vector<2x128xf32> to vector<2x32xf32>
    %293 = arith.negf %292 : vector<2x32xf32>
    %294 = math.exp %293 : vector<2x32xf32>
    %cst_108 = arith.constant 1.000000e+00 : f32
    %295 = vector.broadcast %cst_108 : f32 to vector<2x32xf32>
    %296 = arith.addf %295, %294 : vector<2x32xf32>
    %297 = arith.divf %295, %296 : vector<2x32xf32>
    %298 = vector.extract_strided_slice %291 {offsets = [0, 32], sizes = [2, 32], strides = [1, 1]} : vector<2x128xf32> to vector<2x32xf32>
    %299 = arith.negf %298 : vector<2x32xf32>
    %300 = math.exp %299 : vector<2x32xf32>
    %cst_109 = arith.constant 1.000000e+00 : f32
    %301 = vector.broadcast %cst_109 : f32 to vector<2x32xf32>
    %302 = arith.addf %301, %300 : vector<2x32xf32>
    %303 = arith.divf %301, %302 : vector<2x32xf32>
    %304 = vector.extract_strided_slice %291 {offsets = [0, 64], sizes = [2, 32], strides = [1, 1]} : vector<2x128xf32> to vector<2x32xf32>
    %305 = math.tanh %304 : vector<2x32xf32>
    %306 = vector.extract_strided_slice %291 {offsets = [0, 96], sizes = [2, 32], strides = [1, 1]} : vector<2x128xf32> to vector<2x32xf32>
    %307 = arith.negf %306 : vector<2x32xf32>
    %308 = math.exp %307 : vector<2x32xf32>
    %cst_110 = arith.constant 1.000000e+00 : f32
    %309 = vector.broadcast %cst_110 : f32 to vector<2x32xf32>
    %310 = arith.addf %309, %308 : vector<2x32xf32>
    %311 = arith.divf %309, %310 : vector<2x32xf32>
    %312 = arith.mulf %303, %285 : vector<2x32xf32>
    %313 = arith.mulf %297, %305 : vector<2x32xf32>
    %314 = arith.addf %312, %313 : vector<2x32xf32>
    %315 = math.tanh %314 : vector<2x32xf32>
    %316 = arith.mulf %311, %315 : vector<2x32xf32>
    %c12 = arith.constant 12 : index
    %c0_111 = arith.constant 0 : index
    %317 = vector.load %arg24[%c12, %c0_111] : memref<22x32xf32, #tpu.memory_space<vmem>>, vector<2x32xf32>
    tpu.vector_store %arg24[%c12, %c0_111], %316 {strides = array<i32>} : memref<22x32xf32, #tpu.memory_space<vmem>>, vector<2x32xf32>,
    %318 = vector.extract_strided_slice %110 {offsets = [14, 0], sizes = [2, 128], strides = [1, 1]} : vector<22x128xf32> to vector<2x128xf32>
    %cst_112 = arith.constant dense<0.000000e+00> : vector<2x128xf32>
    %319 = tpu.matmul %316, %105, %cst_112 {dimension_numbers = #tpu.dot_dimension_numbers<[1], [0], [0], [1], [0, 0, 1, 1], [], []>} : vector<2x32xf32>, vector<32x128xf32>, vector<2x128xf32> -> vector<2x128xf32>
    %320 = arith.addf %318, %319 : vector<2x128xf32>
    %321 = vector.extract_strided_slice %320 {offsets = [0, 0], sizes = [2, 32], strides = [1, 1]} : vector<2x128xf32> to vector<2x32xf32>
    %322 = arith.negf %321 : vector<2x32xf32>
    %323 = math.exp %322 : vector<2x32xf32>
    %cst_113 = arith.constant 1.000000e+00 : f32
    %324 = vector.broadcast %cst_113 : f32 to vector<2x32xf32>
    %325 = arith.addf %324, %323 : vector<2x32xf32>
    %326 = arith.divf %324, %325 : vector<2x32xf32>
    %327 = vector.extract_strided_slice %320 {offsets = [0, 32], sizes = [2, 32], strides = [1, 1]} : vector<2x128xf32> to vector<2x32xf32>
    %328 = arith.negf %327 : vector<2x32xf32>
    %329 = math.exp %328 : vector<2x32xf32>
    %cst_114 = arith.constant 1.000000e+00 : f32
    %330 = vector.broadcast %cst_114 : f32 to vector<2x32xf32>
    %331 = arith.addf %330, %329 : vector<2x32xf32>
    %332 = arith.divf %330, %331 : vector<2x32xf32>
    %333 = vector.extract_strided_slice %320 {offsets = [0, 64], sizes = [2, 32], strides = [1, 1]} : vector<2x128xf32> to vector<2x32xf32>
    %334 = math.tanh %333 : vector<2x32xf32>
    %335 = vector.extract_strided_slice %320 {offsets = [0, 96], sizes = [2, 32], strides = [1, 1]} : vector<2x128xf32> to vector<2x32xf32>
    %336 = arith.negf %335 : vector<2x32xf32>
    %337 = math.exp %336 : vector<2x32xf32>
    %cst_115 = arith.constant 1.000000e+00 : f32
    %338 = vector.broadcast %cst_115 : f32 to vector<2x32xf32>
    %339 = arith.addf %338, %337 : vector<2x32xf32>
    %340 = arith.divf %338, %339 : vector<2x32xf32>
    %341 = arith.mulf %332, %314 : vector<2x32xf32>
    %342 = arith.mulf %326, %334 : vector<2x32xf32>
    %343 = arith.addf %341, %342 : vector<2x32xf32>
    %344 = math.tanh %343 : vector<2x32xf32>
    %345 = arith.mulf %340, %344 : vector<2x32xf32>
    %c14 = arith.constant 14 : index
    %c0_116 = arith.constant 0 : index
    %346 = vector.load %arg24[%c14, %c0_116] : memref<22x32xf32, #tpu.memory_space<vmem>>, vector<2x32xf32>
    tpu.vector_store %arg24[%c14, %c0_116], %345 {strides = array<i32>} : memref<22x32xf32, #tpu.memory_space<vmem>>, vector<2x32xf32>,
    %347 = vector.extract_strided_slice %110 {offsets = [16, 0], sizes = [2, 128], strides = [1, 1]} : vector<22x128xf32> to vector<2x128xf32>
    %cst_117 = arith.constant dense<0.000000e+00> : vector<2x128xf32>
    %348 = tpu.matmul %345, %105, %cst_117 {dimension_numbers = #tpu.dot_dimension_numbers<[1], [0], [0], [1], [0, 0, 1, 1], [], []>} : vector<2x32xf32>, vector<32x128xf32>, vector<2x128xf32> -> vector<2x128xf32>
    %349 = arith.addf %347, %348 : vector<2x128xf32>
    %350 = vector.extract_strided_slice %349 {offsets = [0, 0], sizes = [2, 32], strides = [1, 1]} : vector<2x128xf32> to vector<2x32xf32>
    %351 = arith.negf %350 : vector<2x32xf32>
    %352 = math.exp %351 : vector<2x32xf32>
    %cst_118 = arith.constant 1.000000e+00 : f32
    %353 = vector.broadcast %cst_118 : f32 to vector<2x32xf32>
    %354 = arith.addf %353, %352 : vector<2x32xf32>
    %355 = arith.divf %353, %354 : vector<2x32xf32>
    %356 = vector.extract_strided_slice %349 {offsets = [0, 32], sizes = [2, 32], strides = [1, 1]} : vector<2x128xf32> to vector<2x32xf32>
    %357 = arith.negf %356 : vector<2x32xf32>
    %358 = math.exp %357 : vector<2x32xf32>
    %cst_119 = arith.constant 1.000000e+00 : f32
    %359 = vector.broadcast %cst_119 : f32 to vector<2x32xf32>
    %360 = arith.addf %359, %358 : vector<2x32xf32>
    %361 = arith.divf %359, %360 : vector<2x32xf32>
    %362 = vector.extract_strided_slice %349 {offsets = [0, 64], sizes = [2, 32], strides = [1, 1]} : vector<2x128xf32> to vector<2x32xf32>
    %363 = math.tanh %362 : vector<2x32xf32>
    %364 = vector.extract_strided_slice %349 {offsets = [0, 96], sizes = [2, 32], strides = [1, 1]} : vector<2x128xf32> to vector<2x32xf32>
    %365 = arith.negf %364 : vector<2x32xf32>
    %366 = math.exp %365 : vector<2x32xf32>
    %cst_120 = arith.constant 1.000000e+00 : f32
    %367 = vector.broadcast %cst_120 : f32 to vector<2x32xf32>
    %368 = arith.addf %367, %366 : vector<2x32xf32>
    %369 = arith.divf %367, %368 : vector<2x32xf32>
    %370 = arith.mulf %361, %343 : vector<2x32xf32>
    %371 = arith.mulf %355, %363 : vector<2x32xf32>
    %372 = arith.addf %370, %371 : vector<2x32xf32>
    %373 = math.tanh %372 : vector<2x32xf32>
    %374 = arith.mulf %369, %373 : vector<2x32xf32>
    %c16 = arith.constant 16 : index
    %c0_121 = arith.constant 0 : index
    %375 = vector.load %arg24[%c16, %c0_121] : memref<22x32xf32, #tpu.memory_space<vmem>>, vector<2x32xf32>
    tpu.vector_store %arg24[%c16, %c0_121], %374 {strides = array<i32>} : memref<22x32xf32, #tpu.memory_space<vmem>>, vector<2x32xf32>,
    %376 = vector.extract_strided_slice %110 {offsets = [18, 0], sizes = [2, 128], strides = [1, 1]} : vector<22x128xf32> to vector<2x128xf32>
    %cst_122 = arith.constant dense<0.000000e+00> : vector<2x128xf32>
    %377 = tpu.matmul %374, %105, %cst_122 {dimension_numbers = #tpu.dot_dimension_numbers<[1], [0], [0], [1], [0, 0, 1, 1], [], []>} : vector<2x32xf32>, vector<32x128xf32>, vector<2x128xf32> -> vector<2x128xf32>
    %378 = arith.addf %376, %377 : vector<2x128xf32>
    %379 = vector.extract_strided_slice %378 {offsets = [0, 0], sizes = [2, 32], strides = [1, 1]} : vector<2x128xf32> to vector<2x32xf32>
    %380 = arith.negf %379 : vector<2x32xf32>
    %381 = math.exp %380 : vector<2x32xf32>
    %cst_123 = arith.constant 1.000000e+00 : f32
    %382 = vector.broadcast %cst_123 : f32 to vector<2x32xf32>
    %383 = arith.addf %382, %381 : vector<2x32xf32>
    %384 = arith.divf %382, %383 : vector<2x32xf32>
    %385 = vector.extract_strided_slice %378 {offsets = [0, 32], sizes = [2, 32], strides = [1, 1]} : vector<2x128xf32> to vector<2x32xf32>
    %386 = arith.negf %385 : vector<2x32xf32>
    %387 = math.exp %386 : vector<2x32xf32>
    %cst_124 = arith.constant 1.000000e+00 : f32
    %388 = vector.broadcast %cst_124 : f32 to vector<2x32xf32>
    %389 = arith.addf %388, %387 : vector<2x32xf32>
    %390 = arith.divf %388, %389 : vector<2x32xf32>
    %391 = vector.extract_strided_slice %378 {offsets = [0, 64], sizes = [2, 32], strides = [1, 1]} : vector<2x128xf32> to vector<2x32xf32>
    %392 = math.tanh %391 : vector<2x32xf32>
    %393 = vector.extract_strided_slice %378 {offsets = [0, 96], sizes = [2, 32], strides = [1, 1]} : vector<2x128xf32> to vector<2x32xf32>
    %394 = arith.negf %393 : vector<2x32xf32>
    %395 = math.exp %394 : vector<2x32xf32>
    %cst_125 = arith.constant 1.000000e+00 : f32
    %396 = vector.broadcast %cst_125 : f32 to vector<2x32xf32>
    %397 = arith.addf %396, %395 : vector<2x32xf32>
    %398 = arith.divf %396, %397 : vector<2x32xf32>
    %399 = arith.mulf %390, %372 : vector<2x32xf32>
    %400 = arith.mulf %384, %392 : vector<2x32xf32>
    %401 = arith.addf %399, %400 : vector<2x32xf32>
    %402 = math.tanh %401 : vector<2x32xf32>
    %403 = arith.mulf %398, %402 : vector<2x32xf32>
    %c18 = arith.constant 18 : index
    %c0_126 = arith.constant 0 : index
    %404 = vector.load %arg24[%c18, %c0_126] : memref<22x32xf32, #tpu.memory_space<vmem>>, vector<2x32xf32>
    tpu.vector_store %arg24[%c18, %c0_126], %403 {strides = array<i32>} : memref<22x32xf32, #tpu.memory_space<vmem>>, vector<2x32xf32>,
    %405 = vector.extract_strided_slice %110 {offsets = [20, 0], sizes = [2, 128], strides = [1, 1]} : vector<22x128xf32> to vector<2x128xf32>
    %cst_127 = arith.constant dense<0.000000e+00> : vector<2x128xf32>
    %406 = tpu.matmul %403, %105, %cst_127 {dimension_numbers = #tpu.dot_dimension_numbers<[1], [0], [0], [1], [0, 0, 1, 1], [], []>} : vector<2x32xf32>, vector<32x128xf32>, vector<2x128xf32> -> vector<2x128xf32>
    %407 = arith.addf %405, %406 : vector<2x128xf32>
    %408 = vector.extract_strided_slice %407 {offsets = [0, 0], sizes = [2, 32], strides = [1, 1]} : vector<2x128xf32> to vector<2x32xf32>
    %409 = arith.negf %408 : vector<2x32xf32>
    %410 = math.exp %409 : vector<2x32xf32>
    %cst_128 = arith.constant 1.000000e+00 : f32
    %411 = vector.broadcast %cst_128 : f32 to vector<2x32xf32>
    %412 = arith.addf %411, %410 : vector<2x32xf32>
    %413 = arith.divf %411, %412 : vector<2x32xf32>
    %414 = vector.extract_strided_slice %407 {offsets = [0, 32], sizes = [2, 32], strides = [1, 1]} : vector<2x128xf32> to vector<2x32xf32>
    %415 = arith.negf %414 : vector<2x32xf32>
    %416 = math.exp %415 : vector<2x32xf32>
    %cst_129 = arith.constant 1.000000e+00 : f32
    %417 = vector.broadcast %cst_129 : f32 to vector<2x32xf32>
    %418 = arith.addf %417, %416 : vector<2x32xf32>
    %419 = arith.divf %417, %418 : vector<2x32xf32>
    %420 = vector.extract_strided_slice %407 {offsets = [0, 64], sizes = [2, 32], strides = [1, 1]} : vector<2x128xf32> to vector<2x32xf32>
    %421 = math.tanh %420 : vector<2x32xf32>
    %422 = vector.extract_strided_slice %407 {offsets = [0, 96], sizes = [2, 32], strides = [1, 1]} : vector<2x128xf32> to vector<2x32xf32>
    %423 = arith.negf %422 : vector<2x32xf32>
    %424 = math.exp %423 : vector<2x32xf32>
    %cst_130 = arith.constant 1.000000e+00 : f32
    %425 = vector.broadcast %cst_130 : f32 to vector<2x32xf32>
    %426 = arith.addf %425, %424 : vector<2x32xf32>
    %427 = arith.divf %425, %426 : vector<2x32xf32>
    %428 = arith.mulf %419, %401 : vector<2x32xf32>
    %429 = arith.mulf %413, %421 : vector<2x32xf32>
    %430 = arith.addf %428, %429 : vector<2x32xf32>
    %431 = math.tanh %430 : vector<2x32xf32>
    %432 = arith.mulf %427, %431 : vector<2x32xf32>
    %c20 = arith.constant 20 : index
    %c0_131 = arith.constant 0 : index
    %433 = vector.load %arg24[%c20, %c0_131] : memref<22x32xf32, #tpu.memory_space<vmem>>, vector<2x32xf32>
    tpu.vector_store %arg24[%c20, %c0_131], %432 {strides = array<i32>} : memref<22x32xf32, #tpu.memory_space<vmem>>, vector<2x32xf32>,
    %c0_132 = arith.constant 0 : index
    %c0_133 = arith.constant 0 : index
    %c0_134 = arith.constant 0 : index
    %434 = vector.load %arg22[%c0_132, %c0_133, %c0_134] : memref<2x2x32xf32, #tpu.memory_space<vmem>>, vector<1x2x32xf32>
    %435 = vector.shape_cast %434 : vector<1x2x32xf32> to vector<2x32xf32>
    %436 = vector.shape_cast %432 : vector<2x32xf32> to vector<1x2x32xf32>
    tpu.vector_store %arg22[%c0_132, %c0_133, %c0_134], %436 {strides = array<i32>} : memref<2x2x32xf32, #tpu.memory_space<vmem>>, vector<1x2x32xf32>,
    %c0_135 = arith.constant 0 : index
    %c0_136 = arith.constant 0 : index
    %c0_137 = arith.constant 0 : index
    %437 = vector.load %arg23[%c0_135, %c0_136, %c0_137] : memref<2x2x32xf32, #tpu.memory_space<vmem>>, vector<1x2x32xf32>
    %438 = vector.shape_cast %437 : vector<1x2x32xf32> to vector<2x32xf32>
    %439 = vector.shape_cast %430 : vector<2x32xf32> to vector<1x2x32xf32>
    tpu.vector_store %arg23[%c0_135, %c0_136, %c0_137], %439 {strides = array<i32>} : memref<2x2x32xf32, #tpu.memory_space<vmem>>, vector<1x2x32xf32>,
    %c0_138 = arith.constant 0 : index
    %c0_139 = arith.constant 0 : index
    %440 = vector.load %arg13[%c0_138, %c0_139] : memref<32x128xf32, #tpu.memory_space<vmem>>, vector<32x128xf32>
    %c0_140 = arith.constant 0 : index
    %c0_141 = arith.constant 0 : index
    %441 = vector.load %arg24[%c0_140, %c0_141] : memref<22x32xf32, #tpu.memory_space<vmem>>, vector<22x32xf32>
    %c0_142 = arith.constant 0 : index
    %c0_143 = arith.constant 0 : index
    %442 = vector.load %arg12[%c0_142, %c0_143] : memref<32x128xf32, #tpu.memory_space<vmem>>, vector<32x128xf32>
    %cst_144 = arith.constant dense<0.000000e+00> : vector<22x128xf32>
    %443 = tpu.matmul %441, %442, %cst_144 {dimension_numbers = #tpu.dot_dimension_numbers<[1], [0], [0], [1], [0, 0, 1, 1], [], []>} : vector<22x32xf32>, vector<32x128xf32>, vector<22x128xf32> -> vector<22x128xf32>
    %c0_145 = arith.constant 0 : index
    %c0_146 = arith.constant 0 : index
    %444 = vector.load %arg14[%c0_145, %c0_146] : memref<1x128xf32, #tpu.memory_space<vmem>>, vector<1x128xf32>
    %445 = vector.broadcast %444 : vector<1x128xf32> to vector<22x128xf32>
    %446 = arith.addf %443, %445 : vector<22x128xf32>
    %c1_147 = arith.constant 1 : index
    %c0_148 = arith.constant 0 : index
    %c0_149 = arith.constant 0 : index
    %447 = vector.load %arg19[%c1_147, %c0_148, %c0_149] : memref<2x2x32xf32, #tpu.memory_space<vmem>>, vector<1x2x32xf32>
    %448 = vector.shape_cast %447 : vector<1x2x32xf32> to vector<2x32xf32>
    %c1_150 = arith.constant 1 : index
    %c0_151 = arith.constant 0 : index
    %c0_152 = arith.constant 0 : index
    %449 = vector.load %arg20[%c1_150, %c0_151, %c0_152] : memref<2x2x32xf32, #tpu.memory_space<vmem>>, vector<1x2x32xf32>
    %450 = vector.shape_cast %449 : vector<1x2x32xf32> to vector<2x32xf32>
    %451 = vector.extract_strided_slice %446 {offsets = [0, 0], sizes = [2, 128], strides = [1, 1]} : vector<22x128xf32> to vector<2x128xf32>
    %cst_153 = arith.constant dense<0.000000e+00> : vector<2x128xf32>
    %452 = tpu.matmul %448, %440, %cst_153 {dimension_numbers = #tpu.dot_dimension_numbers<[1], [0], [0], [1], [0, 0, 1, 1], [], []>} : vector<2x32xf32>, vector<32x128xf32>, vector<2x128xf32> -> vector<2x128xf32>
    %453 = arith.addf %451, %452 : vector<2x128xf32>
    %454 = vector.extract_strided_slice %453 {offsets = [0, 0], sizes = [2, 32], strides = [1, 1]} : vector<2x128xf32> to vector<2x32xf32>
    %455 = arith.negf %454 : vector<2x32xf32>
    %456 = math.exp %455 : vector<2x32xf32>
    %cst_154 = arith.constant 1.000000e+00 : f32
    %457 = vector.broadcast %cst_154 : f32 to vector<2x32xf32>
    %458 = arith.addf %457, %456 : vector<2x32xf32>
    %459 = arith.divf %457, %458 : vector<2x32xf32>
    %460 = vector.extract_strided_slice %453 {offsets = [0, 32], sizes = [2, 32], strides = [1, 1]} : vector<2x128xf32> to vector<2x32xf32>
    %461 = arith.negf %460 : vector<2x32xf32>
    %462 = math.exp %461 : vector<2x32xf32>
    %cst_155 = arith.constant 1.000000e+00 : f32
    %463 = vector.broadcast %cst_155 : f32 to vector<2x32xf32>
    %464 = arith.addf %463, %462 : vector<2x32xf32>
    %465 = arith.divf %463, %464 : vector<2x32xf32>
    %466 = vector.extract_strided_slice %453 {offsets = [0, 64], sizes = [2, 32], strides = [1, 1]} : vector<2x128xf32> to vector<2x32xf32>
    %467 = math.tanh %466 : vector<2x32xf32>
    %468 = vector.extract_strided_slice %453 {offsets = [0, 96], sizes = [2, 32], strides = [1, 1]} : vector<2x128xf32> to vector<2x32xf32>
    %469 = arith.negf %468 : vector<2x32xf32>
    %470 = math.exp %469 : vector<2x32xf32>
    %cst_156 = arith.constant 1.000000e+00 : f32
    %471 = vector.broadcast %cst_156 : f32 to vector<2x32xf32>
    %472 = arith.addf %471, %470 : vector<2x32xf32>
    %473 = arith.divf %471, %472 : vector<2x32xf32>
    %474 = arith.mulf %465, %450 : vector<2x32xf32>
    %475 = arith.mulf %459, %467 : vector<2x32xf32>
    %476 = arith.addf %474, %475 : vector<2x32xf32>
    %477 = math.tanh %476 : vector<2x32xf32>
    %478 = arith.mulf %473, %477 : vector<2x32xf32>
    %c0_157 = arith.constant 0 : index
    %c0_158 = arith.constant 0 : index
    %479 = vector.load %arg25[%c0_157, %c0_158] : memref<22x32xf32, #tpu.memory_space<vmem>>, vector<2x32xf32>
    tpu.vector_store %arg25[%c0_157, %c0_158], %478 {strides = array<i32>} : memref<22x32xf32, #tpu.memory_space<vmem>>, vector<2x32xf32>,
    %480 = vector.extract_strided_slice %446 {offsets = [2, 0], sizes = [2, 128], strides = [1, 1]} : vector<22x128xf32> to vector<2x128xf32>
    %cst_159 = arith.constant dense<0.000000e+00> : vector<2x128xf32>
    %481 = tpu.matmul %478, %440, %cst_159 {dimension_numbers = #tpu.dot_dimension_numbers<[1], [0], [0], [1], [0, 0, 1, 1], [], []>} : vector<2x32xf32>, vector<32x128xf32>, vector<2x128xf32> -> vector<2x128xf32>
    %482 = arith.addf %480, %481 : vector<2x128xf32>
    %483 = vector.extract_strided_slice %482 {offsets = [0, 0], sizes = [2, 32], strides = [1, 1]} : vector<2x128xf32> to vector<2x32xf32>
    %484 = arith.negf %483 : vector<2x32xf32>
    %485 = math.exp %484 : vector<2x32xf32>
    %cst_160 = arith.constant 1.000000e+00 : f32
    %486 = vector.broadcast %cst_160 : f32 to vector<2x32xf32>
    %487 = arith.addf %486, %485 : vector<2x32xf32>
    %488 = arith.divf %486, %487 : vector<2x32xf32>
    %489 = vector.extract_strided_slice %482 {offsets = [0, 32], sizes = [2, 32], strides = [1, 1]} : vector<2x128xf32> to vector<2x32xf32>
    %490 = arith.negf %489 : vector<2x32xf32>
    %491 = math.exp %490 : vector<2x32xf32>
    %cst_161 = arith.constant 1.000000e+00 : f32
    %492 = vector.broadcast %cst_161 : f32 to vector<2x32xf32>
    %493 = arith.addf %492, %491 : vector<2x32xf32>
    %494 = arith.divf %492, %493 : vector<2x32xf32>
    %495 = vector.extract_strided_slice %482 {offsets = [0, 64], sizes = [2, 32], strides = [1, 1]} : vector<2x128xf32> to vector<2x32xf32>
    %496 = math.tanh %495 : vector<2x32xf32>
    %497 = vector.extract_strided_slice %482 {offsets = [0, 96], sizes = [2, 32], strides = [1, 1]} : vector<2x128xf32> to vector<2x32xf32>
    %498 = arith.negf %497 : vector<2x32xf32>
    %499 = math.exp %498 : vector<2x32xf32>
    %cst_162 = arith.constant 1.000000e+00 : f32
    %500 = vector.broadcast %cst_162 : f32 to vector<2x32xf32>
    %501 = arith.addf %500, %499 : vector<2x32xf32>
    %502 = arith.divf %500, %501 : vector<2x32xf32>
    %503 = arith.mulf %494, %476 : vector<2x32xf32>
    %504 = arith.mulf %488, %496 : vector<2x32xf32>
    %505 = arith.addf %503, %504 : vector<2x32xf32>
    %506 = math.tanh %505 : vector<2x32xf32>
    %507 = arith.mulf %502, %506 : vector<2x32xf32>
    %c2_163 = arith.constant 2 : index
    %c0_164 = arith.constant 0 : index
    %508 = vector.load %arg25[%c2_163, %c0_164] : memref<22x32xf32, #tpu.memory_space<vmem>>, vector<2x32xf32>
    tpu.vector_store %arg25[%c2_163, %c0_164], %507 {strides = array<i32>} : memref<22x32xf32, #tpu.memory_space<vmem>>, vector<2x32xf32>,
    %509 = vector.extract_strided_slice %446 {offsets = [4, 0], sizes = [2, 128], strides = [1, 1]} : vector<22x128xf32> to vector<2x128xf32>
    %cst_165 = arith.constant dense<0.000000e+00> : vector<2x128xf32>
    %510 = tpu.matmul %507, %440, %cst_165 {dimension_numbers = #tpu.dot_dimension_numbers<[1], [0], [0], [1], [0, 0, 1, 1], [], []>} : vector<2x32xf32>, vector<32x128xf32>, vector<2x128xf32> -> vector<2x128xf32>
    %511 = arith.addf %509, %510 : vector<2x128xf32>
    %512 = vector.extract_strided_slice %511 {offsets = [0, 0], sizes = [2, 32], strides = [1, 1]} : vector<2x128xf32> to vector<2x32xf32>
    %513 = arith.negf %512 : vector<2x32xf32>
    %514 = math.exp %513 : vector<2x32xf32>
    %cst_166 = arith.constant 1.000000e+00 : f32
    %515 = vector.broadcast %cst_166 : f32 to vector<2x32xf32>
    %516 = arith.addf %515, %514 : vector<2x32xf32>
    %517 = arith.divf %515, %516 : vector<2x32xf32>
    %518 = vector.extract_strided_slice %511 {offsets = [0, 32], sizes = [2, 32], strides = [1, 1]} : vector<2x128xf32> to vector<2x32xf32>
    %519 = arith.negf %518 : vector<2x32xf32>
    %520 = math.exp %519 : vector<2x32xf32>
    %cst_167 = arith.constant 1.000000e+00 : f32
    %521 = vector.broadcast %cst_167 : f32 to vector<2x32xf32>
    %522 = arith.addf %521, %520 : vector<2x32xf32>
    %523 = arith.divf %521, %522 : vector<2x32xf32>
    %524 = vector.extract_strided_slice %511 {offsets = [0, 64], sizes = [2, 32], strides = [1, 1]} : vector<2x128xf32> to vector<2x32xf32>
    %525 = math.tanh %524 : vector<2x32xf32>
    %526 = vector.extract_strided_slice %511 {offsets = [0, 96], sizes = [2, 32], strides = [1, 1]} : vector<2x128xf32> to vector<2x32xf32>
    %527 = arith.negf %526 : vector<2x32xf32>
    %528 = math.exp %527 : vector<2x32xf32>
    %cst_168 = arith.constant 1.000000e+00 : f32
    %529 = vector.broadcast %cst_168 : f32 to vector<2x32xf32>
    %530 = arith.addf %529, %528 : vector<2x32xf32>
    %531 = arith.divf %529, %530 : vector<2x32xf32>
    %532 = arith.mulf %523, %505 : vector<2x32xf32>
    %533 = arith.mulf %517, %525 : vector<2x32xf32>
    %534 = arith.addf %532, %533 : vector<2x32xf32>
    %535 = math.tanh %534 : vector<2x32xf32>
    %536 = arith.mulf %531, %535 : vector<2x32xf32>
    %c4_169 = arith.constant 4 : index
    %c0_170 = arith.constant 0 : index
    %537 = vector.load %arg25[%c4_169, %c0_170] : memref<22x32xf32, #tpu.memory_space<vmem>>, vector<2x32xf32>
    tpu.vector_store %arg25[%c4_169, %c0_170], %536 {strides = array<i32>} : memref<22x32xf32, #tpu.memory_space<vmem>>, vector<2x32xf32>,
    %538 = vector.extract_strided_slice %446 {offsets = [6, 0], sizes = [2, 128], strides = [1, 1]} : vector<22x128xf32> to vector<2x128xf32>
    %cst_171 = arith.constant dense<0.000000e+00> : vector<2x128xf32>
    %539 = tpu.matmul %536, %440, %cst_171 {dimension_numbers = #tpu.dot_dimension_numbers<[1], [0], [0], [1], [0, 0, 1, 1], [], []>} : vector<2x32xf32>, vector<32x128xf32>, vector<2x128xf32> -> vector<2x128xf32>
    %540 = arith.addf %538, %539 : vector<2x128xf32>
    %541 = vector.extract_strided_slice %540 {offsets = [0, 0], sizes = [2, 32], strides = [1, 1]} : vector<2x128xf32> to vector<2x32xf32>
    %542 = arith.negf %541 : vector<2x32xf32>
    %543 = math.exp %542 : vector<2x32xf32>
    %cst_172 = arith.constant 1.000000e+00 : f32
    %544 = vector.broadcast %cst_172 : f32 to vector<2x32xf32>
    %545 = arith.addf %544, %543 : vector<2x32xf32>
    %546 = arith.divf %544, %545 : vector<2x32xf32>
    %547 = vector.extract_strided_slice %540 {offsets = [0, 32], sizes = [2, 32], strides = [1, 1]} : vector<2x128xf32> to vector<2x32xf32>
    %548 = arith.negf %547 : vector<2x32xf32>
    %549 = math.exp %548 : vector<2x32xf32>
    %cst_173 = arith.constant 1.000000e+00 : f32
    %550 = vector.broadcast %cst_173 : f32 to vector<2x32xf32>
    %551 = arith.addf %550, %549 : vector<2x32xf32>
    %552 = arith.divf %550, %551 : vector<2x32xf32>
    %553 = vector.extract_strided_slice %540 {offsets = [0, 64], sizes = [2, 32], strides = [1, 1]} : vector<2x128xf32> to vector<2x32xf32>
    %554 = math.tanh %553 : vector<2x32xf32>
    %555 = vector.extract_strided_slice %540 {offsets = [0, 96], sizes = [2, 32], strides = [1, 1]} : vector<2x128xf32> to vector<2x32xf32>
    %556 = arith.negf %555 : vector<2x32xf32>
    %557 = math.exp %556 : vector<2x32xf32>
    %cst_174 = arith.constant 1.000000e+00 : f32
    %558 = vector.broadcast %cst_174 : f32 to vector<2x32xf32>
    %559 = arith.addf %558, %557 : vector<2x32xf32>
    %560 = arith.divf %558, %559 : vector<2x32xf32>
    %561 = arith.mulf %552, %534 : vector<2x32xf32>
    %562 = arith.mulf %546, %554 : vector<2x32xf32>
    %563 = arith.addf %561, %562 : vector<2x32xf32>
    %564 = math.tanh %563 : vector<2x32xf32>
    %565 = arith.mulf %560, %564 : vector<2x32xf32>
    %c6_175 = arith.constant 6 : index
    %c0_176 = arith.constant 0 : index
    %566 = vector.load %arg25[%c6_175, %c0_176] : memref<22x32xf32, #tpu.memory_space<vmem>>, vector<2x32xf32>
    tpu.vector_store %arg25[%c6_175, %c0_176], %565 {strides = array<i32>} : memref<22x32xf32, #tpu.memory_space<vmem>>, vector<2x32xf32>,
    %567 = vector.extract_strided_slice %446 {offsets = [8, 0], sizes = [2, 128], strides = [1, 1]} : vector<22x128xf32> to vector<2x128xf32>
    %cst_177 = arith.constant dense<0.000000e+00> : vector<2x128xf32>
    %568 = tpu.matmul %565, %440, %cst_177 {dimension_numbers = #tpu.dot_dimension_numbers<[1], [0], [0], [1], [0, 0, 1, 1], [], []>} : vector<2x32xf32>, vector<32x128xf32>, vector<2x128xf32> -> vector<2x128xf32>
    %569 = arith.addf %567, %568 : vector<2x128xf32>
    %570 = vector.extract_strided_slice %569 {offsets = [0, 0], sizes = [2, 32], strides = [1, 1]} : vector<2x128xf32> to vector<2x32xf32>
    %571 = arith.negf %570 : vector<2x32xf32>
    %572 = math.exp %571 : vector<2x32xf32>
    %cst_178 = arith.constant 1.000000e+00 : f32
    %573 = vector.broadcast %cst_178 : f32 to vector<2x32xf32>
    %574 = arith.addf %573, %572 : vector<2x32xf32>
    %575 = arith.divf %573, %574 : vector<2x32xf32>
    %576 = vector.extract_strided_slice %569 {offsets = [0, 32], sizes = [2, 32], strides = [1, 1]} : vector<2x128xf32> to vector<2x32xf32>
    %577 = arith.negf %576 : vector<2x32xf32>
    %578 = math.exp %577 : vector<2x32xf32>
    %cst_179 = arith.constant 1.000000e+00 : f32
    %579 = vector.broadcast %cst_179 : f32 to vector<2x32xf32>
    %580 = arith.addf %579, %578 : vector<2x32xf32>
    %581 = arith.divf %579, %580 : vector<2x32xf32>
    %582 = vector.extract_strided_slice %569 {offsets = [0, 64], sizes = [2, 32], strides = [1, 1]} : vector<2x128xf32> to vector<2x32xf32>
    %583 = math.tanh %582 : vector<2x32xf32>
    %584 = vector.extract_strided_slice %569 {offsets = [0, 96], sizes = [2, 32], strides = [1, 1]} : vector<2x128xf32> to vector<2x32xf32>
    %585 = arith.negf %584 : vector<2x32xf32>
    %586 = math.exp %585 : vector<2x32xf32>
    %cst_180 = arith.constant 1.000000e+00 : f32
    %587 = vector.broadcast %cst_180 : f32 to vector<2x32xf32>
    %588 = arith.addf %587, %586 : vector<2x32xf32>
    %589 = arith.divf %587, %588 : vector<2x32xf32>
    %590 = arith.mulf %581, %563 : vector<2x32xf32>
    %591 = arith.mulf %575, %583 : vector<2x32xf32>
    %592 = arith.addf %590, %591 : vector<2x32xf32>
    %593 = math.tanh %592 : vector<2x32xf32>
    %594 = arith.mulf %589, %593 : vector<2x32xf32>
    %c8_181 = arith.constant 8 : index
    %c0_182 = arith.constant 0 : index
    %595 = vector.load %arg25[%c8_181, %c0_182] : memref<22x32xf32, #tpu.memory_space<vmem>>, vector<2x32xf32>
    tpu.vector_store %arg25[%c8_181, %c0_182], %594 {strides = array<i32>} : memref<22x32xf32, #tpu.memory_space<vmem>>, vector<2x32xf32>,
    %596 = vector.extract_strided_slice %446 {offsets = [10, 0], sizes = [2, 128], strides = [1, 1]} : vector<22x128xf32> to vector<2x128xf32>
    %cst_183 = arith.constant dense<0.000000e+00> : vector<2x128xf32>
    %597 = tpu.matmul %594, %440, %cst_183 {dimension_numbers = #tpu.dot_dimension_numbers<[1], [0], [0], [1], [0, 0, 1, 1], [], []>} : vector<2x32xf32>, vector<32x128xf32>, vector<2x128xf32> -> vector<2x128xf32>
    %598 = arith.addf %596, %597 : vector<2x128xf32>
    %599 = vector.extract_strided_slice %598 {offsets = [0, 0], sizes = [2, 32], strides = [1, 1]} : vector<2x128xf32> to vector<2x32xf32>
    %600 = arith.negf %599 : vector<2x32xf32>
    %601 = math.exp %600 : vector<2x32xf32>
    %cst_184 = arith.constant 1.000000e+00 : f32
    %602 = vector.broadcast %cst_184 : f32 to vector<2x32xf32>
    %603 = arith.addf %602, %601 : vector<2x32xf32>
    %604 = arith.divf %602, %603 : vector<2x32xf32>
    %605 = vector.extract_strided_slice %598 {offsets = [0, 32], sizes = [2, 32], strides = [1, 1]} : vector<2x128xf32> to vector<2x32xf32>
    %606 = arith.negf %605 : vector<2x32xf32>
    %607 = math.exp %606 : vector<2x32xf32>
    %cst_185 = arith.constant 1.000000e+00 : f32
    %608 = vector.broadcast %cst_185 : f32 to vector<2x32xf32>
    %609 = arith.addf %608, %607 : vector<2x32xf32>
    %610 = arith.divf %608, %609 : vector<2x32xf32>
    %611 = vector.extract_strided_slice %598 {offsets = [0, 64], sizes = [2, 32], strides = [1, 1]} : vector<2x128xf32> to vector<2x32xf32>
    %612 = math.tanh %611 : vector<2x32xf32>
    %613 = vector.extract_strided_slice %598 {offsets = [0, 96], sizes = [2, 32], strides = [1, 1]} : vector<2x128xf32> to vector<2x32xf32>
    %614 = arith.negf %613 : vector<2x32xf32>
    %615 = math.exp %614 : vector<2x32xf32>
    %cst_186 = arith.constant 1.000000e+00 : f32
    %616 = vector.broadcast %cst_186 : f32 to vector<2x32xf32>
    %617 = arith.addf %616, %615 : vector<2x32xf32>
    %618 = arith.divf %616, %617 : vector<2x32xf32>
    %619 = arith.mulf %610, %592 : vector<2x32xf32>
    %620 = arith.mulf %604, %612 : vector<2x32xf32>
    %621 = arith.addf %619, %620 : vector<2x32xf32>
    %622 = math.tanh %621 : vector<2x32xf32>
    %623 = arith.mulf %618, %622 : vector<2x32xf32>
    %c10_187 = arith.constant 10 : index
    %c0_188 = arith.constant 0 : index
    %624 = vector.load %arg25[%c10_187, %c0_188] : memref<22x32xf32, #tpu.memory_space<vmem>>, vector<2x32xf32>
    tpu.vector_store %arg25[%c10_187, %c0_188], %623 {strides = array<i32>} : memref<22x32xf32, #tpu.memory_space<vmem>>, vector<2x32xf32>,
    %625 = vector.extract_strided_slice %446 {offsets = [12, 0], sizes = [2, 128], strides = [1, 1]} : vector<22x128xf32> to vector<2x128xf32>
    %cst_189 = arith.constant dense<0.000000e+00> : vector<2x128xf32>
    %626 = tpu.matmul %623, %440, %cst_189 {dimension_numbers = #tpu.dot_dimension_numbers<[1], [0], [0], [1], [0, 0, 1, 1], [], []>} : vector<2x32xf32>, vector<32x128xf32>, vector<2x128xf32> -> vector<2x128xf32>
    %627 = arith.addf %625, %626 : vector<2x128xf32>
    %628 = vector.extract_strided_slice %627 {offsets = [0, 0], sizes = [2, 32], strides = [1, 1]} : vector<2x128xf32> to vector<2x32xf32>
    %629 = arith.negf %628 : vector<2x32xf32>
    %630 = math.exp %629 : vector<2x32xf32>
    %cst_190 = arith.constant 1.000000e+00 : f32
    %631 = vector.broadcast %cst_190 : f32 to vector<2x32xf32>
    %632 = arith.addf %631, %630 : vector<2x32xf32>
    %633 = arith.divf %631, %632 : vector<2x32xf32>
    %634 = vector.extract_strided_slice %627 {offsets = [0, 32], sizes = [2, 32], strides = [1, 1]} : vector<2x128xf32> to vector<2x32xf32>
    %635 = arith.negf %634 : vector<2x32xf32>
    %636 = math.exp %635 : vector<2x32xf32>
    %cst_191 = arith.constant 1.000000e+00 : f32
    %637 = vector.broadcast %cst_191 : f32 to vector<2x32xf32>
    %638 = arith.addf %637, %636 : vector<2x32xf32>
    %639 = arith.divf %637, %638 : vector<2x32xf32>
    %640 = vector.extract_strided_slice %627 {offsets = [0, 64], sizes = [2, 32], strides = [1, 1]} : vector<2x128xf32> to vector<2x32xf32>
    %641 = math.tanh %640 : vector<2x32xf32>
    %642 = vector.extract_strided_slice %627 {offsets = [0, 96], sizes = [2, 32], strides = [1, 1]} : vector<2x128xf32> to vector<2x32xf32>
    %643 = arith.negf %642 : vector<2x32xf32>
    %644 = math.exp %643 : vector<2x32xf32>
    %cst_192 = arith.constant 1.000000e+00 : f32
    %645 = vector.broadcast %cst_192 : f32 to vector<2x32xf32>
    %646 = arith.addf %645, %644 : vector<2x32xf32>
    %647 = arith.divf %645, %646 : vector<2x32xf32>
    %648 = arith.mulf %639, %621 : vector<2x32xf32>
    %649 = arith.mulf %633, %641 : vector<2x32xf32>
    %650 = arith.addf %648, %649 : vector<2x32xf32>
    %651 = math.tanh %650 : vector<2x32xf32>
    %652 = arith.mulf %647, %651 : vector<2x32xf32>
    %c12_193 = arith.constant 12 : index
    %c0_194 = arith.constant 0 : index
    %653 = vector.load %arg25[%c12_193, %c0_194] : memref<22x32xf32, #tpu.memory_space<vmem>>, vector<2x32xf32>
    tpu.vector_store %arg25[%c12_193, %c0_194], %652 {strides = array<i32>} : memref<22x32xf32, #tpu.memory_space<vmem>>, vector<2x32xf32>,
    %654 = vector.extract_strided_slice %446 {offsets = [14, 0], sizes = [2, 128], strides = [1, 1]} : vector<22x128xf32> to vector<2x128xf32>
    %cst_195 = arith.constant dense<0.000000e+00> : vector<2x128xf32>
    %655 = tpu.matmul %652, %440, %cst_195 {dimension_numbers = #tpu.dot_dimension_numbers<[1], [0], [0], [1], [0, 0, 1, 1], [], []>} : vector<2x32xf32>, vector<32x128xf32>, vector<2x128xf32> -> vector<2x128xf32>
    %656 = arith.addf %654, %655 : vector<2x128xf32>
    %657 = vector.extract_strided_slice %656 {offsets = [0, 0], sizes = [2, 32], strides = [1, 1]} : vector<2x128xf32> to vector<2x32xf32>
    %658 = arith.negf %657 : vector<2x32xf32>
    %659 = math.exp %658 : vector<2x32xf32>
    %cst_196 = arith.constant 1.000000e+00 : f32
    %660 = vector.broadcast %cst_196 : f32 to vector<2x32xf32>
    %661 = arith.addf %660, %659 : vector<2x32xf32>
    %662 = arith.divf %660, %661 : vector<2x32xf32>
    %663 = vector.extract_strided_slice %656 {offsets = [0, 32], sizes = [2, 32], strides = [1, 1]} : vector<2x128xf32> to vector<2x32xf32>
    %664 = arith.negf %663 : vector<2x32xf32>
    %665 = math.exp %664 : vector<2x32xf32>
    %cst_197 = arith.constant 1.000000e+00 : f32
    %666 = vector.broadcast %cst_197 : f32 to vector<2x32xf32>
    %667 = arith.addf %666, %665 : vector<2x32xf32>
    %668 = arith.divf %666, %667 : vector<2x32xf32>
    %669 = vector.extract_strided_slice %656 {offsets = [0, 64], sizes = [2, 32], strides = [1, 1]} : vector<2x128xf32> to vector<2x32xf32>
    %670 = math.tanh %669 : vector<2x32xf32>
    %671 = vector.extract_strided_slice %656 {offsets = [0, 96], sizes = [2, 32], strides = [1, 1]} : vector<2x128xf32> to vector<2x32xf32>
    %672 = arith.negf %671 : vector<2x32xf32>
    %673 = math.exp %672 : vector<2x32xf32>
    %cst_198 = arith.constant 1.000000e+00 : f32
    %674 = vector.broadcast %cst_198 : f32 to vector<2x32xf32>
    %675 = arith.addf %674, %673 : vector<2x32xf32>
    %676 = arith.divf %674, %675 : vector<2x32xf32>
    %677 = arith.mulf %668, %650 : vector<2x32xf32>
    %678 = arith.mulf %662, %670 : vector<2x32xf32>
    %679 = arith.addf %677, %678 : vector<2x32xf32>
    %680 = math.tanh %679 : vector<2x32xf32>
    %681 = arith.mulf %676, %680 : vector<2x32xf32>
    %c14_199 = arith.constant 14 : index
    %c0_200 = arith.constant 0 : index
    %682 = vector.load %arg25[%c14_199, %c0_200] : memref<22x32xf32, #tpu.memory_space<vmem>>, vector<2x32xf32>
    tpu.vector_store %arg25[%c14_199, %c0_200], %681 {strides = array<i32>} : memref<22x32xf32, #tpu.memory_space<vmem>>, vector<2x32xf32>,
    %683 = vector.extract_strided_slice %446 {offsets = [16, 0], sizes = [2, 128], strides = [1, 1]} : vector<22x128xf32> to vector<2x128xf32>
    %cst_201 = arith.constant dense<0.000000e+00> : vector<2x128xf32>
    %684 = tpu.matmul %681, %440, %cst_201 {dimension_numbers = #tpu.dot_dimension_numbers<[1], [0], [0], [1], [0, 0, 1, 1], [], []>} : vector<2x32xf32>, vector<32x128xf32>, vector<2x128xf32> -> vector<2x128xf32>
    %685 = arith.addf %683, %684 : vector<2x128xf32>
    %686 = vector.extract_strided_slice %685 {offsets = [0, 0], sizes = [2, 32], strides = [1, 1]} : vector<2x128xf32> to vector<2x32xf32>
    %687 = arith.negf %686 : vector<2x32xf32>
    %688 = math.exp %687 : vector<2x32xf32>
    %cst_202 = arith.constant 1.000000e+00 : f32
    %689 = vector.broadcast %cst_202 : f32 to vector<2x32xf32>
    %690 = arith.addf %689, %688 : vector<2x32xf32>
    %691 = arith.divf %689, %690 : vector<2x32xf32>
    %692 = vector.extract_strided_slice %685 {offsets = [0, 32], sizes = [2, 32], strides = [1, 1]} : vector<2x128xf32> to vector<2x32xf32>
    %693 = arith.negf %692 : vector<2x32xf32>
    %694 = math.exp %693 : vector<2x32xf32>
    %cst_203 = arith.constant 1.000000e+00 : f32
    %695 = vector.broadcast %cst_203 : f32 to vector<2x32xf32>
    %696 = arith.addf %695, %694 : vector<2x32xf32>
    %697 = arith.divf %695, %696 : vector<2x32xf32>
    %698 = vector.extract_strided_slice %685 {offsets = [0, 64], sizes = [2, 32], strides = [1, 1]} : vector<2x128xf32> to vector<2x32xf32>
    %699 = math.tanh %698 : vector<2x32xf32>
    %700 = vector.extract_strided_slice %685 {offsets = [0, 96], sizes = [2, 32], strides = [1, 1]} : vector<2x128xf32> to vector<2x32xf32>
    %701 = arith.negf %700 : vector<2x32xf32>
    %702 = math.exp %701 : vector<2x32xf32>
    %cst_204 = arith.constant 1.000000e+00 : f32
    %703 = vector.broadcast %cst_204 : f32 to vector<2x32xf32>
    %704 = arith.addf %703, %702 : vector<2x32xf32>
    %705 = arith.divf %703, %704 : vector<2x32xf32>
    %706 = arith.mulf %697, %679 : vector<2x32xf32>
    %707 = arith.mulf %691, %699 : vector<2x32xf32>
    %708 = arith.addf %706, %707 : vector<2x32xf32>
    %709 = math.tanh %708 : vector<2x32xf32>
    %710 = arith.mulf %705, %709 : vector<2x32xf32>
    %c16_205 = arith.constant 16 : index
    %c0_206 = arith.constant 0 : index
    %711 = vector.load %arg25[%c16_205, %c0_206] : memref<22x32xf32, #tpu.memory_space<vmem>>, vector<2x32xf32>
    tpu.vector_store %arg25[%c16_205, %c0_206], %710 {strides = array<i32>} : memref<22x32xf32, #tpu.memory_space<vmem>>, vector<2x32xf32>,
    %712 = vector.extract_strided_slice %446 {offsets = [18, 0], sizes = [2, 128], strides = [1, 1]} : vector<22x128xf32> to vector<2x128xf32>
    %cst_207 = arith.constant dense<0.000000e+00> : vector<2x128xf32>
    %713 = tpu.matmul %710, %440, %cst_207 {dimension_numbers = #tpu.dot_dimension_numbers<[1], [0], [0], [1], [0, 0, 1, 1], [], []>} : vector<2x32xf32>, vector<32x128xf32>, vector<2x128xf32> -> vector<2x128xf32>
    %714 = arith.addf %712, %713 : vector<2x128xf32>
    %715 = vector.extract_strided_slice %714 {offsets = [0, 0], sizes = [2, 32], strides = [1, 1]} : vector<2x128xf32> to vector<2x32xf32>
    %716 = arith.negf %715 : vector<2x32xf32>
    %717 = math.exp %716 : vector<2x32xf32>
    %cst_208 = arith.constant 1.000000e+00 : f32
    %718 = vector.broadcast %cst_208 : f32 to vector<2x32xf32>
    %719 = arith.addf %718, %717 : vector<2x32xf32>
    %720 = arith.divf %718, %719 : vector<2x32xf32>
    %721 = vector.extract_strided_slice %714 {offsets = [0, 32], sizes = [2, 32], strides = [1, 1]} : vector<2x128xf32> to vector<2x32xf32>
    %722 = arith.negf %721 : vector<2x32xf32>
    %723 = math.exp %722 : vector<2x32xf32>
    %cst_209 = arith.constant 1.000000e+00 : f32
    %724 = vector.broadcast %cst_209 : f32 to vector<2x32xf32>
    %725 = arith.addf %724, %723 : vector<2x32xf32>
    %726 = arith.divf %724, %725 : vector<2x32xf32>
    %727 = vector.extract_strided_slice %714 {offsets = [0, 64], sizes = [2, 32], strides = [1, 1]} : vector<2x128xf32> to vector<2x32xf32>
    %728 = math.tanh %727 : vector<2x32xf32>
    %729 = vector.extract_strided_slice %714 {offsets = [0, 96], sizes = [2, 32], strides = [1, 1]} : vector<2x128xf32> to vector<2x32xf32>
    %730 = arith.negf %729 : vector<2x32xf32>
    %731 = math.exp %730 : vector<2x32xf32>
    %cst_210 = arith.constant 1.000000e+00 : f32
    %732 = vector.broadcast %cst_210 : f32 to vector<2x32xf32>
    %733 = arith.addf %732, %731 : vector<2x32xf32>
    %734 = arith.divf %732, %733 : vector<2x32xf32>
    %735 = arith.mulf %726, %708 : vector<2x32xf32>
    %736 = arith.mulf %720, %728 : vector<2x32xf32>
    %737 = arith.addf %735, %736 : vector<2x32xf32>
    %738 = math.tanh %737 : vector<2x32xf32>
    %739 = arith.mulf %734, %738 : vector<2x32xf32>
    %c18_211 = arith.constant 18 : index
    %c0_212 = arith.constant 0 : index
    %740 = vector.load %arg25[%c18_211, %c0_212] : memref<22x32xf32, #tpu.memory_space<vmem>>, vector<2x32xf32>
    tpu.vector_store %arg25[%c18_211, %c0_212], %739 {strides = array<i32>} : memref<22x32xf32, #tpu.memory_space<vmem>>, vector<2x32xf32>,
    %741 = vector.extract_strided_slice %446 {offsets = [20, 0], sizes = [2, 128], strides = [1, 1]} : vector<22x128xf32> to vector<2x128xf32>
    %cst_213 = arith.constant dense<0.000000e+00> : vector<2x128xf32>
    %742 = tpu.matmul %739, %440, %cst_213 {dimension_numbers = #tpu.dot_dimension_numbers<[1], [0], [0], [1], [0, 0, 1, 1], [], []>} : vector<2x32xf32>, vector<32x128xf32>, vector<2x128xf32> -> vector<2x128xf32>
    %743 = arith.addf %741, %742 : vector<2x128xf32>
    %744 = vector.extract_strided_slice %743 {offsets = [0, 0], sizes = [2, 32], strides = [1, 1]} : vector<2x128xf32> to vector<2x32xf32>
    %745 = arith.negf %744 : vector<2x32xf32>
    %746 = math.exp %745 : vector<2x32xf32>
    %cst_214 = arith.constant 1.000000e+00 : f32
    %747 = vector.broadcast %cst_214 : f32 to vector<2x32xf32>
    %748 = arith.addf %747, %746 : vector<2x32xf32>
    %749 = arith.divf %747, %748 : vector<2x32xf32>
    %750 = vector.extract_strided_slice %743 {offsets = [0, 32], sizes = [2, 32], strides = [1, 1]} : vector<2x128xf32> to vector<2x32xf32>
    %751 = arith.negf %750 : vector<2x32xf32>
    %752 = math.exp %751 : vector<2x32xf32>
    %cst_215 = arith.constant 1.000000e+00 : f32
    %753 = vector.broadcast %cst_215 : f32 to vector<2x32xf32>
    %754 = arith.addf %753, %752 : vector<2x32xf32>
    %755 = arith.divf %753, %754 : vector<2x32xf32>
    %756 = vector.extract_strided_slice %743 {offsets = [0, 64], sizes = [2, 32], strides = [1, 1]} : vector<2x128xf32> to vector<2x32xf32>
    %757 = math.tanh %756 : vector<2x32xf32>
    %758 = vector.extract_strided_slice %743 {offsets = [0, 96], sizes = [2, 32], strides = [1, 1]} : vector<2x128xf32> to vector<2x32xf32>
    %759 = arith.negf %758 : vector<2x32xf32>
    %760 = math.exp %759 : vector<2x32xf32>
    %cst_216 = arith.constant 1.000000e+00 : f32
    %761 = vector.broadcast %cst_216 : f32 to vector<2x32xf32>
    %762 = arith.addf %761, %760 : vector<2x32xf32>
    %763 = arith.divf %761, %762 : vector<2x32xf32>
    %764 = arith.mulf %755, %737 : vector<2x32xf32>
    %765 = arith.mulf %749, %757 : vector<2x32xf32>
    %766 = arith.addf %764, %765 : vector<2x32xf32>
    %767 = math.tanh %766 : vector<2x32xf32>
    %768 = arith.mulf %763, %767 : vector<2x32xf32>
    %c20_217 = arith.constant 20 : index
    %c0_218 = arith.constant 0 : index
    %769 = vector.load %arg25[%c20_217, %c0_218] : memref<22x32xf32, #tpu.memory_space<vmem>>, vector<2x32xf32>
    tpu.vector_store %arg25[%c20_217, %c0_218], %768 {strides = array<i32>} : memref<22x32xf32, #tpu.memory_space<vmem>>, vector<2x32xf32>,
    %c1_219 = arith.constant 1 : index
    %c0_220 = arith.constant 0 : index
    %c0_221 = arith.constant 0 : index
    %770 = vector.load %arg22[%c1_219, %c0_220, %c0_221] : memref<2x2x32xf32, #tpu.memory_space<vmem>>, vector<1x2x32xf32>
    %771 = vector.shape_cast %770 : vector<1x2x32xf32> to vector<2x32xf32>
    %772 = vector.shape_cast %768 : vector<2x32xf32> to vector<1x2x32xf32>
    tpu.vector_store %arg22[%c1_219, %c0_220, %c0_221], %772 {strides = array<i32>} : memref<2x2x32xf32, #tpu.memory_space<vmem>>, vector<1x2x32xf32>,
    %c1_222 = arith.constant 1 : index
    %c0_223 = arith.constant 0 : index
    %c0_224 = arith.constant 0 : index
    %773 = vector.load %arg23[%c1_222, %c0_223, %c0_224] : memref<2x2x32xf32, #tpu.memory_space<vmem>>, vector<1x2x32xf32>
    %774 = vector.shape_cast %773 : vector<1x2x32xf32> to vector<2x32xf32>
    %775 = vector.shape_cast %766 : vector<2x32xf32> to vector<1x2x32xf32>
    tpu.vector_store %arg23[%c1_222, %c0_223, %c0_224], %775 {strides = array<i32>} : memref<2x2x32xf32, #tpu.memory_space<vmem>>, vector<1x2x32xf32>,
    %c0_225 = arith.constant 0 : index
    %c0_226 = arith.constant 0 : index
    %776 = vector.load %arg25[%c0_225, %c0_226] : memref<22x32xf32, #tpu.memory_space<vmem>>, vector<22x32xf32>
    %c0_227 = arith.constant 0 : index
    %c0_228 = arith.constant 0 : index
    %777 = vector.load %arg15[%c0_227, %c0_228] : memref<1x32xf32, #tpu.memory_space<vmem>>, vector<1x32xf32>
    %c0_229 = arith.constant 0 : index
    %c0_230 = arith.constant 0 : index
    %778 = vector.load %arg16[%c0_229, %c0_230] : memref<1x32xf32, #tpu.memory_space<vmem>>, vector<1x32xf32>
    %cst_231 = arith.constant dense<0.000000e+00> : vector<22xf32>
    %779 = vector.multi_reduction <add>, %776, %cst_231 [1] : vector<22x32xf32> to vector<22xf32>
    %780 = vector.shape_cast %779 : vector<22xf32> to vector<22x1xf32>
    %cst_232 = arith.constant 3.200000e+01 : f32
    %781 = vector.broadcast %cst_232 : f32 to vector<22x1xf32>
    %782 = arith.divf %780, %781 : vector<22x1xf32>
    %783 = vector.broadcast %782 : vector<22x1xf32> to vector<22x32xf32>
    %784 = arith.subf %776, %783 : vector<22x32xf32>
    %785 = arith.mulf %784, %784 : vector<22x32xf32>
    %cst_233 = arith.constant dense<0.000000e+00> : vector<22xf32>
    %786 = vector.multi_reduction <add>, %785, %cst_233 [1] : vector<22x32xf32> to vector<22xf32>
    %787 = vector.shape_cast %786 : vector<22xf32> to vector<22x1xf32>
    %cst_234 = arith.constant 3.200000e+01 : f32
    %788 = vector.broadcast %cst_234 : f32 to vector<22x1xf32>
    %789 = arith.divf %787, %788 : vector<22x1xf32>
    %790 = vector.broadcast %782 : vector<22x1xf32> to vector<22x32xf32>
    %791 = arith.subf %776, %790 : vector<22x32xf32>
    %cst_235 = arith.constant 9.99999974E-6 : f32
    %792 = vector.broadcast %cst_235 : f32 to vector<22x1xf32>
    %793 = arith.addf %789, %792 : vector<22x1xf32>
    %794 = math.rsqrt %793 : vector<22x1xf32>
    %795 = vector.broadcast %794 : vector<22x1xf32> to vector<22x32xf32>
    %796 = arith.mulf %791, %795 : vector<22x32xf32>
    %797 = vector.broadcast %777 : vector<1x32xf32> to vector<22x32xf32>
    %798 = arith.mulf %796, %797 : vector<22x32xf32>
    %799 = vector.broadcast %778 : vector<1x32xf32> to vector<22x32xf32>
    %800 = arith.addf %798, %799 : vector<22x32xf32>
    %cst_236 = arith.constant 5.000000e-01 : f32
    %801 = vector.broadcast %cst_236 : f32 to vector<22x32xf32>
    %802 = arith.mulf %801, %800 : vector<22x32xf32>
    %cst_237 = arith.constant 0.707106769 : f32
    %803 = vector.broadcast %cst_237 : f32 to vector<22x32xf32>
    %804 = arith.mulf %800, %803 : vector<22x32xf32>
    %805 = math.erf %804 : vector<22x32xf32>
    %cst_238 = arith.constant 1.000000e+00 : f32
    %806 = vector.broadcast %cst_238 : f32 to vector<22x32xf32>
    %807 = arith.addf %806, %805 : vector<22x32xf32>
    %808 = arith.mulf %802, %807 : vector<22x32xf32>
    %c0_239 = arith.constant 0 : index
    %c0_240 = arith.constant 0 : index
    %809 = vector.load %arg17[%c0_239, %c0_240] : memref<32x10xf32, #tpu.memory_space<vmem>>, vector<32x10xf32>
    %cst_241 = arith.constant dense<0.000000e+00> : vector<22x10xf32>
    %810 = tpu.matmul %808, %809, %cst_241 {dimension_numbers = #tpu.dot_dimension_numbers<[1], [0], [0], [1], [0, 0, 1, 1], [], []>} : vector<22x32xf32>, vector<32x10xf32>, vector<22x10xf32> -> vector<22x10xf32>
    %c0_242 = arith.constant 0 : index
    %c0_243 = arith.constant 0 : index
    %811 = vector.load %arg18[%c0_242, %c0_243] : memref<1x10xf32, #tpu.memory_space<vmem>>, vector<1x10xf32>
    %812 = vector.broadcast %811 : vector<1x10xf32> to vector<22x10xf32>
    %813 = arith.addf %810, %812 : vector<22x10xf32>
    %c0_244 = arith.constant 0 : index
    %c0_245 = arith.constant 0 : index
    %814 = vector.load %arg21[%c0_244, %c0_245] : memref<22x10xf32, #tpu.memory_space<vmem>>, vector<22x10xf32>
    tpu.vector_store %arg21[%c0_244, %c0_245], %813 {strides = array<i32>} : memref<22x10xf32, #tpu.memory_space<vmem>>, vector<22x10xf32>,
    return
  }
}

</mosaic_0001>

<bundles_post_ra>
// kernel: _forward_impl.1
= control target key start
LH: loop header
LB: loop body
LE: loop exit
PB: predicated region body
PF: predicated region fallthrough
CT: control target
= control target key end

     0   :  { %s6701_s0 = inlined_call_operand.vmem [shape: f32[40,16], index: 0, kind: input, shape index: {}]   ;;  %s6702_s1 = inlined_call_operand.vmem [shape: f32[10,16,16], index: 1, kind: input, shape index: {}]   ;;  %s6703_s2 = inlined_call_operand.vmem [shape: f32[1,16], index: 2, kind: input, shape index: {}]   ;;  %s6704_s3 = inlined_call_operand.vmem [shape: f32[1,16], index: 3, kind: input, shape index: {}]   ;;  %s6705_s4 = inlined_call_operand.vmem [shape: f32[1,16], index: 4, kind: input, shape index: {}]   ;;  %s6706_s5 = inlined_call_operand.hbm [shape: f32[16,128], index: 5, kind: input, shape index: {}]   ;;  %s6707_s6 = inlined_call_operand.hbm [shape: f32[1,128], index: 6, kind: input, shape index: {}]   ;;  %s6708_s7 = inlined_call_operand.hbm [shape: f32[128,128], index: 7, kind: input, shape index: {}]   ;;  %s6709_s8 = inlined_call_operand.hbm [shape: f32[1,128], index: 8, kind: input, shape index: {}]   ;;  %s6710_s9 = inlined_call_operand.hbm [shape: f32[128,128], index: 9, kind: input, shape index: {}]   ;;  %s6711_s10 = inlined_call_operand.hbm [shape: f32[32,128], index: 10, kind: input, shape index: {}]   ;;  %s6712_s11 = inlined_call_operand.hbm [shape: f32[1,128], index: 11, kind: input, shape index: {}]   ;;  %s6713_s12 = inlined_call_operand.hbm [shape: f32[32,128], index: 12, kind: input, shape index: {}]   ;;  %s6714_s13 = inlined_call_operand.hbm [shape: f32[32,128], index: 13, kind: input, shape index: {}]   ;;  %s6715_s14 = inlined_call_operand.vmem [shape: f32[1,128], index: 14, kind: input, shape index: {}]   ;;  %s6716_s15 = inlined_call_operand.vmem [shape: f32[1,32], index: 15, kind: input, shape index: {}]   ;;  %s6717_s16 = inlined_call_operand.vmem [shape: f32[1,32], index: 16, kind: input, shape index: {}]   ;;  %s6718_s17 = inlined_call_operand.vmem [shape: f32[32,10], index: 17, kind: input, shape index: {}]   ;;  %s6719_s18 = inlined_call_operand.hbm [shape: f32[1,10], index: 18, kind: input, shape index: {}]   ;;  %s6720_s19 = inlined_call_operand.vmem [shape: f32[2,2,32], index: 19, kind: input, shape index: {}]   ;;  %s6721_s20 = inlined_call_operand.vmem [shape: f32[2,2,32], index: 20, kind: input, shape index: {}]   ;;  %s6722_s21 = inlined_call_operand.vmem [shape: f32[22,10], index: 21, kind: output, shape index: {0}]   ;;  %s6723_s22 = inlined_call_operand.hbm [shape: f32[2,2,32], index: 22, kind: output, shape index: {1}]   ;;  %s6724_s23 = inlined_call_operand.hbm [shape: f32[2,2,32], index: 23, kind: output, shape index: {2}]  }
   0x1   :  { %6727 = sst [smem:[#allocation32_spill]] %s6701_s0 }
   0x2   :  { %6728 = sst [smem:[#allocation33_spill]] %s6702_s1 }
   0x3   :  { %6729 = sst [smem:[#allocation34_spill]] %s6703_s2 }
   0x4   :  { %6730 = sst [smem:[#allocation35_spill]] %s6704_s3 }
   0x5   :  { %6731 = sst [smem:[#allocation36_spill]] %s6705_s4 }
   0x6   :  { %6732 = sst [smem:[#allocation37_spill]] %s6706_s5 }
   0x7   :  { %6733 = sst [smem:[#allocation38_spill]] %s6707_s6 }
   0x8   :  { %6734 = sst [smem:[#allocation39_spill]] %s6708_s7 }
   0x9   :  { %29 = vsyncpa [#allocation5], 0 }
   0xa   :  { %30 = vsyncpa [#allocation8], 0 }
   0xb   :  { %31 = vsyncpa [#allocation11], 0 }
   0xc   :  { %32 = vsyncpa [#allocation14], 0 }
   0xd   :  { %33 = vsyncpa [#allocation17], 0 }
   0xe   :  { %34 = vsyncpa [#allocation20], 0 }
   0xf   :  { %35 = vsyncpa [#allocation6], 0 }
  0x10   :  { %36 = vsyncpa [#allocation23], 0  ;;  %s5623_s4 = smov [#allocation7]   ;;  %s5624_s24 = smov [#allocation10]  }
  0x11   :  { %s65_s30 = sshll.u32 %s5623_s4, 4  ;;  %s87_s25 = sshll.u32 %s5624_s24, 4  ;;  %s66_s30 = int_to_ptr.vmem [resolvable:$true] %s65_s30  ;;  %s88_s25 = int_to_ptr.vmem [resolvable:$true] %s87_s25 }
  0x12   :  { %s5375_s5 = scalar_lea.vmem %s66_s30, 16  ;;  %s5379_s1 = scalar_lea.vmem %s66_s30, 32 }
  0x13   :  { %p5376_p0 = scmp.ne.s32.totalorder %s66_s30, %s5375_s5  ;;  %p5380_p1 = scmp.lt.s32.totalorder %s66_s30, %s66_s30 }
  0x14   :  { %p5381_p2 = scmp.lt.s32.totalorder %s5379_s1, %s5375_s5 }
  0x16   :  { %p5382_p3 = por %p5381_p2, %p5380_p1 }
  0x18   :  { %p5383_p4 = pnand %p5382_p3, %p5376_p0 }
  0x1a   :  { %5386 = shalt.err (!%p5383_p4)
}
  0x1b   :  { %s6735_s6 = sld [smem:[#allocation38_spill]]  ;;  %s5395_s27 = scalar_lea.vmem %s88_s25, 16 }
  0x1c   :  { %p5396_p5 = scmp.ne.s32.totalorder %s88_s25, %s5395_s27  ;;  %s5399_s7 = scalar_lea.vmem %s88_s25, 32 }
  0x1d   :  { %p5400_p6 = scmp.lt.s32.totalorder %s88_s25, %s88_s25  ;;  %p5401_p7 = scmp.lt.s32.totalorder %s5399_s7, %s5395_s27 }
  0x1f   :  { %p5402_p8 = por %p5401_p7, %p5400_p6 }
  0x21   :  { %68 = dma.hbm_to_vmem [thread:$0]  %s6735_s6, 16, %s66_s30, [#allocation8]  }
  0x22   :  { %p5403_p9 = pnand %p5402_p8, %p5396_p5 }
  0x24   :  { %5406 = shalt.err (!%p5403_p9)
}
  0x25   :  { %90 = dma.hbm_to_vmem [thread:$0]  %s6709_s8, 16, %s88_s25, [#allocation11]  }
  0x26   :  { %s5625_s3 = smov [#allocation13]   ;;  %s5626_s4 = smov [#allocation16]  }
  0x27   :  { %s108_s0 = sshll.u32 %s5625_s3, 4  ;;  %s130_s24 = sshll.u32 %s5626_s4, 4  ;;  %s109_s0 = int_to_ptr.vmem [resolvable:$true] %s108_s0  ;;  %s131_s24 = int_to_ptr.vmem [resolvable:$true] %s130_s24 }
  0x28   :  { %s5415_s5 = scalar_lea.vmem %s109_s0, 512  ;;  %p5420_p11 = scmp.lt.s32.totalorder %s109_s0, %s109_s0 }
  0x29   :  { %p5416_p10 = scmp.ne.s32.totalorder %s109_s0, %s5415_s5  ;;  %p5421_p12 = scmp.lt.s32.totalorder %s5415_s5, %s5415_s5 }
  0x2b   :  { %p5422_p13 = por %p5421_p12, %p5420_p11 }
  0x2d   :  { %p5423_p0 = pnand %p5422_p13, %p5416_p10 }
  0x2f   :  { %5426 = shalt.err (!%p5423_p0)
}
  0x30   :  { %s5627_s30 = smov 128   ;;  %s5628_s1 = smov 8  }
  0x31   :  { %114 = dma.hbm_to_vmem [thread:$0]  %s6711_s10, 512, %s109_s0, [#allocation14], %s5627_s30, %s5627_s30, %s5628_s1  }
  0x32   :  { %s5435_s25 = scalar_lea.vmem %s131_s24, 512  ;;  %p5440_p2 = scmp.lt.s32.totalorder %s131_s24, %s131_s24 }
  0x33   :  { %p5436_p1 = scmp.ne.s32.totalorder %s131_s24, %s5435_s25  ;;  %p5441_p3 = scmp.lt.s32.totalorder %s5435_s25, %s5435_s25 }
  0x35   :  { %p5442_p4 = por %p5441_p3, %p5440_p2 }
  0x37   :  { %p5443_p5 = pnand %p5442_p4, %p5436_p1 }
  0x39   :  { %5446 = shalt.err (!%p5443_p5)
}
  0x3a   :  { %136 = dma.hbm_to_vmem [thread:$0]  %s6713_s12, 512, %s131_s24, [#allocation17], %s5627_s30, %s5627_s30, %s5628_s1  }
  0x3b   :  { %s5629_s27 = smov [#allocation4]   ;;  %s5630_s28 = smov [#allocation9]  }
  0x3c   :  { %s52_s7 = sshll.u32 %s5629_s27, 4  ;;  %s74_s29 = sshll.u32 %s5630_s28, 4  ;;  %s53_s7 = int_to_ptr.vmem [resolvable:$true] %s52_s7  ;;  %s75_s29 = int_to_ptr.vmem [resolvable:$true] %s74_s29 }
  0x3d   :  { %s5455_s10 = scalar_lea.vmem %s53_s7, 256  ;;  %p5460_p7 = scmp.lt.s32.totalorder %s53_s7, %s53_s7 }
  0x3e   :  { %p5456_p6 = scmp.ne.s32.totalorder %s53_s7, %s5455_s10  ;;  %p5461_p8 = scmp.lt.s32.totalorder %s5455_s10, %s5455_s10 }
  0x40   :  { %p5462_p9 = por %p5461_p8, %p5460_p7 }
  0x42   :  { %p5463_p10 = pnand %p5462_p9, %p5456_p6 }
  0x44   :  { %5466 = shalt.err (!%p5463_p10)
}
  0x45   :  { %s6736_s4 = sld [smem:[#allocation37_spill]]  ;;  %s5475_s12 = scalar_lea.vmem %s75_s29, 2048 }
  0x46   :  { %p5476_p11 = scmp.ne.s32.totalorder %s75_s29, %s5475_s12  ;;  %p5480_p12 = scmp.lt.s32.totalorder %s75_s29, %s75_s29 }
  0x47   :  { %p5481_p13 = scmp.lt.s32.totalorder %s5475_s12, %s5475_s12 }
  0x49   :  { %p5482_p0 = por %p5481_p13, %p5480_p12 }
  0x4b   :  { %58 = dma.hbm_to_vmem [thread:$0]  %s6736_s4, 256, %s53_s7, [#allocation5], %s5627_s30, %s5627_s30, %s5628_s1  }
  0x4c   :  { %p5483_p1 = pnand %p5482_p0, %p5476_p11 }
  0x4e   :  { %5486 = shalt.err (!%p5483_p1)
}
  0x4f   :  { %s6737_s26 = sld [smem:[#allocation39_spill]]  ;;  %s5631_s8 = smov [#allocation12]  }
  0x50   :  { %s96_s25 = sshll.u32 %s5631_s8, 4  ;;  %s5632_s2 = smov [#allocation15]   ;;  %s97_s25 = int_to_ptr.vmem [resolvable:$true] %s96_s25 }
  0x51   :  { %s121_s6 = sshll.u32 %s5632_s2, 4  ;;  %s5495_s27 = scalar_lea.vmem %s97_s25, 2048  ;;  %s122_s6 = int_to_ptr.vmem [resolvable:$true] %s121_s6 }
  0x52   :  { %p5496_p2 = scmp.ne.s32.totalorder %s97_s25, %s5495_s27  ;;  %p5500_p3 = scmp.lt.s32.totalorder %s97_s25, %s97_s25 }
  0x53   :  { %p5501_p4 = scmp.lt.s32.totalorder %s5495_s27, %s5495_s27 }
  0x55   :  { %80 = dma.hbm_to_vmem [thread:$0]  %s6737_s26, 2048, %s75_s29, [#allocation8], %s5627_s30, %s5627_s30, %s5628_s1  }
  0x56   :  { %p5502_p5 = por %p5501_p4, %p5500_p3 }
  0x58   :  { %p5503_p6 = pnand %p5502_p5, %p5496_p2 }
  0x5a   :  { %5506 = shalt.err (!%p5503_p6)
}
  0x5b   :  { %102 = dma.hbm_to_vmem [thread:$0]  %s6710_s9, 2048, %s97_s25, [#allocation11], %s5627_s30, %s5627_s30, %s5628_s1  }
  0x5c   :  { %s5515_s29 = scalar_lea.vmem %s122_s6, 16  ;;  %s5519_s10 = scalar_lea.vmem %s122_s6, 32 }
  0x5d   :  { %p5516_p7 = scmp.ne.s32.totalorder %s122_s6, %s5515_s29  ;;  %p5520_p8 = scmp.lt.s32.totalorder %s122_s6, %s122_s6 }
  0x5e   :  { %p5521_p9 = scmp.lt.s32.totalorder %s5519_s10, %s5515_s29 }
  0x60   :  { %p5522_p10 = por %p5521_p9, %p5520_p8 }
  0x62   :  { %p5523_p11 = pnand %p5522_p10, %p5516_p7 }
  0x64   :  { %5526 = shalt.err (!%p5523_p11)
}
  0x65   :  { %124 = dma.hbm_to_vmem [thread:$0]  %s6712_s11, 16, %s122_s6, [#allocation14]  }
  0x66   :  { %s5633_s4 = smov [#allocation18]   ;;  %s5634_s24 = smov [#allocation19]  }
  0x67   :  { %s142_s12 = sshll.u32 %s5633_s4, 4  ;;  %s163_s5 = sshll.u32 %s5634_s24, 4  ;;  %s143_s12 = int_to_ptr.vmem [resolvable:$true] %s142_s12  ;;  %s164_s5 = int_to_ptr.vmem [resolvable:$true] %s163_s5 }
  0x68   :  { %s5535_s26 = scalar_lea.vmem %s143_s12, 512  ;;  %p5540_p13 = scmp.lt.s32.totalorder %s143_s12, %s143_s12 }
  0x69   :  { %p5536_p12 = scmp.ne.s32.totalorder %s143_s12, %s5535_s26  ;;  %p5541_p0 = scmp.lt.s32.totalorder %s5535_s26, %s5535_s26 }
  0x6b   :  { %p5542_p1 = por %p5541_p0, %p5540_p13 }
  0x6d   :  { %p5543_p2 = pnand %p5542_p1, %p5536_p12 }
  0x6f   :  { %5546 = shalt.err (!%p5543_p2)
}
  0x70   :  { %148 = dma.hbm_to_vmem [thread:$0]  %s6714_s13, 512, %s143_s12, [#allocation17], %s5627_s30, %s5627_s30, %s5628_s1  }
  0x71   :  { %s5555_s11 = scalar_lea.vmem %s164_s5, 16  ;;  %s5559_s25 = scalar_lea.vmem %s164_s5, 32 }
  0x72   :  { %p5556_p3 = scmp.ne.s32.totalorder %s164_s5, %s5555_s11  ;;  %p5560_p4 = scmp.lt.s32.totalorder %s164_s5, %s164_s5 }
  0x73   :  { %p5561_p5 = scmp.lt.s32.totalorder %s5559_s25, %s5555_s11 }
  0x75   :  { %p5562_p6 = por %p5561_p5, %p5560_p4 }
  0x77   :  { %p5563_p7 = pnand %p5562_p6, %p5556_p3 }
  0x79   :  { %5566 = shalt.err (!%p5563_p7)
}
  0x7a   :  { %166 = dma.hbm_to_vmem [thread:$0]  %s6719_s18, 16, %s164_s5, [#allocation20]  }
  0x7b   :  { %5607 = dma.done.wait [#allocation5], 256  }
  0x7c   :  { %5608 = vsyncadd [#allocation5], 4294967040 }
  0x7d   :  { %5609 = dma.done.wait [#allocation8], 2064  }
  0x7e   :  { %5610 = vsyncadd [#allocation8], 4294965232 }
  0x7f   :  { %5611 = dma.done.wait [#allocation11], 2064  }
  0x80   :  { %5612 = vsyncadd [#allocation11], 4294965232 }
  0x81   :  { %5613 = dma.done.wait [#allocation14], 528  }
  0x82   :  { %5614 = vsyncadd [#allocation14], 4294966768 }
  0x83   :  { %5615 = dma.done.wait [#allocation17], 1024  }
  0x84   :  { %5616 = vsyncadd [#allocation17], 4294966272 }
  0x85   :  { %5617 = dma.done.wait [#allocation20], 16  }
  0x86   :  { %5618 = vsyncadd [#allocation20], 4294967280  ;;  %v5635_v0 = vmov 0.0   ;;  %vm5636_vm0 = vmmov 0   ;;  %s6738_s30 = sld [smem:[#allocation33_spill]]  ;;  %vm214_vm1 = vcmask 1045504  }
  0x87   :  { %5137 = vmatprep.subr.mxu1 %v5635_v0  ;;  %4643 = vmatprep.mubr.msk.f32.mxu1 %vm5636_vm0, %v5635_v0  ;;  %s6739_s29 = sld [smem:[#allocation32_spill]]  ;;  %vm220_vm2 = vcmask 130048   ;;  %vm397_vm3 = vcmask 1043456   ;;  %vm497_vm4 = vcmask 1041408   ;;  %vm1153_vm5 = vcmask 128000   ;;  %s5637_s18 = smov 32  }
  0x88   :  { %4636 = vmatprep.subr.mxu0 %v5635_v0  ;;  %4640 = vmatprep.mubr.msk.f32.mxu0 %vm5636_vm0, %v5635_v0  ;;  %s6740_s12 = sld [smem:[#allocation34_spill]]  ;;  %vm1546_vm6 = vcmask 261120   ;;  %s5638_s1 = smov 64   ;;  %vm1653_vm7 = vcmask 254976   ;;  %vm1762_vm8 = vcmask 257026   ;;  %vm1986_vm9 = vcmask 261126  }
  0x89   :  { %s6741_s26 = sld [smem:[#allocation35_spill]]  ;;  %vm1874_vm10 = vcmask 259076   ;;  %vm4091_vm11 = vcmask 259072   ;;  %s5639_s5 = smov 96  }
  0x8a   :  { %s6742_s11 = sld [smem:[#allocation36_spill]] }
  0x8c   :  { %v4307_v1 = vld [vmem:[%s6738_s30 + $0x18] sm:$0xff]  ;;  %v4306_v2 = vld [vmem:[%s6738_s30 + $0x10] sm:$0xff]  ;;  %v207_v8 = vld [vmem:[%s6738_s30 + $0x8] sm:$0xff] }
  0x8d   :  { %v5826_v3 = vld [vmem:[%s6739_s29 + $0x8] sm:$0xff]  ;;  %5139 = vmatpush3.msra.mxu1 %v4307_v1  ;;  %v5831_v4 = vld [vmem:[%s6739_s29 + $0x10] sm:$0xff]  ;;  %4637 = vmatpush3.msra.mxu0 %v4307_v1  ;;  %v5842_v7 = vld [vmem:[%s6739_s29] sm:$0xff] }
  0x8e   :  { %v216_v5 = vrot.slane %v5826_v3, 2  ;;  %5138 = vmatprep.subr.mxu1 %v5635_v0  ;;  %v5836_v6 = vrot.slane %v5831_v4, 2  ;;  %4638 = vmatprep.subr.mxu0 %v5635_v0  ;;  %v215_v9 = vrot.slane %v5842_v7, 2  ;;  %v206_v11 = vld [vmem:[%s6738_s30] sm:$0xff]  ;;  %v4315_v13 = vld [vmem:[%s6738_s30 + $0x28] sm:$0xff]  ;;  %v398_v14 = vrot.slane %v5842_v7, 4 }
  0x8f   :  { %5140 = vmatpush3.msra.mxu1 %v4306_v2  ;;  %4639 = vmatpush3.msra.mxu0 %v4306_v2  ;;  %v399_v15 = vrot.slane %v5826_v3, 4  ;;  %v4314_v16 = vld [vmem:[%s6738_s30 + $0x20] sm:$0xff]  ;;  %v401_v18 = vrot.slane %v5831_v4, 4  ;;  %v5883_v19 = vld [vmem:[%s6739_s29 + $0x18] sm:$0xff]  ;;  %v4325_v21 = vld [vmem:[%s6738_s30 + $0x48] sm:$0xff]  ;;  %v498_v27 = vrot.slane %v5842_v7, 6 }
  0x90   :  { %v5850_v10 = vsel %vm214_vm1, %v216_v5, %v5836_v6  ;;  %4649 = vmatprep.subr.mxu1 %v5635_v0  ;;  %4662 = vmatprep.subr.mxu0 %v5635_v0  ;;  %v217_v12 = vsel %vm214_vm1, %v215_v9, %v216_v5  ;;  %v4320_v20 = vld [vmem:[%s6738_s30 + $0x38] sm:$0xff]  ;;  %v4319_v23 = vld [vmem:[%s6738_s30 + $0x30] sm:$0xff]  ;;  %v403_v24 = vrot.slane %v5883_v19, 4  ;;  %v4324_v25 = vld [vmem:[%s6738_s30 + $0x40] sm:$0xff]  ;;  %v499_v28 = vrot.slane %v5826_v3, 6 }
  0x91   :  { %4644 = vmatmul.mubr.msk.f32.vlgmr.msra.gmra.mxu1 %vm220_vm2, %v5850_v10  ;;  %4641 = vmatmul.mubr.msk.f32.vlgmr.msra.gmra.mxu0 %vm220_vm2, %v217_v12  ;;  %v400_v17 = vsel %vm397_vm3, %v398_v14, %v399_v15  ;;  %v402_v22 = vsel %vm397_vm3, %v399_v15, %v401_v18  ;;  %v501_v30 = vrot.slane %v5831_v4, 6  ;;  %v4330_v31 = vld [vmem:[%s6738_s30 + $0x58] sm:$0xff]  ;;  %v4335_v32 = vld [vmem:[%s6738_s30 + $0x68] sm:$0xff]  ;;  %v4329_v33 = vld [vmem:[%s6738_s30 + $0x50] sm:$0xff]  ;;  %v503_v35 = vrot.slane %v5883_v19, 6 }
  0x92   :  { %4650 = vmatpush3.msra.mxu1 %v207_v8  ;;  %4646 = vmatprep.mubr.msk.f32.mxu1 %vm5636_vm0, %v5635_v0  ;;  %v404_v26 = vsel %vm397_vm3, %v401_v18, %v403_v24  ;;  %v500_v29 = vsel %vm497_vm4, %v498_v27, %v499_v28  ;;  %v4334_v36 = vld [vmem:[%s6738_s30 + $0x60] sm:$0xff]  ;;  %v685_v38 = vrot.slane %v5883_v19, 2  ;;  %v4340_v40 = vld [vmem:[%s6738_s30 + $0x78] sm:$0xff]  ;;  %v4345_v41 = vld [vmem:[%s6738_s30 + $0x88] sm:$0xff] }
  0x93   :  { %4651 = vmatprep.subr.mxu1 %v5635_v0  ;;  %4663 = vmatpush3.msra.mxu0 %v4315_v13  ;;  %v502_v34 = vsel %vm497_vm4, %v499_v28, %v501_v30  ;;  %v504_v37 = vsel %vm497_vm4, %v501_v30, %v503_v35  ;;  %v205_v39 = vld [vmem:[%s6739_s29 + $0x20] sm:$0xff]  ;;  %v4339_v42 = vld [vmem:[%s6738_s30 + $0x70] sm:$0xff]  ;;  %v4350_v47 = vld [vmem:[%s6738_s30 + $0x98] sm:$0xff] }
  0x94   :  { %4652 = vmatpush3.msra.mxu1 %v206_v11  ;;  %4664 = vmatprep.subr.mxu0 %v5635_v0  ;;  %v778_v43 = vrot.slane %v205_v39, 4  ;;  %v686_v44 = vsel %vm214_vm1, %v5836_v6, %v685_v38  ;;  %v4344_v45 = vld [vmem:[%s6738_s30 + $0x80] sm:$0xff]  ;;  %v4349_v48 = vld [vmem:[%s6738_s30 + $0x90] sm:$0xff]  ;;  %v868_v49 = vrot.slane %v205_v39, 6  ;;  %v1046_v51 = vrot.slane %v205_v39, 2 }
  0x95   :  { %4647 = vmatmul.mubr.msk.f32.gmra.mxu1 %vm220_vm2, %v5836_v6  ;;  %4675 = vmatprep.subr.mxu1 %v5635_v0 }
  0x96   :  { %4653 = vmatprep.mubr.msk.f32.mxu1 %vm5636_vm0, %v5635_v0  ;;  %4665 = vmatpush3.msra.mxu0 %v4314_v16  ;;  %v779_v46 = vsel %vm397_vm3, %v403_v24, %v778_v43  ;;  %v869_v50 = vsel %vm497_vm4, %v503_v35, %v868_v49  ;;  %v1047_v52 = vsel %vm214_vm1, %v685_v38, %v1046_v51 }
  0x97   :  { %4666 = vmatprep.mubr.msk.f32.mxu0 %vm5636_vm0, %v5635_v0  ;;  %4688 = vmatprep.subr.mxu0 %v5635_v0 }
  0x98   :  { %4667 = vmatmul.mubr.msk.f32.vlgmr.msra.gmra.mxu0 %vm220_vm2, %v400_v17 }
  0x99   :  { %4654 = vmatmul.mubr.msk.f32.vlgmr.msra.gmra.mxu1 %vm220_vm2, %v5842_v7  ;;  %4669 = vmatprep.mubr.msk.f32.mxu0 %vm5636_vm0, %v5635_v0 }
  0x9a   :  { %4676 = vmatpush3.msra.mxu1 %v4320_v20  ;;  %4656 = vmatprep.mubr.msk.f32.mxu1 %vm5636_vm0, %v5635_v0 }
  0x9b   :  { %4677 = vmatprep.subr.mxu1 %v5635_v0  ;;  %4689 = vmatpush3.msra.mxu0 %v4325_v21 }
  0x9c   :  { %4670 = vmatmul.mubr.msk.f32.gmra.mxu0 %vm220_vm2, %v402_v22  ;;  %4678 = vmatpush3.msra.mxu1 %v4319_v23 }
  0x9d   :  { %4657 = vmatmul.mubr.msk.f32.gmra.mxu1 %vm220_vm2, %v5826_v3  ;;  %4672 = vmatprep.mubr.msk.f32.mxu0 %vm5636_vm0, %v5635_v0 }
  0x9e   :  { %4659 = vmatprep.mubr.msk.f32.mxu1 %vm5636_vm0, %v5635_v0  ;;  %4690 = vmatprep.subr.mxu0 %v5635_v0 }
  0x9f   :  { %4701 = vmatprep.subr.mxu1 %v5635_v0  ;;  %4691 = vmatpush3.msra.mxu0 %v4324_v25 }
  0xa0   :  { %4673 = vmatmul.mubr.msk.f32.gmra.mxu0 %vm220_vm2, %v404_v26  ;;  %4714 = vmatprep.subr.mxu0 %v5635_v0 }
  0xa1   :  { %4660 = vmatmul.mubr.msk.f32.gmra.mxu1 %vm220_vm2, %v5831_v4  ;;  %4692 = vmatprep.mubr.msk.f32.mxu0 %vm5636_vm0, %v5635_v0 }
  0xa2   :  { %4679 = vmatprep.mubr.msk.f32.mxu1 %vm5636_vm0, %v5635_v0 }
  0xa4   :  { %4693 = vmatmul.mubr.msk.f32.vlgmr.msra.gmra.mxu0 %vm220_vm2, %v5826_v3 }
  0xa5   :  { %4680 = vmatmul.mubr.msk.f32.vlgmr.msra.gmra.mxu1 %vm220_vm2, %v500_v29  ;;  %4695 = vmatprep.mubr.msk.f32.mxu0 %vm5636_vm0, %v5635_v0 }
  0xa6   :  { %4702 = vmatpush3.msra.mxu1 %v4330_v31  ;;  %4682 = vmatprep.mubr.msk.f32.mxu1 %vm5636_vm0, %v5635_v0 }
  0xa7   :  { %4703 = vmatprep.subr.mxu1 %v5635_v0  ;;  %4715 = vmatpush3.msra.mxu0 %v4335_v32 }
  0xa8   :  { %4696 = vmatmul.mubr.msk.f32.gmra.mxu0 %vm220_vm2, %v5831_v4  ;;  %4704 = vmatpush3.msra.mxu1 %v4329_v33 }
  0xa9   :  { %4683 = vmatmul.mubr.msk.f32.gmra.mxu1 %vm220_vm2, %v502_v34  ;;  %4698 = vmatprep.mubr.msk.f32.mxu0 %vm5636_vm0, %v5635_v0 }
  0xaa   :  { %4685 = vmatprep.mubr.msk.f32.mxu1 %vm5636_vm0, %v5635_v0  ;;  %4716 = vmatprep.subr.mxu0 %v5635_v0 }
  0xab   :  { %4727 = vmatprep.subr.mxu1 %v5635_v0  ;;  %4717 = vmatpush3.msra.mxu0 %v4334_v36 }
  0xac   :  { %4699 = vmatmul.mubr.msk.f32.gmra.mxu0 %vm220_vm2, %v5883_v19  ;;  %4740 = vmatprep.subr.mxu0 %v5635_v0 }
  0xad   :  { %4686 = vmatmul.mubr.msk.f32.gmra.mxu1 %vm220_vm2, %v504_v37  ;;  %4718 = vmatprep.mubr.msk.f32.mxu0 %vm5636_vm0, %v5635_v0 }
  0xae   :  { %4705 = vmatprep.mubr.msk.f32.mxu1 %vm5636_vm0, %v5635_v0 }
  0xb0   :  { %4719 = vmatmul.mubr.msk.f32.vlgmr.msra.gmra.mxu0 %vm220_vm2, %v402_v22 }
  0xb1   :  { %4706 = vmatmul.mubr.msk.f32.vlgmr.msra.gmra.mxu1 %vm220_vm2, %v5850_v10  ;;  %4721 = vmatprep.mubr.msk.f32.mxu0 %vm5636_vm0, %v5635_v0 }
  0xb2   :  { %4728 = vmatpush3.msra.mxu1 %v4340_v40  ;;  %4708 = vmatprep.mubr.msk.f32.mxu1 %vm5636_vm0, %v5635_v0 }
  0xb3   :  { %4729 = vmatprep.subr.mxu1 %v5635_v0  ;;  %4741 = vmatpush3.msra.mxu0 %v4345_v41 }
  0xb4   :  { %4722 = vmatmul.mubr.msk.f32.gmra.mxu0 %vm220_vm2, %v404_v26  ;;  %4730 = vmatpush3.msra.mxu1 %v4339_v42 }
  0xb5   :  { %4709 = vmatmul.mubr.msk.f32.gmra.mxu1 %vm220_vm2, %v686_v44  ;;  %4724 = vmatprep.mubr.msk.f32.mxu0 %vm5636_vm0, %v5635_v0 }
  0xb6   :  { %4711 = vmatprep.mubr.msk.f32.mxu1 %vm5636_vm0, %v5635_v0  ;;  %4742 = vmatprep.subr.mxu0 %v5635_v0 }
  0xb7   :  { %4753 = vmatprep.subr.mxu1 %v5635_v0  ;;  %4743 = vmatpush3.msra.mxu0 %v4344_v45 }
  0xb8   :  { %4725 = vmatmul.mubr.msk.f32.gmra.mxu0 %vm220_vm2, %v779_v46  ;;  %4766 = vmatprep.subr.mxu0 %v5635_v0 }
  0xb9   :  { %4712 = vmatmul.mubr.msk.f32.gmra.mxu1 %vm220_vm2, %v685_v38  ;;  %4744 = vmatprep.mubr.msk.f32.mxu0 %vm5636_vm0, %v5635_v0 }
  0xba   :  { %4731 = vmatprep.mubr.msk.f32.mxu1 %vm5636_vm0, %v5635_v0 }
  0xbc   :  { %4745 = vmatmul.mubr.msk.f32.vlgmr.msra.gmra.mxu0 %vm220_vm2, %v5831_v4 }
  0xbd   :  { %4732 = vmatmul.mubr.msk.f32.vlgmr.msra.gmra.mxu1 %vm220_vm2, %v502_v34  ;;  %4747 = vmatprep.mubr.msk.f32.mxu0 %vm5636_vm0, %v5635_v0 }
  0xbe   :  { %4754 = vmatpush3.msra.mxu1 %v4350_v47  ;;  %4734 = vmatprep.mubr.msk.f32.mxu1 %vm5636_vm0, %v5635_v0 }
  0xbf   :  { %4755 = vmatprep.subr.mxu1 %v5635_v0 }
  0xc0   :  { %4748 = vmatmul.mubr.msk.f32.gmra.mxu0 %vm220_vm2, %v5883_v19  ;;  %4756 = vmatpush3.msra.mxu1 %v4349_v48 }
  0xc1   :  { %4735 = vmatmul.mubr.msk.f32.gmra.mxu1 %vm220_vm2, %v504_v37  ;;  %4750 = vmatprep.mubr.msk.f32.mxu0 %vm5636_vm0, %v5635_v0 }
  0xc2   :  { %4737 = vmatprep.mubr.msk.f32.mxu1 %vm5636_vm0, %v5635_v0  ;;  %4779 = vmatprep.subr.mxu1 %v5635_v0 }
  0xc4   :  { %4751 = vmatmul.mubr.msk.f32.gmra.mxu0 %vm220_vm2, %v205_v39 }
  0xc5   :  { %4738 = vmatmul.mubr.msk.f32.gmra.mxu1 %vm220_vm2, %v869_v50  ;;  %4770 = vmatprep.mubr.msk.f32.mxu0 %vm5636_vm0, %v5635_v0 }
  0xc6   :  { %4757 = vmatprep.mubr.msk.f32.mxu1 %vm5636_vm0, %v5635_v0 }
  0xc9   :  { %4758 = vmatmul.mubr.msk.f32.vlgmr.msra.gmra.mxu1 %vm220_vm2, %v686_v44 }
  0xca   :  { %4760 = vmatprep.mubr.msk.f32.mxu1 %vm5636_vm0, %v5635_v0 }
  0xcd   :  { %4761 = vmatmul.mubr.msk.f32.gmra.mxu1 %vm220_vm2, %v1047_v52 }
  0xce   :  { %4763 = vmatprep.mubr.msk.f32.mxu1 %vm5636_vm0, %v5635_v0 }
  0xd1   :  { %4764 = vmatmul.mubr.msk.f32.gmra.mxu1 %vm220_vm2, %v1046_v51 }
  0xd2   :  { %4811 = vmatprep.mubr.msk.f32.mxu1 %vm5636_vm0, %v5635_v0 }
 0x151   :  { %v298_v53 = vpop.f32.mrf.mxu1  ;;  %v293_v55 = vpop.f32.mrf.mxu0 }
 0x153   :  { %v4645_v54 = vpop.f32.mrf.mxu1  ;;  %v4642_v57 = vpop.f32.mrf.mxu0 }
 0x155   :  { %v303_v56 = vpop.f32.mrf.mxu1 }
 0x157   :  { %v4648_v58 = vpop.f32.mrf.mxu1 }
 0x158   :  { %v477_v59 = vpop.f32.mrf.mxu0 }
 0x159   :  { %v379_v60 = vpop.f32.mrf.mxu1 }
 0x15a   :  { %v4668_v61 = vpop.f32.mrf.mxu0  ;;  %v380_v22 = vadd.f32 %v379_v60, %v293_v55 }
 0x15b   :  { %v4655_v62 = vpop.f32.mrf.mxu1 }
 0x15c   :  { %v482_v63 = vpop.f32.mrf.mxu0  ;;  %v491_v27 = vadd.f32 %v477_v59, %v380_v22 }
 0x15d   :  { %v384_v1 = vpop.f32.mrf.mxu1 }
 0x15e   :  { %v4671_v2 = vpop.f32.mrf.mxu0  ;;  %v385_v28 = vadd.f32 %v384_v1, %v298_v53 }
 0x15f   :  { %v4658_v3 = vpop.f32.mrf.mxu1  ;;  %v4354_v2 = vld [vmem:[%s6740_s12] ss:$0 sm:$0xff] }
 0x160   :  { %v487_v4 = vpop.f32.mrf.mxu0  ;;  %v492_v34 = vadd.f32 %v482_v63, %v385_v28 }
 0x161   :  { %v389_v5 = vpop.f32.mrf.mxu1 }
 0x162   :  { %v4674_v6 = vpop.f32.mrf.mxu0  ;;  %v390_v35 = vadd.f32 %v389_v5, %v303_v56 }
 0x163   :  { %v4661_v7 = vpop.f32.mrf.mxu1 }
 0x164   :  { %v665_v8 = vpop.f32.mrf.mxu0  ;;  %v493_v42 = vadd.f32 %v487_v4, %v390_v35 }
 0x165   :  { %v577_v9 = vpop.f32.mrf.mxu1 }
 0x166   :  { %v4694_v10 = vpop.f32.mrf.mxu0  ;;  %v591_v31 = vadd.f32 %v577_v9, %v491_v27 }
 0x167   :  { %v4681_v11 = vpop.f32.mrf.mxu1 }
 0x168   :  { %v670_v12 = vpop.f32.mrf.mxu0  ;;  %v679_v38 = vadd.f32 %v665_v8, %v591_v31 }
 0x169   :  { %v582_v13 = vpop.f32.mrf.mxu1 }
 0x16a   :  { %v4697_v14 = vpop.f32.mrf.mxu0  ;;  %v592_v39 = vadd.f32 %v582_v13, %v492_v34 }
 0x16b   :  { %v4684_v15 = vpop.f32.mrf.mxu1 }
 0x16c   :  { %v675_v16 = vpop.f32.mrf.mxu0  ;;  %v680_v46 = vadd.f32 %v670_v12, %v592_v39  ;;  %v1348_v39 = vld [vmem:[#allocation9 + $0x70] sm:$0xff] }
 0x16d   :  { %v587_v17 = vpop.f32.mrf.mxu1 }
 0x16e   :  { %v4700_v18 = vpop.f32.mrf.mxu0  ;;  %v593_v47 = vadd.f32 %v587_v17, %v493_v42 }
 0x16f   :  { %v4687_v19 = vpop.f32.mrf.mxu1 }
 0x170   :  { %v848_v20 = vpop.f32.mrf.mxu0  ;;  %v681_v54 = vadd.f32 %v675_v16, %v593_v47 }
 0x171   :  { %v757_v21 = vpop.f32.mrf.mxu1 }
 0x172   :  { %v4720_v23 = vpop.f32.mrf.mxu0  ;;  %v771_v43 = vadd.f32 %v757_v21, %v679_v38  ;;  %v1349_v38 = vld [vmem:[#allocation9 + $0x78] sm:$0xff] }
 0x173   :  { %v4707_v24 = vpop.f32.mrf.mxu1  ;;  %4780 = vmatpush3.msra.mxu1 %v1349_v38  ;;  %v1447_v38 = vld [vmem:[#allocation12 + $0x30] sm:$0xff] }
 0x174   :  { %v853_v25 = vpop.f32.mrf.mxu0  ;;  %v862_v50 = vadd.f32 %v848_v20, %v771_v43  ;;  %4781 = vmatprep.subr.mxu1 %v5635_v0 }
 0x175   :  { %v762_v26 = vpop.f32.mrf.mxu1  ;;  %4782 = vmatpush3.msra.mxu1 %v1348_v39  ;;  %v1446_v39 = vld [vmem:[#allocation12 + $0x28] sm:$0xff] }
 0x176   :  { %v4723_v29 = vpop.f32.mrf.mxu0  ;;  %v772_v51 = vadd.f32 %v762_v26, %v680_v46  ;;  %4783 = vmatprep.subr.mxu1 %v5635_v0 }
 0x177   :  { %v4710_v30 = vpop.f32.mrf.mxu1 }
 0x178   :  { %v858_v32 = vpop.f32.mrf.mxu0  ;;  %v863_v58 = vadd.f32 %v853_v25, %v772_v51 }
 0x179   :  { %v767_v33 = vpop.f32.mrf.mxu1 }
 0x17a   :  { %v4726_v36 = vpop.f32.mrf.mxu0  ;;  %v773_v59 = vadd.f32 %v767_v33, %v681_v54  ;;  %v4356_v54 = vld [vmem:[%s6742_s11] ss:$0 sm:$0xff]  ;;  %s5641_s11 = smov [#allocation22]  }
 0x17b   :  { %v4713_v37 = vpop.f32.mrf.mxu1  ;;  %v1222_v36 = vld [vmem:[#allocation4 + $0x8] sm:$0xff]  ;;  %s4283_s25 = sshll.u32 %s5641_s11, 4  ;;  %s4284_s25 = int_to_ptr.vmem [resolvable:$true] %s4283_s25 }
 0x17c   :  { %v1026_v40 = vpop.f32.mrf.mxu0  ;;  %v864_v3 = vadd.f32 %v858_v32, %v773_v59  ;;  %v1221_v37 = vld [vmem:[#allocation4] sm:$0xff]  ;;  %4767 = vmatpush3.msra.mxu0 %v1222_v36  ;;  %v1449_v36 = vld [vmem:[#allocation12 + $0x40] sm:$0xff] }
 0x17d   :  { %v938_v41 = vpop.f32.mrf.mxu1  ;;  %4768 = vmatprep.subr.mxu0 %v5635_v0 }
 0x17e   :  { %v4746_v44 = vpop.f32.mrf.mxu0  ;;  %v952_v55 = vadd.f32 %v938_v41, %v862_v50  ;;  %4769 = vmatpush3.msra.mxu0 %v1221_v37  ;;  %v1346_v41 = vld [vmem:[#allocation9 + $0x60] sm:$0xff] }
 0x17f   :  { %v4733_v45 = vpop.f32.mrf.mxu1  ;;  %4820 = vmatprep.subr.mxu0 %v5635_v0  ;;  %v1448_v37 = vld [vmem:[#allocation12 + $0x38] sm:$0xff] }
 0x180   :  { %v1031_v48 = vpop.f32.mrf.mxu0  ;;  %v1040_v62 = vadd.f32 %v1026_v40, %v952_v55  ;;  %v1347_v40 = vld [vmem:[#allocation9 + $0x68] sm:$0xff] }
 0x181   :  { %v943_v49 = vpop.f32.mrf.mxu1  ;;  %4784 = vmatpush3.msra.mxu1 %v1347_v40  ;;  %v1445_v40 = vld [vmem:[#allocation12 + $0x20] sm:$0xff] }
 0x182   :  { %v4749_v52 = vpop.f32.mrf.mxu0  ;;  %v953_v63 = vadd.f32 %v943_v49, %v863_v58  ;;  %4785 = vmatprep.subr.mxu1 %v5635_v0 }
 0x183   :  { %v4736_v53 = vpop.f32.mrf.mxu1  ;;  %4786 = vmatpush3.msra.mxu1 %v1346_v41  ;;  %v4355_v52 = vld [vmem:[%s6741_s26] ss:$0 sm:$0xff] }
 0x184   :  { %v1036_v56 = vpop.f32.mrf.mxu0  ;;  %v1041_v6 = vadd.f32 %v1031_v48, %v953_v63  ;;  %4787 = vmatprep.subr.mxu1 %v5635_v0  ;;  %v1444_v41 = vld [vmem:[#allocation12 + $0x18] sm:$0xff] }
 0x185   :  { %v948_v57 = vpop.f32.mrf.mxu1 }
 0x186   :  { %v4752_v60 = vpop.f32.mrf.mxu0  ;;  %v954_v7 = vadd.f32 %v948_v57, %v864_v3 }
 0x187   :  { %v4739_v61 = vpop.f32.mrf.mxu1 }
 0x188   :  { %v1042_v13 = vadd.f32 %v1036_v56, %v954_v7 }
 0x189   :  { %v1118_v1 = vpop.f32.mrf.mxu1 }
 0x18a   :  { %v1132_v4 = vadd.f32 %v1118_v1, %v1040_v62 }
 0x18b   :  { %v4759_v5 = vpop.f32.mrf.mxu1 }
 0x18c   :  { %v1142_v8 = vadd.f32 %v4354_v2, %v1132_v4 }
 0x18d   :  { %v1123_v9 = vpop.f32.mrf.mxu1 }
 0x18e   :  { %v1133_v10 = vadd.f32 %v1123_v9, %v1041_v6  ;;  %v1147_v11 = vsel %vm220_vm2, %v1142_v8, 0.0 }
 0x18f   :  { %v4762_v12 = vpop.f32.mrf.mxu1  ;;  %1148 = vadd.xlane.f32.xlu0 %v1147_v11 }
 0x190   :  { %v1143_v14 = vadd.f32 %v4354_v2, %v1133_v10 }
 0x191   :  { %v1128_v15 = vpop.f32.mrf.mxu1 }
 0x192   :  { %v1134_v16 = vadd.f32 %v1128_v15, %v1042_v13  ;;  %v1150_v17 = vsel %vm220_vm2, %v1143_v14, 0.0 }
 0x193   :  { %1151 = vadd.xlane.f32.xlu1 %v1150_v17  ;;  %v4765_v18 = vpop.f32.mrf.mxu1  ;;  %v1345_v17 = vld [vmem:[#allocation9 + $0x58] sm:$0xff] }
 0x194   :  { %v1144_v19 = vadd.f32 %v4354_v2, %v1134_v16  ;;  %4788 = vmatpush3.msra.mxu1 %v1345_v17  ;;  %v1344_v18 = vld [vmem:[#allocation9 + $0x50] sm:$0xff] }
 0x195   :  { %4789 = vmatprep.subr.mxu1 %v5635_v0 }
 0x196   :  { %v1154_v20 = vsel %vm1153_vm5, %v1144_v19, 0.0  ;;  %4790 = vmatpush3.msra.mxu1 %v1344_v18 }
 0x197   :  { %1155 = vadd.xlane.f32.xlu1 %v1154_v20  ;;  %4791 = vmatprep.subr.mxu1 %v5635_v0  ;;  %v1342_v20 = vld [vmem:[#allocation9 + $0x40] sm:$0xff] }
 0x218   :  { %v1149_v21 = vpop.xlane.xlu0 %1148 }
 0x219   :  { %v1158_v22 = vmul.f32 0.0625, %v1149_v21  ;;  %v1341_v21 = vld [vmem:[#allocation9 + $0x38] sm:$0xff] }
 0x21b   :  { %v1161_v23 = vsub.f32 %v1142_v8, %v1158_v22  ;;  %v1340_v22 = vld [vmem:[#allocation9 + $0x30] sm:$0xff] }
 0x21c   :  { %v1152_v24 = vpop.xlane.xlu1 %1151 }
 0x21d   :  { %v1159_v25 = vmul.f32 0.0625, %v1152_v24  ;;  %v1164_v26 = vmul.f32 %v1161_v23, %v1161_v23  ;;  %v1338_v24 = vld [vmem:[#allocation9 + $0x20] sm:$0xff] }
 0x21f   :  { %v1162_v27 = vsub.f32 %v1143_v14, %v1159_v25  ;;  %v1167_v28 = vsel %vm220_vm2, %v1164_v26, 0.0  ;;  %v1337_v25 = vld [vmem:[#allocation9 + $0x18] sm:$0xff]  ;;  %v1336_v26 = vld [vmem:[#allocation9 + $0x10] sm:$0xff] }
 0x220   :  { %1168 = vadd.xlane.f32.xlu0 %v1167_v28  ;;  %v1156_v29 = vpop.xlane.xlu1 %1155  ;;  %v1334_v28 = vld [vmem:[#allocation9] sm:$0xff] }
 0x221   :  { %v1160_v30 = vmul.f32 0.0625, %v1156_v29  ;;  %v1165_v31 = vmul.f32 %v1162_v27, %v1162_v27  ;;  %v1456_v29 = vld [vmem:[#allocation12 + $0x78] sm:$0xff] }
 0x223   :  { %v1163_v32 = vsub.f32 %v1144_v19, %v1160_v30  ;;  %v1170_v33 = vsel %vm220_vm2, %v1165_v31, 0.0  ;;  %v1343_v19 = vld [vmem:[#allocation9 + $0x48] sm:$0xff]  ;;  %v1455_v30 = vld [vmem:[#allocation12 + $0x70] sm:$0xff] }
 0x224   :  { %1171 = vadd.xlane.f32.xlu0 %v1170_v33  ;;  %4792 = vmatpush3.msra.mxu1 %v1343_v19  ;;  %v1454_v31 = vld [vmem:[#allocation12 + $0x68] sm:$0xff]  ;;  %v1452_v33 = vld [vmem:[#allocation12 + $0x58] sm:$0xff] }
 0x225   :  { %v1166_v34 = vmul.f32 %v1163_v32, %v1163_v32  ;;  %4793 = vmatprep.subr.mxu1 %v5635_v0 }
 0x226   :  { %4794 = vmatpush3.msra.mxu1 %v1342_v20 }
 0x227   :  { %v1173_v35 = vsel %vm1153_vm5, %v1166_v34, 0.0  ;;  %4795 = vmatprep.subr.mxu1 %v5635_v0  ;;  %v1451_v34 = vld [vmem:[#allocation12 + $0x50] sm:$0xff] }
 0x228   :  { %1174 = vadd.xlane.f32.xlu1 %v1173_v35  ;;  %4796 = vmatpush3.msra.mxu1 %v1341_v21  ;;  %v1450_v35 = vld [vmem:[#allocation12 + $0x48] sm:$0xff] }
 0x229   :  { %4797 = vmatprep.subr.mxu1 %v5635_v0 }
 0x22a   :  { %4798 = vmatpush3.msra.mxu1 %v1340_v22 }
 0x22b   :  { %4799 = vmatprep.subr.mxu1 %v5635_v0 }
 0x2a9   :  { %v1169_v42 = vpop.xlane.xlu0 %1168 }
 0x2aa   :  { %v1176_v43 = vmul.f32 0.0625, %v1169_v42  ;;  %v1443_v42 = vld [vmem:[#allocation12 + $0x10] sm:$0xff] }
 0x2ac   :  { %v1179_v44 = vadd.f32 1e-05, %v1176_v43  ;;  %v4357_v43 = vld [vmem:[#allocation7] ss:$0 sm:$0xff] }
 0x2ad   :  { %v1172_v45 = vpop.xlane.xlu0 %1171 }
 0x2ae   :  { %5161 = vrsqrt.f32 %v1179_v44  ;;  %v1177_v46 = vmul.f32 0.0625, %v1172_v45 }
 0x2b0   :  { %v1180_v47 = vadd.f32 1e-05, %v1177_v46 }
 0x2b1   :  { %v1175_v48 = vpop.xlane.xlu1 %1174 }
 0x2b2   :  { %5163 = vrsqrt.f32 %v1180_v47  ;;  %v1178_v49 = vmul.f32 0.0625, %v1175_v48 }
 0x2b4   :  { %v1181_v50 = vadd.f32 1e-05, %v1178_v49 }
 0x2b6   :  { %5165 = vrsqrt.f32 %v1181_v50 }
 0x2bb   :  { %v5162_v51 = vpop.eup %5161 }
 0x2bc   :  { %v1185_v53 = vmul.f32 %v5162_v51, %v1161_v23  ;;  %v1339_v23 = vld [vmem:[#allocation9 + $0x28] sm:$0xff] }
 0x2bd   :  { %4800 = vmatpush3.msra.mxu1 %v1339_v23 }
 0x2be   :  { %v1194_v55 = vmul.f32 %v4355_v52, %v1185_v53  ;;  %4801 = vmatprep.subr.mxu1 %v5635_v0 }
 0x2bf   :  { %v5164_v56 = vpop.eup %5163  ;;  %4802 = vmatpush3.msra.mxu1 %v1338_v24 }
 0x2c0   :  { %v1203_v57 = vadd.f32 %v4356_v54, %v1194_v55  ;;  %v1186_v58 = vmul.f32 %v5164_v56, %v1162_v27  ;;  %4803 = vmatprep.subr.mxu1 %v5635_v0  ;;  %v1335_v27 = vld [vmem:[#allocation9 + $0x8] sm:$0xff] }
 0x2c1   :  { %4804 = vmatpush3.msra.mxu1 %v1337_v25  ;;  %v4362_v25 = vld [vmem:[#allocation15] ss:$0 sm:$0xff] }
 0x2c2   :  { %v1209_v59 = vmul.f32 0.70710677, %v1203_v57  ;;  %v1195_v60 = vmul.f32 %v4355_v52, %v1186_v58  ;;  %v1206_v6 = vmul.f32 0.5, %v1203_v57  ;;  %4805 = vmatprep.subr.mxu1 %v5635_v0 }
 0x2c3   :  { %v5166_v61 = vpop.eup %5165  ;;  %4806 = vmatpush3.msra.mxu1 %v1336_v26 }
 0x2c4   :  { %5167 = verf.f32 %v1209_v59  ;;  %v1204_v62 = vadd.f32 %v4356_v54, %v1195_v60  ;;  %v1187_v63 = vmul.f32 %v5166_v61, %v1163_v32  ;;  %4807 = vmatprep.subr.mxu1 %v5635_v0  ;;  %v1453_v32 = vld [vmem:[#allocation12 + $0x60] sm:$0xff]  ;;  %v6113_v60 = vld [vmem:[#allocation13 + $0x18] sm:$0xff] }
 0x2c5   :  { %4808 = vmatpush3.msra.mxu1 %v1335_v27 }
 0x2c6   :  { %v1210_v1 = vmul.f32 0.70710677, %v1204_v62  ;;  %v1196_v2 = vmul.f32 %v4355_v52, %v1187_v63  ;;  %v1207_v10 = vmul.f32 0.5, %v1204_v62  ;;  %4809 = vmatprep.subr.mxu1 %v5635_v0 }
 0x2c7   :  { %4810 = vmatpush3.msra.mxu1 %v1334_v28 }
 0x2c8   :  { %5169 = verf.f32 %v1210_v1  ;;  %v1205_v3 = vadd.f32 %v4356_v54, %v1196_v2  ;;  %4861 = vmatprep.subr.mxu1 %v5635_v0  ;;  %v6115_v1 = vld [vmem:[#allocation13 + $0x10] sm:$0xff] }
 0x2ca   :  { %v1211_v4 = vmul.f32 0.70710677, %v1205_v3  ;;  %v1208_v14 = vmul.f32 0.5, %v1205_v3 }
 0x2cc   :  { %5171 = verf.f32 %v1211_v4 }
 0x2d1   :  { %v5168_v5 = vpop.eup %5167 }
 0x2d2   :  { %v1215_v7 = vadd.f32 1.0, %v5168_v5 }
 0x2d4   :  { %v1218_v8 = vmul.f32 %v1215_v7, %v1206_v6  ;;  %v1442_v7 = vld [vmem:[#allocation12 + $0x8] sm:$0xff] }
 0x2d5   :  { %v5170_v9 = vpop.eup %5169 }
 0x2d6   :  { %4771 = vmatmul.mubr.msk.f32.vlgmr.msra.gmra.mxu0 %vm220_vm2, %v1218_v8  ;;  %v1216_v11 = vadd.f32 1.0, %v5170_v9  ;;  %v6127_v8 = vld [vmem:[#allocation13 + $0x8] sm:$0xff]  ;;  %v1441_v9 = vld [vmem:[#allocation12] sm:$0xff] }
 0x2d7   :  { %4773 = vmatprep.mubr.msk.f32.mxu0 %vm5636_vm0, %v5635_v0  ;;  %4821 = vmatpush3.msra.mxu0 %v1456_v29 }
 0x2d8   :  { %v1219_v12 = vmul.f32 %v1216_v11, %v1207_v10  ;;  %4822 = vmatprep.subr.mxu0 %v5635_v0  ;;  %v6132_v10 = vld [vmem:[#allocation13] sm:$0xff]  ;;  %v1544_v11 = vld [vmem:[%s6720_s19] sm:$0x3] }
 0x2d9   :  { %v5172_v13 = vpop.eup %5171  ;;  %4823 = vmatpush3.msra.mxu0 %v1455_v30 }
 0x2da   :  { %4774 = vmatmul.mubr.msk.f32.gmra.mxu0 %vm220_vm2, %v1219_v12  ;;  %v1217_v15 = vadd.f32 1.0, %v5172_v13  ;;  %4824 = vmatprep.subr.mxu0 %v5635_v0  ;;  %v1545_v12 = vld [vmem:[%s6721_s20] sm:$0x3]  ;;  %v4361_v13 = vld [vmem:[#allocation10] ss:$0 sm:$0xff] }
 0x2db   :  { %4776 = vmatprep.mubr.msk.f32.mxu0 %vm5636_vm0, %v5635_v0  ;;  %4825 = vmatpush3.msra.mxu0 %v1454_v31 }
 0x2dc   :  { %v1220_v16 = vmul.f32 %v1217_v15, %v1208_v14  ;;  %4826 = vmatprep.subr.mxu0 %v5635_v0  ;;  %1629 = vrot.lane.b32.xlu1 %v1545_v12, %s5637_s18 }
 0x2dd   :  { %4827 = vmatpush3.msra.mxu0 %v1453_v32 }
 0x2de   :  { %4777 = vmatmul.mubr.msk.f32.gmra.mxu0 %vm220_vm2, %v1220_v16  ;;  %4828 = vmatprep.subr.mxu0 %v5635_v0 }
 0x2df   :  { %4852 = vmatprep.mubr.msk.f32.mxu0 %vm5636_vm0, %v5635_v0  ;;  %4829 = vmatpush3.msra.mxu0 %v1452_v33 }
 0x2e0   :  { %4830 = vmatprep.subr.mxu0 %v5635_v0 }
 0x2e1   :  { %4831 = vmatpush3.msra.mxu0 %v1451_v34 }
 0x2e2   :  { %4832 = vmatprep.subr.mxu0 %v5635_v0 }
 0x2e3   :  { %4833 = vmatpush3.msra.mxu0 %v1450_v35 }
 0x2e4   :  { %4834 = vmatprep.subr.mxu0 %v5635_v0 }
 0x2e5   :  { %4835 = vmatpush3.msra.mxu0 %v1449_v36 }
 0x2e6   :  { %4836 = vmatprep.subr.mxu0 %v5635_v0 }
 0x2e7   :  { %4837 = vmatpush3.msra.mxu0 %v1448_v37 }
 0x2e8   :  { %4838 = vmatprep.subr.mxu0 %v5635_v0 }
 0x2e9   :  { %4839 = vmatpush3.msra.mxu0 %v1447_v38 }
 0x2ea   :  { %4840 = vmatprep.subr.mxu0 %v5635_v0 }
 0x2eb   :  { %4841 = vmatpush3.msra.mxu0 %v1446_v39 }
 0x2ec   :  { %4842 = vmatprep.subr.mxu0 %v5635_v0 }
 0x2ed   :  { %4843 = vmatpush3.msra.mxu0 %v1445_v40 }
 0x2ee   :  { %4844 = vmatprep.subr.mxu0 %v5635_v0 }
 0x2ef   :  { %4845 = vmatpush3.msra.mxu0 %v1444_v41 }
 0x2f0   :  { %4846 = vmatprep.subr.mxu0 %v5635_v0 }
 0x2f1   :  { %4847 = vmatpush3.msra.mxu0 %v1443_v42 }
 0x2f2   :  { %4848 = vmatprep.subr.mxu0 %v5635_v0 }
 0x2f3   :  { %4849 = vmatpush3.msra.mxu0 %v1442_v7 }
 0x2f4   :  { %4850 = vmatprep.subr.mxu0 %v5635_v0 }
 0x2f5   :  { %4851 = vmatpush3.msra.mxu0 %v1441_v9 }
 0x2f6   :  { %4883 = vmatprep.subr.mxu0 %v5635_v0 }
 0x396   :  { %v1305_v44 = vpop.f32.mrf.mxu0 }
 0x397   :  { %v1306_v45 = vadd.f32 %v4357_v43, %v1305_v44 }
 0x398   :  { %v4772_v46 = vpop.f32.mrf.mxu0 }
 0x399   :  { %v1322_v47 = vmul.f32 0.70710677, %v1306_v45  ;;  %v1319_v57 = vmul.f32 0.5, %v1306_v45 }
 0x39a   :  { %v1310_v48 = vpop.f32.mrf.mxu0 }
 0x39b   :  { %5173 = verf.f32 %v1322_v47  ;;  %v1311_v49 = vadd.f32 %v4357_v43, %v1310_v48 }
 0x39c   :  { %v4775_v50 = vpop.f32.mrf.mxu0 }
 0x39d   :  { %v1323_v51 = vmul.f32 0.70710677, %v1311_v49  ;;  %v1320_v62 = vmul.f32 0.5, %v1311_v49 }
 0x39e   :  { %v1315_v52 = vpop.f32.mrf.mxu0 }
 0x39f   :  { %5175 = verf.f32 %v1323_v51  ;;  %v1316_v53 = vadd.f32 %v4357_v43, %v1315_v52  ;;  %v1630_v43 = vpop.permute.xlu1 %1629 }
 0x3a0   :  { %v4778_v54 = vpop.f32.mrf.mxu0 }
 0x3a1   :  { %v1324_v55 = vmul.f32 0.70710677, %v1316_v53  ;;  %v1321_v4 = vmul.f32 0.5, %v1316_v53 }
 0x3a3   :  { %5177 = verf.f32 %v1324_v55 }
 0x3a8   :  { %v5174_v56 = vpop.eup %5173 }
 0x3a9   :  { %v1328_v58 = vadd.f32 1.0, %v5174_v56 }
 0x3ab   :  { %v1331_v59 = vmul.f32 %v1328_v58, %v1319_v57 }
 0x3ac   :  { %v5176_v61 = vpop.eup %5175 }
 0x3ad   :  { %4812 = vmatmul.mubr.f32.vlgmr.msra.gmra.mxu1 %v1331_v59  ;;  %v1329_v63 = vadd.f32 1.0, %v5176_v61 }
 0x3ae   :  { %4814 = vmatprep.mubr.msk.f32.mxu1 %vm5636_vm0, %v5635_v0  ;;  %4862 = vmatpush3.msra.mxu1 %v6113_v60 }
 0x3af   :  { %v1332_v2 = vmul.f32 %v1329_v63, %v1320_v62  ;;  %4863 = vmatprep.subr.mxu1 %v5635_v0 }
 0x3b0   :  { %v5178_v3 = vpop.eup %5177  ;;  %4864 = vmatpush3.msra.mxu1 %v6115_v1 }
 0x3b1   :  { %4815 = vmatmul.mubr.f32.gmra.mxu1 %v1332_v2  ;;  %v1330_v5 = vadd.f32 1.0, %v5178_v3  ;;  %4865 = vmatprep.subr.mxu1 %v5635_v0 }
 0x3b2   :  { %4817 = vmatprep.mubr.msk.f32.mxu1 %vm5636_vm0, %v5635_v0  ;;  %4866 = vmatpush3.msra.mxu1 %v6127_v8 }
 0x3b3   :  { %v1333_v6 = vmul.f32 %v1330_v5, %v1321_v4  ;;  %4867 = vmatprep.subr.mxu1 %v5635_v0 }
 0x3b4   :  { %4868 = vmatpush3.msra.mxu1 %v6132_v10 }
 0x3b5   :  { %4818 = vmatmul.mubr.f32.gmra.mxu1 %v1333_v6  ;;  %4872 = vmatprep.subr.mxu1 %v5635_v0 }
 0x3b6   :  { %4869 = vmatprep.mubr.msk.f32.mxu1 %vm5636_vm0, %v5635_v0 }
 0x3b9   :  { %4870 = vmatmul.mubr.msk.f32.vlgmr.msra.gmra.mxu1 %vm1546_vm6, %v1544_v11 }
 0x3ba   :  { %4873 = vmatpush3.msra.mxu1 %v6113_v60  ;;  %4880 = vmatprep.mubr.msk.f32.mxu1 %vm5636_vm0, %v5635_v0 }
 0x3bb   :  { %4874 = vmatprep.subr.mxu1 %v5635_v0 }
 0x3bc   :  { %4875 = vmatpush3.msra.mxu1 %v6115_v1 }
 0x3bd   :  { %4876 = vmatprep.subr.mxu1 %v5635_v0 }
 0x3be   :  { %4877 = vmatpush3.msra.mxu1 %v6127_v8 }
 0x3bf   :  { %4878 = vmatprep.subr.mxu1 %v5635_v0 }
 0x3c0   :  { %4879 = vmatpush3.msra.mxu1 %v6132_v10 }
 0x3c1   :  { %4894 = vmatprep.subr.mxu1 %v5635_v0 }
 0x46d   :  { %v1423_v14 = vpop.f32.mrf.mxu1 }
 0x46e   :  { %v1424_v15 = vadd.f32 %v4361_v13, %v1423_v14 }
 0x46f   :  { %v4813_v16 = vpop.f32.mrf.mxu1 }
 0x470   :  { %4853 = vmatmul.mubr.f32.vlgmr.msra.gmra.mxu0 %v1424_v15 }
 0x471   :  { %v1428_v17 = vpop.f32.mrf.mxu1  ;;  %4855 = vmatprep.mubr.msk.f32.mxu0 %vm5636_vm0, %v5635_v0  ;;  %4884 = vmatpush3.msra.mxu0 %v6113_v60 }
 0x472   :  { %v1429_v18 = vadd.f32 %v4361_v13, %v1428_v17  ;;  %4885 = vmatprep.subr.mxu0 %v5635_v0 }
 0x473   :  { %v4816_v19 = vpop.f32.mrf.mxu1  ;;  %4886 = vmatpush3.msra.mxu0 %v6115_v1 }
 0x474   :  { %4856 = vmatmul.mubr.f32.gmra.mxu0 %v1429_v18  ;;  %4887 = vmatprep.subr.mxu0 %v5635_v0 }
 0x475   :  { %v1433_v20 = vpop.f32.mrf.mxu1  ;;  %4858 = vmatprep.mubr.msk.f32.mxu0 %vm5636_vm0, %v5635_v0  ;;  %4888 = vmatpush3.msra.mxu0 %v6127_v8 }
 0x476   :  { %v1434_v21 = vadd.f32 %v4361_v13, %v1433_v20  ;;  %4889 = vmatprep.subr.mxu0 %v5635_v0 }
 0x477   :  { %v4819_v22 = vpop.f32.mrf.mxu1  ;;  %4890 = vmatpush3.msra.mxu0 %v6132_v10 }
 0x478   :  { %4859 = vmatmul.mubr.f32.gmra.mxu0 %v1434_v21  ;;  %4905 = vmatprep.subr.mxu0 %v5635_v0 }
 0x479   :  { %4891 = vmatprep.mubr.msk.f32.mxu0 %vm5636_vm0, %v5635_v0  ;;  %v1616_v23 = vpop.f32.mrf.mxu1 }
 0x47b   :  { %v4871_v24 = vpop.f32.mrf.mxu1 }
 0x530   :  { %v1530_v26 = vpop.f32.mrf.mxu0 }
 0x531   :  { %v6169_v27 = vadd.f32 %v4362_v25, %v1530_v26 }
 0x532   :  { %v4854_v28 = vpop.f32.mrf.mxu0 }
 0x533   :  { %v1620_v29 = vadd.f32 %v1616_v23, %v6169_v27 }
 0x534   :  { %v1535_v30 = vpop.f32.mrf.mxu0 }
 0x535   :  { %5179 = vtanh.f32 %v1620_v29  ;;  %v6172_v31 = vadd.f32 %v4362_v25, %v1535_v30  ;;  %v4364_v37 = vmul.f32 -1.442695, %v1620_v29 }
 0x536   :  { %v4857_v32 = vpop.f32.mrf.mxu0 }
 0x537   :  { %5181 = vpow2.f32 %v4364_v37 }
 0x538   :  { %v1540_v33 = vpop.f32.mrf.mxu0 }
 0x539   :  { %v6174_v34 = vadd.f32 %v4362_v25, %v1540_v33 }
 0x53a   :  { %v4860_v35 = vpop.f32.mrf.mxu0 }
 0x542   :  { %v5180_v36 = vpop.eup %5179 }
 0x543   :  { %1634 = vrot.lane.b32.xlu0 %v5180_v36, %s5638_s1 }
 0x544   :  { %v5182_v38 = vpop.eup %5181 }
 0x545   :  { %v1624_v39 = vadd.f32 1.0, %v5182_v38 }
 0x547   :  { %5183 = vrcp.f32 %v1624_v39 }
 0x554   :  { %v5184_v40 = vpop.eup %5183 }
 0x555   :  { %v1632_v44 = vmul.f32 %v5184_v40, %v1630_v43 }
 0x5b5   :  { %v1635_v41 = vpop.permute.xlu0 %1634 }
 0x5b6   :  { %v1637_v42 = vmul.f32 %v5184_v40, %v1635_v41 }
 0x5b8   :  { %1639 = vrot.lane.b32.xlu1 %v1637_v42, %s5637_s18 }
 0x62a   :  { %v1640_v45 = vpop.permute.xlu1 %1639 }
 0x62b   :  { %v1642_v46 = vadd.f32 %v1640_v45, %v1632_v44 }
 0x62d   :  { %5185 = vtanh.f32 %v1642_v46  ;;  %v1739_v63 = vrot.slane %v1642_v46, 6 }
 0x63a   :  { %v5186_v47 = vpop.eup %5185 }
 0x63b   :  { %1645 = vrot.lane.b32.xlu1 %v5186_v47, %s5638_s1 }
 0x6ad   :  { %v1646_v48 = vpop.permute.xlu1 %1645 }
 0x6ae   :  { %v1648_v49 = vmul.f32 %v5184_v40, %v1646_v48 }
 0x6b0   :  { %1650 = vrot.lane.b32.xlu0 %v1648_v49, %s5637_s18 }
 0x722   :  { %v1651_v50 = vpop.permute.xlu0 %1650 }
 0x723   :  { %1654 = vst.msk [vmem:[#allocation2] sm:$0x3] %vm1653_vm7, %v1651_v50  ;;  %4881 = vmatmul.mubr.msk.f32.vlgmr.msra.gmra.mxu1 %vm1546_vm6, %v1651_v50 }
 0x724   :  { %4895 = vmatpush3.msra.mxu1 %v6113_v60  ;;  %4902 = vmatprep.mubr.msk.f32.mxu1 %vm5636_vm0, %v5635_v0 }
 0x725   :  { %4896 = vmatprep.subr.mxu1 %v5635_v0 }
 0x726   :  { %4897 = vmatpush3.msra.mxu1 %v6115_v1 }
 0x727   :  { %4898 = vmatprep.subr.mxu1 %v5635_v0 }
 0x728   :  { %4899 = vmatpush3.msra.mxu1 %v6127_v8 }
 0x729   :  { %4900 = vmatprep.subr.mxu1 %v5635_v0 }
 0x72a   :  { %4901 = vmatpush3.msra.mxu1 %v6132_v10 }
 0x72b   :  { %4916 = vmatprep.subr.mxu1 %v5635_v0 }
 0x7e3   :  { %v1723_v51 = vpop.f32.mrf.mxu1 }
 0x7e4   :  { %v1728_v52 = vrot.slane %v1723_v51, 6 }
 0x7e5   :  { %v4882_v53 = vpop.f32.mrf.mxu1 }
 0x7e6   :  { %v1730_v54 = vadd.f32 %v1728_v52, %v6169_v27 }
 0x7e8   :  { %5187 = vtanh.f32 %v1730_v54  ;;  %v4366_v56 = vmul.f32 -1.442695, %v1730_v54 }
 0x7ea   :  { %5189 = vpow2.f32 %v4366_v56 }
 0x7f5   :  { %v5188_v55 = vpop.eup %5187 }
 0x7f6   :  { %1743 = vrot.lane.b32.xlu1 %v5188_v55, %s5638_s1 }
 0x7f7   :  { %v5190_v57 = vpop.eup %5189 }
 0x7f8   :  { %v1734_v58 = vadd.f32 1.0, %v5190_v57 }
 0x7fa   :  { %5191 = vrcp.f32 %v1734_v58 }
 0x807   :  { %v5192_v59 = vpop.eup %5191 }
 0x808   :  { %v1741_v2 = vmul.f32 %v5192_v59, %v1739_v63 }
 0x868   :  { %v1744_v61 = vpop.permute.xlu1 %1743 }
 0x869   :  { %v1746_v62 = vmul.f32 %v5192_v59, %v1744_v61 }
 0x86b   :  { %1748 = vrot.lane.b32.xlu0 %v1746_v62, %s5637_s18 }
 0x8dd   :  { %v1749_v3 = vpop.permute.xlu0 %1748 }
 0x8de   :  { %v1751_v4 = vadd.f32 %v1749_v3, %v1741_v2 }
 0x8e0   :  { %5193 = vtanh.f32 %v1751_v4  ;;  %v1851_v23 = vrot.slane %v1751_v4, 6 }
 0x8ed   :  { %v5194_v5 = vpop.eup %5193 }
 0x8ee   :  { %1754 = vrot.lane.b32.xlu1 %v5194_v5, %s5638_s1 }
 0x960   :  { %v1755_v6 = vpop.permute.xlu1 %1754 }
 0x961   :  { %v6196_v7 = vmul.f32 %v5192_v59, %v1755_v6 }
 0x963   :  { %v1764_v9 = vrot.slane %v6196_v7, 2 }
 0x965   :  { %1765 = vrot.lane.b32.xlu0 %v1764_v9, %s5637_s18 }
 0x9d7   :  { %v1766_v11 = vpop.permute.xlu0 %1765 }
 0x9d8   :  { %4892 = vmatmul.mubr.msk.f32.vlgmr.msra.gmra.mxu0 %vm1546_vm6, %v1766_v11 }
 0x9d9   :  { %4906 = vmatpush3.msra.mxu0 %v6113_v60  ;;  %4913 = vmatprep.mubr.msk.f32.mxu0 %vm5636_vm0, %v5635_v0 }
 0x9da   :  { %4907 = vmatprep.subr.mxu0 %v5635_v0 }
 0x9db   :  { %4908 = vmatpush3.msra.mxu0 %v6115_v1 }
 0x9dc   :  { %4909 = vmatprep.subr.mxu0 %v5635_v0 }
 0x9dd   :  { %4910 = vmatpush3.msra.mxu0 %v6127_v8 }
 0x9de   :  { %4911 = vmatprep.subr.mxu0 %v5635_v0 }
 0x9df   :  { %4912 = vmatpush3.msra.mxu0 %v6132_v10 }
 0x9e0   :  { %4927 = vmatprep.subr.mxu0 %v5635_v0 }
 0xa98   :  { %v1835_v12 = vpop.f32.mrf.mxu0 }
 0xa99   :  { %v1840_v13 = vrot.slane %v1835_v12, 4 }
 0xa9a   :  { %v4893_v14 = vpop.f32.mrf.mxu0 }
 0xa9b   :  { %v1842_v15 = vadd.f32 %v1840_v13, %v6169_v27 }
 0xa9d   :  { %5195 = vtanh.f32 %v1842_v15  ;;  %v4368_v17 = vmul.f32 -1.442695, %v1842_v15 }
 0xa9f   :  { %5197 = vpow2.f32 %v4368_v17 }
 0xaaa   :  { %v5196_v16 = vpop.eup %5195 }
 0xaab   :  { %1855 = vrot.lane.b32.xlu1 %v5196_v16, %s5638_s1 }
 0xaac   :  { %v5198_v18 = vpop.eup %5197 }
 0xaad   :  { %v1846_v19 = vadd.f32 1.0, %v5198_v18 }
 0xaaf   :  { %5199 = vrcp.f32 %v1846_v19 }
 0xabc   :  { %v5200_v20 = vpop.eup %5199 }
 0xabd   :  { %v1853_v24 = vmul.f32 %v5200_v20, %v1851_v23 }
 0xb1d   :  { %v1856_v21 = vpop.permute.xlu1 %1855 }
 0xb1e   :  { %v1858_v22 = vmul.f32 %v5200_v20, %v1856_v21 }
 0xb20   :  { %1860 = vrot.lane.b32.xlu0 %v1858_v22, %s5637_s18 }
 0xb92   :  { %v1861_v25 = vpop.permute.xlu0 %1860 }
 0xb93   :  { %v1863_v26 = vadd.f32 %v1861_v25, %v1853_v24 }
 0xb95   :  { %5201 = vtanh.f32 %v1863_v26  ;;  %v1963_v46 = vrot.slane %v1863_v26, 6 }
 0xba2   :  { %v5202_v28 = vpop.eup %5201 }
 0xba3   :  { %1866 = vrot.lane.b32.xlu1 %v5202_v28, %s5638_s1 }
 0xc15   :  { %v1867_v29 = vpop.permute.xlu1 %1866 }
 0xc16   :  { %v6215_v30 = vmul.f32 %v5200_v20, %v1867_v29 }
 0xc18   :  { %v1876_v32 = vrot.slane %v6215_v30, 4 }
 0xc1a   :  { %1877 = vrot.lane.b32.xlu0 %v1876_v32, %s5637_s18 }
 0xc8c   :  { %v1878_v33 = vpop.permute.xlu0 %1877 }
 0xc8d   :  { %4903 = vmatmul.mubr.msk.f32.vlgmr.msra.gmra.mxu1 %vm1546_vm6, %v1878_v33 }
 0xc8e   :  { %4917 = vmatpush3.msra.mxu1 %v6113_v60  ;;  %4924 = vmatprep.mubr.msk.f32.mxu1 %vm5636_vm0, %v5635_v0 }
 0xc8f   :  { %4918 = vmatprep.subr.mxu1 %v5635_v0 }
 0xc90   :  { %4919 = vmatpush3.msra.mxu1 %v6115_v1 }
 0xc91   :  { %4920 = vmatprep.subr.mxu1 %v5635_v0 }
 0xc92   :  { %4921 = vmatpush3.msra.mxu1 %v6127_v8 }
 0xc93   :  { %4922 = vmatprep.subr.mxu1 %v5635_v0 }
 0xc94   :  { %4923 = vmatpush3.msra.mxu1 %v6132_v10 }
 0xc95   :  { %4938 = vmatprep.subr.mxu1 %v5635_v0 }
 0xd4d   :  { %v1947_v35 = vpop.f32.mrf.mxu1 }
 0xd4e   :  { %v1952_v36 = vrot.slane %v1947_v35, 2 }
 0xd4f   :  { %v4904_v37 = vpop.f32.mrf.mxu1 }
 0xd50   :  { %v1954_v38 = vadd.f32 %v1952_v36, %v6169_v27 }
 0xd52   :  { %5203 = vtanh.f32 %v1954_v38  ;;  %v4370_v40 = vmul.f32 -1.442695, %v1954_v38 }
 0xd54   :  { %5205 = vpow2.f32 %v4370_v40 }
 0xd5f   :  { %v5204_v39 = vpop.eup %5203 }
 0xd60   :  { %1967 = vrot.lane.b32.xlu1 %v5204_v39, %s5638_s1 }
 0xd61   :  { %v5206_v41 = vpop.eup %5205 }
 0xd62   :  { %v1958_v42 = vadd.f32 1.0, %v5206_v41 }
 0xd64   :  { %5207 = vrcp.f32 %v1958_v42 }
 0xd71   :  { %v5208_v43 = vpop.eup %5207 }
 0xd72   :  { %v1965_v47 = vmul.f32 %v5208_v43, %v1963_v46 }
 0xdd2   :  { %v1968_v44 = vpop.permute.xlu1 %1967 }
 0xdd3   :  { %v1970_v45 = vmul.f32 %v5208_v43, %v1968_v44 }
 0xdd5   :  { %1972 = vrot.lane.b32.xlu0 %v1970_v45, %s5637_s18 }
 0xe47   :  { %v1973_v48 = vpop.permute.xlu0 %1972 }
 0xe48   :  { %v1975_v49 = vadd.f32 %v1973_v48, %v1965_v47 }
 0xe4a   :  { %5209 = vtanh.f32 %v1975_v49  ;;  %v2072_v3 = vrot.slane %v1975_v49, 6 }
 0xe57   :  { %v5210_v27 = vpop.eup %5209 }
 0xe58   :  { %1978 = vrot.lane.b32.xlu1 %v5210_v27, %s5638_s1 }
 0xeca   :  { %v1979_v50 = vpop.permute.xlu1 %1978 }
 0xecb   :  { %v6234_v51 = vmul.f32 %v5208_v43, %v1979_v50 }
 0xecd   :  { %v1988_v52 = vrot.slane %v6234_v51, 6 }
 0xecf   :  { %1989 = vrot.lane.b32.xlu0 %v1988_v52, %s5637_s18 }
 0xf41   :  { %v1990_v53 = vpop.permute.xlu0 %1989 }
 0xf42   :  { %4914 = vmatmul.mubr.msk.f32.vlgmr.msra.gmra.mxu0 %vm1546_vm6, %v1990_v53 }
 0xf43   :  { %4928 = vmatpush3.msra.mxu0 %v6113_v60  ;;  %4935 = vmatprep.mubr.msk.f32.mxu0 %vm5636_vm0, %v5635_v0 }
 0xf44   :  { %4929 = vmatprep.subr.mxu0 %v5635_v0 }
 0xf45   :  { %4930 = vmatpush3.msra.mxu0 %v6115_v1 }
 0xf46   :  { %4931 = vmatprep.subr.mxu0 %v5635_v0 }
 0xf47   :  { %4932 = vmatpush3.msra.mxu0 %v6127_v8 }
 0xf48   :  { %4933 = vmatprep.subr.mxu0 %v5635_v0 }
 0xf49   :  { %4934 = vmatpush3.msra.mxu0 %v6132_v10 }
 0xf4a   :  { %4949 = vmatprep.subr.mxu0 %v5635_v0 }
0x1002   :  { %v2059_v54 = vpop.f32.mrf.mxu0 }
0x1003   :  { %v2063_v55 = vadd.f32 %v2059_v54, %v6172_v31 }
0x1004   :  { %v4915_v56 = vpop.f32.mrf.mxu0 }
0x1005   :  { %5211 = vtanh.f32 %v2063_v55  ;;  %v4372_v58 = vmul.f32 -1.442695, %v2063_v55 }
0x1007   :  { %5213 = vpow2.f32 %v4372_v58 }
0x1012   :  { %v5212_v57 = vpop.eup %5211 }
0x1013   :  { %2076 = vrot.lane.b32.xlu1 %v5212_v57, %s5638_s1 }
0x1014   :  { %v5214_v59 = vpop.eup %5213 }
0x1015   :  { %v2067_v61 = vadd.f32 1.0, %v5214_v59 }
0x1017   :  { %5215 = vrcp.f32 %v2067_v61 }
0x1024   :  { %v5216_v62 = vpop.eup %5215 }
0x1025   :  { %v2074_v4 = vmul.f32 %v5216_v62, %v2072_v3 }
0x1085   :  { %v2077_v63 = vpop.permute.xlu1 %2076 }
0x1086   :  { %v2079_v2 = vmul.f32 %v5216_v62, %v2077_v63 }
0x1088   :  { %2081 = vrot.lane.b32.xlu0 %v2079_v2, %s5637_s18 }
0x10fa   :  { %v2082_v5 = vpop.permute.xlu0 %2081 }
0x10fb   :  { %v2084_v6 = vadd.f32 %v2082_v5, %v2074_v4 }
0x10fd   :  { %5217 = vtanh.f32 %v2084_v6  ;;  %v2180_v25 = vrot.slane %v2084_v6, 6 }
0x110a   :  { %v5218_v9 = vpop.eup %5217 }
0x110b   :  { %2087 = vrot.lane.b32.xlu1 %v5218_v9, %s5638_s1 }
0x117d   :  { %v2088_v11 = vpop.permute.xlu1 %2087 }
0x117e   :  { %v2090_v12 = vmul.f32 %v5216_v62, %v2088_v11 }
0x1180   :  { %2092 = vrot.lane.b32.xlu0 %v2090_v12, %s5637_s18 }
0x11f2   :  { %v2093_v13 = vpop.permute.xlu0 %2092 }
0x11f3   :  { %2095 = vst.msk [vmem:[#allocation2 + $0x8] sm:$0x3] %vm1653_vm7, %v2093_v13  ;;  %4925 = vmatmul.mubr.msk.f32.vlgmr.msra.gmra.mxu1 %vm1546_vm6, %v2093_v13 }
0x11f4   :  { %4939 = vmatpush3.msra.mxu1 %v6113_v60  ;;  %4946 = vmatprep.mubr.msk.f32.mxu1 %vm5636_vm0, %v5635_v0 }
0x11f5   :  { %4940 = vmatprep.subr.mxu1 %v5635_v0 }
0x11f6   :  { %4941 = vmatpush3.msra.mxu1 %v6115_v1 }
0x11f7   :  { %4942 = vmatprep.subr.mxu1 %v5635_v0 }
0x11f8   :  { %4943 = vmatpush3.msra.mxu1 %v6127_v8 }
0x11f9   :  { %4944 = vmatprep.subr.mxu1 %v5635_v0 }
0x11fa   :  { %4945 = vmatpush3.msra.mxu1 %v6132_v10 }
0x11fb   :  { %4960 = vmatprep.subr.mxu1 %v5635_v0 }
0x12b3   :  { %v2164_v14 = vpop.f32.mrf.mxu1 }
0x12b4   :  { %v2169_v15 = vrot.slane %v2164_v14, 6 }
0x12b5   :  { %v4926_v16 = vpop.f32.mrf.mxu1 }
0x12b6   :  { %v2171_v17 = vadd.f32 %v2169_v15, %v6172_v31 }
0x12b8   :  { %5219 = vtanh.f32 %v2171_v17  ;;  %v4374_v19 = vmul.f32 -1.442695, %v2171_v17 }
0x12ba   :  { %5221 = vpow2.f32 %v4374_v19 }
0x12c5   :  { %v5220_v18 = vpop.eup %5219 }
0x12c6   :  { %2184 = vrot.lane.b32.xlu1 %v5220_v18, %s5638_s1 }
0x12c7   :  { %v5222_v20 = vpop.eup %5221 }
0x12c8   :  { %v2175_v21 = vadd.f32 1.0, %v5222_v20 }
0x12ca   :  { %5223 = vrcp.f32 %v2175_v21 }
0x12d7   :  { %v5224_v22 = vpop.eup %5223 }
0x12d8   :  { %v2182_v26 = vmul.f32 %v5224_v22, %v2180_v25 }
0x1338   :  { %v2185_v23 = vpop.permute.xlu1 %2184 }
0x1339   :  { %v2187_v24 = vmul.f32 %v5224_v22, %v2185_v23 }
0x133b   :  { %2189 = vrot.lane.b32.xlu0 %v2187_v24, %s5637_s18 }
0x13ad   :  { %v2190_v28 = vpop.permute.xlu0 %2189 }
0x13ae   :  { %v2192_v29 = vadd.f32 %v2190_v28, %v2182_v26 }
0x13b0   :  { %5225 = vtanh.f32 %v2192_v29  ;;  %v2291_v49 = vrot.slane %v2192_v29, 6 }
0x13bd   :  { %v5226_v32 = vpop.eup %5225 }
0x13be   :  { %2195 = vrot.lane.b32.xlu1 %v5226_v32, %s5638_s1 }
0x1430   :  { %v2196_v33 = vpop.permute.xlu1 %2195 }
0x1431   :  { %v6270_v35 = vmul.f32 %v5224_v22, %v2196_v33 }
0x1433   :  { %v2204_v36 = vrot.slane %v6270_v35, 2 }
0x1435   :  { %2205 = vrot.lane.b32.xlu0 %v2204_v36, %s5637_s18 }
0x14a7   :  { %v2206_v37 = vpop.permute.xlu0 %2205 }
0x14a8   :  { %4936 = vmatmul.mubr.msk.f32.vlgmr.msra.gmra.mxu0 %vm1546_vm6, %v2206_v37 }
0x14a9   :  { %4950 = vmatpush3.msra.mxu0 %v6113_v60  ;;  %4957 = vmatprep.mubr.msk.f32.mxu0 %vm5636_vm0, %v5635_v0 }
0x14aa   :  { %4951 = vmatprep.subr.mxu0 %v5635_v0 }
0x14ab   :  { %4952 = vmatpush3.msra.mxu0 %v6115_v1 }
0x14ac   :  { %4953 = vmatprep.subr.mxu0 %v5635_v0 }
0x14ad   :  { %4954 = vmatpush3.msra.mxu0 %v6127_v8 }
0x14ae   :  { %4955 = vmatprep.subr.mxu0 %v5635_v0 }
0x14af   :  { %4956 = vmatpush3.msra.mxu0 %v6132_v10 }
0x14b0   :  { %4971 = vmatprep.subr.mxu0 %v5635_v0 }
0x1568   :  { %v2275_v38 = vpop.f32.mrf.mxu0 }
0x1569   :  { %v2280_v39 = vrot.slane %v2275_v38, 4 }
0x156a   :  { %v4937_v40 = vpop.f32.mrf.mxu0 }
0x156b   :  { %v2282_v41 = vadd.f32 %v2280_v39, %v6172_v31 }
0x156d   :  { %5227 = vtanh.f32 %v2282_v41  ;;  %v4376_v43 = vmul.f32 -1.442695, %v2282_v41 }
0x156f   :  { %5229 = vpow2.f32 %v4376_v43 }
0x157a   :  { %v5228_v42 = vpop.eup %5227 }
0x157b   :  { %2295 = vrot.lane.b32.xlu1 %v5228_v42, %s5638_s1 }
0x157c   :  { %v5230_v44 = vpop.eup %5229 }
0x157d   :  { %v2286_v45 = vadd.f32 1.0, %v5230_v44 }
0x157f   :  { %5231 = vrcp.f32 %v2286_v45 }
0x158c   :  { %v5232_v46 = vpop.eup %5231 }
0x158d   :  { %v2293_v27 = vmul.f32 %v5232_v46, %v2291_v49 }
0x15ed   :  { %v2296_v47 = vpop.permute.xlu1 %2295 }
0x15ee   :  { %v2298_v48 = vmul.f32 %v5232_v46, %v2296_v47 }
0x15f0   :  { %2300 = vrot.lane.b32.xlu0 %v2298_v48, %s5637_s18 }
0x1662   :  { %v2301_v50 = vpop.permute.xlu0 %2300 }
0x1663   :  { %v2303_v52 = vadd.f32 %v2301_v50, %v2293_v27 }
0x1665   :  { %5233 = vtanh.f32 %v2303_v52  ;;  %v2402_v11 = vrot.slane %v2303_v52, 6 }
0x1672   :  { %v5234_v53 = vpop.eup %5233 }
0x1673   :  { %2306 = vrot.lane.b32.xlu1 %v5234_v53, %s5638_s1 }
0x16e5   :  { %v2307_v54 = vpop.permute.xlu1 %2306 }
0x16e6   :  { %v6289_v55 = vmul.f32 %v5232_v46, %v2307_v54 }
0x16e8   :  { %v2315_v56 = vrot.slane %v6289_v55, 4 }
0x16ea   :  { %2316 = vrot.lane.b32.xlu0 %v2315_v56, %s5637_s18  ;;  %v2769_v56 = vld [vmem:[#allocation16 + $0x18] sm:$0xff] }
0x175c   :  { %v2317_v57 = vpop.permute.xlu0 %2316 }
0x175d   :  { %4947 = vmatmul.mubr.msk.f32.vlgmr.msra.gmra.mxu1 %vm1546_vm6, %v2317_v57  ;;  %v2768_v57 = vld [vmem:[#allocation16 + $0x10] sm:$0xff] }
0x175e   :  { %4961 = vmatpush3.msra.mxu1 %v6113_v60  ;;  %4968 = vmatprep.mubr.msk.f32.mxu1 %vm5636_vm0, %v5635_v0 }
0x175f   :  { %4962 = vmatprep.subr.mxu1 %v5635_v0 }
0x1760   :  { %4963 = vmatpush3.msra.mxu1 %v6115_v1 }
0x1761   :  { %4964 = vmatprep.subr.mxu1 %v5635_v0 }
0x1762   :  { %4965 = vmatpush3.msra.mxu1 %v6127_v8 }
0x1763   :  { %4966 = vmatprep.subr.mxu1 %v5635_v0 }
0x1764   :  { %4967 = vmatpush3.msra.mxu1 %v6132_v10 }
0x1765   :  { %4982 = vmatprep.subr.mxu1 %v5635_v0 }
0x181d   :  { %v2386_v58 = vpop.f32.mrf.mxu1 }
0x181e   :  { %v2391_v59 = vrot.slane %v2386_v58, 2 }
0x181f   :  { %v4948_v61 = vpop.f32.mrf.mxu1 }
0x1820   :  { %v2393_v62 = vadd.f32 %v2391_v59, %v6172_v31 }
0x1822   :  { %5235 = vtanh.f32 %v2393_v62  ;;  %v4378_v2 = vmul.f32 -1.442695, %v2393_v62 }
0x1824   :  { %5237 = vpow2.f32 %v4378_v2 }
0x182f   :  { %v5236_v63 = vpop.eup %5235 }
0x1830   :  { %2406 = vrot.lane.b32.xlu1 %v5236_v63, %s5638_s1 }
0x1831   :  { %v5238_v3 = vpop.eup %5237 }
0x1832   :  { %v2397_v4 = vadd.f32 1.0, %v5238_v3  ;;  %v6357_v3 = vld [vmem:[#allocation18 + $0x18] sm:$0xff] }
0x1834   :  { %5239 = vrcp.f32 %v2397_v4  ;;  %v6366_v4 = vld [vmem:[#allocation18 + $0x8] sm:$0xff] }
0x1841   :  { %v5240_v5 = vpop.eup %5239 }
0x1842   :  { %v2404_v12 = vmul.f32 %v5240_v5, %v2402_v11  ;;  %v4389_v11 = vld [vmem:[%s6720_s19 + $0x2] sm:$0x3] }
0x18a2   :  { %v2407_v6 = vpop.permute.xlu1 %2406 }
0x18a3   :  { %v2409_v9 = vmul.f32 %v5240_v5, %v2407_v6  ;;  %v4390_v6 = vld [vmem:[%s6721_s20 + $0x2] sm:$0x3] }
0x18a5   :  { %2411 = vrot.lane.b32.xlu0 %v2409_v9, %s5637_s18 }
0x1917   :  { %v2412_v13 = vpop.permute.xlu0 %2411 }
0x1918   :  { %v2414_v14 = vadd.f32 %v2412_v13, %v2404_v12 }
0x191a   :  { %5241 = vtanh.f32 %v2414_v14 }
0x1927   :  { %v5242_v31 = vpop.eup %5241 }
0x1928   :  { %2417 = vrot.lane.b32.xlu1 %v5242_v31, %s5638_s1 }
0x199a   :  { %v2418_v15 = vpop.permute.xlu1 %2417 }
0x199b   :  { %v6308_v16 = vmul.f32 %v5240_v5, %v2418_v15  ;;  %v6370_v5 = vld [vmem:[#allocation18] sm:$0xff]  ;;  %v6407_v15 = vld [vmem:[%s6715_s14] ss:$0 sm:$0xff] }
0x199d   :  { %v2426_v17 = vrot.slane %v6308_v16, 6 }
0x199f   :  { %2427 = vrot.lane.b32.xlu0 %v2426_v17, %s5637_s18 }
0x1a11   :  { %v2428_v18 = vpop.permute.xlu0 %2427 }
0x1a12   :  { %4958 = vmatmul.mubr.msk.f32.vlgmr.msra.gmra.mxu0 %vm1546_vm6, %v2428_v18 }
0x1a13   :  { %4972 = vmatpush3.msra.mxu0 %v6113_v60  ;;  %4979 = vmatprep.mubr.msk.f32.mxu0 %vm5636_vm0, %v5635_v0 }
0x1a14   :  { %4973 = vmatprep.subr.mxu0 %v5635_v0 }
0x1a15   :  { %4974 = vmatpush3.msra.mxu0 %v6115_v1 }
0x1a16   :  { %4975 = vmatprep.subr.mxu0 %v5635_v0 }
0x1a17   :  { %4976 = vmatpush3.msra.mxu0 %v6127_v8 }
0x1a18   :  { %4977 = vmatprep.subr.mxu0 %v5635_v0 }
0x1a19   :  { %4978 = vmatpush3.msra.mxu0 %v6132_v10  ;;  %v2510_v10 = vrot.slane %v2414_v14, 6 }
0x1a1a   :  { %4999 = vmatprep.subr.mxu0 %v5635_v0 }
0x1ad2   :  { %v2497_v19 = vpop.f32.mrf.mxu0 }
0x1ad3   :  { %v2501_v60 = vadd.f32 %v2497_v19, %v6174_v34 }
0x1ad4   :  { %v4959_v20 = vpop.f32.mrf.mxu0 }
0x1ad5   :  { %5243 = vtanh.f32 %v2501_v60  ;;  %v4380_v22 = vmul.f32 -1.442695, %v2501_v60 }
0x1ad7   :  { %5245 = vpow2.f32 %v4380_v22 }
0x1ae2   :  { %v5244_v21 = vpop.eup %5243 }
0x1ae3   :  { %2514 = vrot.lane.b32.xlu1 %v5244_v21, %s5638_s1 }
0x1ae4   :  { %v5246_v1 = vpop.eup %5245 }
0x1ae5   :  { %v2505_v23 = vadd.f32 1.0, %v5246_v1 }
0x1ae7   :  { %5247 = vrcp.f32 %v2505_v23 }
0x1af4   :  { %v5248_v8 = vpop.eup %5247 }
0x1af5   :  { %v2512_v26 = vmul.f32 %v5248_v8, %v2510_v10 }
0x1b55   :  { %v2515_v24 = vpop.permute.xlu1 %2514 }
0x1b56   :  { %v2517_v25 = vmul.f32 %v5248_v8, %v2515_v24 }
0x1b58   :  { %2519 = vrot.lane.b32.xlu0 %v2517_v25, %s5637_s18 }
0x1bca   :  { %v2520_v28 = vpop.permute.xlu0 %2519 }
0x1bcb   :  { %v2522_v29 = vadd.f32 %v2520_v28, %v2512_v26 }
0x1bcd   :  { %5249 = vtanh.f32 %v2522_v29  ;;  %v2618_v49 = vrot.slane %v2522_v29, 6 }
0x1bda   :  { %v5250_v32 = vpop.eup %5249 }
0x1bdb   :  { %2525 = vrot.lane.b32.xlu1 %v5250_v32, %s5638_s1 }
0x1c4d   :  { %v2526_v33 = vpop.permute.xlu1 %2525 }
0x1c4e   :  { %v2528_v36 = vmul.f32 %v5248_v8, %v2526_v33 }
0x1c50   :  { %2530 = vrot.lane.b32.xlu0 %v2528_v36, %s5637_s18 }
0x1cc2   :  { %v2531_v37 = vpop.permute.xlu0 %2530 }
0x1cc3   :  { %2533 = vst.msk [vmem:[#allocation2 + $0x10] sm:$0x3] %vm1653_vm7, %v2531_v37  ;;  %4969 = vmatmul.mubr.msk.f32.vlgmr.msra.gmra.mxu1 %vm1546_vm6, %v2531_v37 }
0x1cc4   :  { %4990 = vmatprep.mubr.msk.f32.mxu1 %vm5636_vm0, %v5635_v0  ;;  %4983 = vmatpush3.msra.mxu1 %v2769_v56 }
0x1cc5   :  { %4984 = vmatprep.subr.mxu1 %v5635_v0 }
0x1cc6   :  { %4985 = vmatpush3.msra.mxu1 %v2768_v57 }
0x1cc7   :  { %4986 = vmatprep.subr.mxu1 %v5635_v0 }
0x1d83   :  { %v2602_v38 = vpop.f32.mrf.mxu1 }
0x1d84   :  { %v2607_v39 = vrot.slane %v2602_v38, 6 }
0x1d85   :  { %v4970_v40 = vpop.f32.mrf.mxu1 }
0x1d86   :  { %v2609_v41 = vadd.f32 %v2607_v39, %v6174_v34 }
0x1d88   :  { %5251 = vtanh.f32 %v2609_v41  ;;  %v4382_v43 = vmul.f32 -1.442695, %v2609_v41 }
0x1d8a   :  { %5253 = vpow2.f32 %v4382_v43 }
0x1d95   :  { %v5252_v42 = vpop.eup %5251 }
0x1d96   :  { %2622 = vrot.lane.b32.xlu1 %v5252_v42, %s5638_s1 }
0x1d97   :  { %v5254_v44 = vpop.eup %5253 }
0x1d98   :  { %v2613_v45 = vadd.f32 1.0, %v5254_v44 }
0x1d9a   :  { %5255 = vrcp.f32 %v2613_v45 }
0x1da7   :  { %v5256_v46 = vpop.eup %5255 }
0x1da8   :  { %v2620_v27 = vmul.f32 %v5256_v46, %v2618_v49 }
0x1e08   :  { %v2623_v47 = vpop.permute.xlu1 %2622 }
0x1e09   :  { %v2625_v48 = vmul.f32 %v5256_v46, %v2623_v47 }
0x1e0b   :  { %2627 = vrot.lane.b32.xlu0 %v2625_v48, %s5637_s18 }
0x1e0f   :  { %1759 = vrot.lane.b32.xlu0 %v6196_v7, %s5637_s18  ;;  %v2767_v7 = vld [vmem:[#allocation16 + $0x8] sm:$0xff] }
0x1e10   :  { %4987 = vmatpush3.msra.mxu1 %v2767_v7 }
0x1e11   :  { %4988 = vmatprep.subr.mxu1 %v5635_v0 }
0x1e13   :  { %1983 = vrot.lane.b32.xlu0 %v6234_v51, %s5637_s18  ;;  %v2766_v51 = vld [vmem:[#allocation16] sm:$0xff] }
0x1e14   :  { %4989 = vmatpush3.msra.mxu1 %v2766_v51 }
0x1e15   :  { %5021 = vmatprep.subr.mxu1 %v5635_v0 }
0x1e7d   :  { %v2628_v50 = vpop.permute.xlu0 %2627 }
0x1e7e   :  { %v6339_v52 = vadd.f32 %v2628_v50, %v2620_v27 }
0x1e80   :  { %5257 = vtanh.f32 %v6339_v52  ;;  %v2729_v45 = vrot.slane %v6339_v52, 6 }
0x1e81   :  { %v1760_v53 = vpop.permute.xlu0 %1759 }
0x1e82   :  { %1763 = vst.msk [vmem:[#allocation2] sm:$0xc] %vm1762_vm8, %v1760_v53 }
0x1e85   :  { %v1984_v54 = vpop.permute.xlu0 %1983 }
0x1e86   :  { %1987 = vst.msk [vmem:[#allocation2] sm:$0xc0] %vm1986_vm9, %v1984_v54 }
0x1e8d   :  { %v5258_v58 = vpop.eup %5257 }
0x1e8e   :  { %2633 = vrot.lane.b32.xlu1 %v5258_v58, %s5638_s1 }
0x1e92   :  { %1871 = vrot.lane.b32.xlu1 %v6215_v30, %s5637_s18  ;;  %v6362_v30 = vld [vmem:[#allocation18 + $0x10] sm:$0xff] }
0x1f00   :  { %v2634_v59 = vpop.permute.xlu1 %2633 }
0x1f01   :  { %v6351_v61 = vmul.f32 %v5256_v46, %v2634_v59 }
0x1f03   :  { %v2642_v62 = vrot.slane %v6351_v61, 2 }
0x1f04   :  { %v1872_v63 = vpop.permute.xlu1 %1871 }
0x1f05   :  { %1875 = vst.msk [vmem:[#allocation2] sm:$0x30] %vm1874_vm10, %v1872_v63  ;;  %2643 = vrot.lane.b32.xlu1 %v2642_v62, %s5637_s18 }
0x1f09   :  { %2952 = vrot.lane.b32.xlu1 %v4390_v6, %s5637_s18 }
0x1f0c   :  { %v2763_v2 = vld [vmem:[#allocation2] sm:$0xff] }
0x1f0d   :  { %4991 = vmatmul.mubr.msk.f32.vlgmr.msra.gmra.mxu1 %vm1546_vm6, %v2763_v2 }
0x1f0e   :  { %4993 = vmatprep.mubr.msk.f32.mxu1 %vm5636_vm0, %v5635_v0  ;;  %5022 = vmatpush3.msra.mxu1 %v6357_v3 }
0x1f0f   :  { %5023 = vmatprep.subr.mxu1 %v5635_v0 }
0x1f10   :  { %5024 = vmatpush3.msra.mxu1 %v6362_v30 }
0x1f11   :  { %5025 = vmatprep.subr.mxu1 %v5635_v0 }
0x1f12   :  { %5026 = vmatpush3.msra.mxu1 %v6366_v4 }
0x1f13   :  { %5027 = vmatprep.subr.mxu1 %v5635_v0 }
0x1f14   :  { %5028 = vmatpush3.msra.mxu1 %v6370_v5 }
0x1f15   :  { %5043 = vmatprep.subr.mxu1 %v5635_v0 }
0x1f77   :  { %v2644_v9 = vpop.permute.xlu1 %2643 }
0x1f78   :  { %4980 = vmatmul.mubr.msk.f32.vlgmr.msra.gmra.mxu0 %vm1546_vm6, %v2644_v9 }
0x1f79   :  { %5000 = vmatpush3.msra.mxu0 %v6357_v3  ;;  %5007 = vmatprep.mubr.msk.f32.mxu0 %vm5636_vm0, %v5635_v0 }
0x1f7a   :  { %5001 = vmatprep.subr.mxu0 %v5635_v0 }
0x1f7b   :  { %5002 = vmatpush3.msra.mxu0 %v6362_v30  ;;  %v2953_v25 = vpop.permute.xlu1 %2952 }
0x1f7c   :  { %5003 = vmatprep.subr.mxu0 %v5635_v0 }
0x1f7d   :  { %5004 = vmatpush3.msra.mxu0 %v6366_v4 }
0x1f7e   :  { %5005 = vmatprep.subr.mxu0 %v5635_v0 }
0x1f7f   :  { %5006 = vmatpush3.msra.mxu0 %v6370_v5 }
0x1f80   :  { %5008 = vmatmul.mubr.msk.f32.vlgmr.msra.gmra.mxu0 %vm1546_vm6, %v4389_v11  ;;  %5010 = vmatprep.subr.mxu0 %v5635_v0 }
0x1f81   :  { %5011 = vmatpush3.msra.mxu0 %v6357_v3  ;;  %5018 = vmatprep.mubr.msk.f32.mxu0 %vm5636_vm0, %v5635_v0 }
0x1f82   :  { %5012 = vmatprep.subr.mxu0 %v5635_v0 }
0x1f83   :  { %5013 = vmatpush3.msra.mxu0 %v6362_v30 }
0x1f84   :  { %5014 = vmatprep.subr.mxu0 %v5635_v0 }
0x1f85   :  { %5015 = vmatpush3.msra.mxu0 %v6366_v4 }
0x1f86   :  { %5016 = vmatprep.subr.mxu0 %v5635_v0 }
0x1f87   :  { %5017 = vmatpush3.msra.mxu0 %v6370_v5 }
0x1f88   :  { %5032 = vmatprep.subr.mxu0 %v5635_v0 }
0x1fcd   :  { %v2852_v12 = vpop.f32.mrf.mxu1 }
0x1fce   :  { %v6410_v17 = vadd.f32 %v6407_v15, %v2852_v12 }
0x1fcf   :  { %v4992_v13 = vpop.f32.mrf.mxu1 }
0x2038   :  { %v2713_v14 = vpop.f32.mrf.mxu0 }
0x2039   :  { %v2718_v10 = vrot.slane %v2713_v14, 4 }
0x203a   :  { %v4981_v31 = vpop.f32.mrf.mxu0 }
0x203b   :  { %v2720_v32 = vadd.f32 %v2718_v10, %v6174_v34 }
0x203d   :  { %v4384_v37 = vmul.f32 -1.442695, %v2720_v32 }
0x2040   :  { %v2939_v18 = vpop.f32.mrf.mxu0 }
0x2041   :  { %v2943_v19 = vadd.f32 %v2939_v18, %v6410_v17 }
0x2042   :  { %v5009_v60 = vpop.f32.mrf.mxu0 }
0x2043   :  { %5259 = vtanh.f32 %v2943_v19  ;;  %v4392_v21 = vmul.f32 -1.442695, %v2943_v19 }
0x2045   :  { %5261 = vpow2.f32 %v4392_v21 }
0x2050   :  { %v5260_v20 = vpop.eup %5259 }
0x2051   :  { %2957 = vrot.lane.b32.xlu0 %v5260_v20, %s5638_s1 }
0x2052   :  { %v5262_v22 = vpop.eup %5261 }
0x2053   :  { %v2947_v1 = vadd.f32 1.0, %v5262_v22 }
0x2055   :  { %5263 = vrcp.f32 %v2947_v1 }
0x2062   :  { %v5264_v23 = vpop.eup %5263 }
0x2063   :  { %v2955_v26 = vmul.f32 %v5264_v23, %v2953_v25 }
0x20c3   :  { %v2958_v8 = vpop.permute.xlu0 %2957 }
0x20c4   :  { %v2960_v24 = vmul.f32 %v5264_v23, %v2958_v8 }
0x20c6   :  { %2962 = vrot.lane.b32.xlu0 %v2960_v24, %s5637_s18 }
0x2138   :  { %v2963_v28 = vpop.permute.xlu0 %2962 }
0x2139   :  { %v6415_v29 = vadd.f32 %v2963_v28, %v2955_v26 }
0x213b   :  { %5265 = vtanh.f32 %v6415_v29  ;;  %v3061_v6 = vrot.slane %v6415_v29, 6 }
0x213c   :  { %5267 = vtanh.f32 %v2720_v32 }
0x213d   :  { %5269 = vpow2.f32 %v4384_v37 }
0x2148   :  { %v5266_v33 = vpop.eup %5265 }
0x2149   :  { %2968 = vrot.lane.b32.xlu1 %v5266_v33, %s5638_s1  ;;  %v5268_v36 = vpop.eup %5267 }
0x214a   :  { %v5270_v38 = vpop.eup %5269 }
0x214b   :  { %v2724_v39 = vadd.f32 1.0, %v5270_v38 }
0x214d   :  { %2733 = vrot.lane.b32.xlu1 %v5268_v36, %s5638_s1  ;;  %5271 = vrcp.f32 %v2724_v39 }
0x215a   :  { %v5272_v42 = vpop.eup %5271 }
0x215b   :  { %v2731_v46 = vmul.f32 %v5272_v42, %v2729_v45 }
0x21bb   :  { %v2969_v40 = vpop.permute.xlu1 %2968 }
0x21bc   :  { %v2971_v41 = vmul.f32 %v5264_v23, %v2969_v40 }
0x21be   :  { %2973 = vrot.lane.b32.xlu0 %v2971_v41, %s5637_s18 }
0x21bf   :  { %v2734_v34 = vpop.permute.xlu1 %2733 }
0x21c0   :  { %v2736_v43 = vmul.f32 %v5272_v42, %v2734_v34 }
0x21c2   :  { %2738 = vrot.lane.b32.xlu1 %v2736_v43, %s5637_s18 }
0x2230   :  { %v2974_v44 = vpop.permute.xlu0 %2973 }
0x2231   :  { %2976 = vst.msk [vmem:[#allocation3] sm:$0x3] %vm1653_vm7, %v2974_v44  ;;  %5019 = vmatmul.mubr.msk.f32.vlgmr.msra.gmra.mxu0 %vm1546_vm6, %v2974_v44 }
0x2232   :  { %5033 = vmatpush3.msra.mxu0 %v6357_v3  ;;  %5040 = vmatprep.mubr.msk.f32.mxu0 %vm5636_vm0, %v5635_v0 }
0x2233   :  { %5034 = vmatprep.subr.mxu0 %v5635_v0 }
0x2234   :  { %v2739_v47 = vpop.permute.xlu1 %2738  ;;  %5035 = vmatpush3.msra.mxu0 %v6362_v30 }
0x2235   :  { %v6431_v48 = vadd.f32 %v2739_v47, %v2731_v46  ;;  %5036 = vmatprep.subr.mxu0 %v5635_v0 }
0x2236   :  { %5037 = vmatpush3.msra.mxu0 %v6366_v4 }
0x2237   :  { %5273 = vtanh.f32 %v6431_v48  ;;  %5038 = vmatprep.subr.mxu0 %v5635_v0 }
0x2238   :  { %5039 = vmatpush3.msra.mxu0 %v6370_v5 }
0x2239   :  { %5054 = vmatprep.subr.mxu0 %v5635_v0 }
0x2244   :  { %v5274_v49 = vpop.eup %5273 }
0x2245   :  { %2744 = vrot.lane.b32.xlu1 %v5274_v49, %s5638_s1 }
0x2249   :  { %2200 = vrot.lane.b32.xlu1 %v6270_v35, %s5637_s18 }
0x224d   :  { %2422 = vrot.lane.b32.xlu1 %v6308_v16, %s5637_s18 }
0x22b7   :  { %v2745_v27 = vpop.permute.xlu1 %2744 }
0x22b8   :  { %v2747_v50 = vmul.f32 %v5272_v42, %v2745_v27 }
0x22ba   :  { %2749 = vrot.lane.b32.xlu1 %v2747_v50, %s5637_s18 }
0x22bb   :  { %v2201_v52 = vpop.permute.xlu1 %2200 }
0x22bc   :  { %2203 = vst.msk [vmem:[#allocation2 + $0x8] sm:$0xc] %vm1762_vm8, %v2201_v52 }
0x22bf   :  { %v2423_v53 = vpop.permute.xlu1 %2422 }
0x22c0   :  { %2425 = vst.msk [vmem:[#allocation2 + $0x8] sm:$0xc0] %vm1986_vm9, %v2423_v53 }
0x22f1   :  { %v3045_v54 = vpop.f32.mrf.mxu0 }
0x22f2   :  { %v3050_v56 = vrot.slane %v3045_v54, 6 }
0x22f3   :  { %v5020_v57 = vpop.f32.mrf.mxu0 }
0x22f4   :  { %v3052_v7 = vadd.f32 %v3050_v56, %v6410_v17 }
0x22f6   :  { %5275 = vtanh.f32 %v3052_v7  ;;  %v4394_v51 = vmul.f32 -1.442695, %v3052_v7 }
0x22f8   :  { %5277 = vpow2.f32 %v4394_v51 }
0x2303   :  { %v5276_v35 = vpop.eup %5275 }
0x2304   :  { %3065 = vrot.lane.b32.xlu0 %v5276_v35, %s5638_s1 }
0x2305   :  { %v5278_v58 = vpop.eup %5277 }
0x2306   :  { %v3056_v59 = vadd.f32 1.0, %v5278_v58 }
0x2308   :  { %5279 = vrcp.f32 %v3056_v59 }
0x2315   :  { %v5280_v62 = vpop.eup %5279 }
0x2316   :  { %v3063_v9 = vmul.f32 %v5280_v62, %v3061_v6 }
0x232c   :  { %v2750_v16 = vpop.permute.xlu1 %2749 }
0x232d   :  { %2752 = vst.msk [vmem:[#allocation2 + $0x10] sm:$0x30] %vm1874_vm10, %v2750_v16  ;;  %2753 = vst.msk [vmem:[#allocation21 - $0x4] sm:$0x30] %vm1874_vm10, %v2750_v16 }
0x2376   :  { %v3066_v63 = vpop.permute.xlu0 %3065 }
0x2377   :  { %v3068_v2 = vmul.f32 %v5280_v62, %v3066_v63 }
0x2379   :  { %3070 = vrot.lane.b32.xlu0 %v3068_v2, %s5637_s18 }
0x23eb   :  { %v3071_v11 = vpop.permute.xlu0 %3070 }
0x23ec   :  { %v3073_v12 = vadd.f32 %v3071_v11, %v3063_v9 }
0x23ee   :  { %5281 = vtanh.f32 %v3073_v12  ;;  %v3172_v38 = vrot.slane %v3073_v12, 6 }
0x23fb   :  { %v5282_v13 = vpop.eup %5281 }
0x23fc   :  { %3076 = vrot.lane.b32.xlu0 %v5282_v13, %s5638_s1 }
0x2400   :  { %2311 = vrot.lane.b32.xlu0 %v6289_v55, %s5637_s18 }
0x2404   :  { %2638 = vrot.lane.b32.xlu0 %v6351_v61, %s5637_s18 }
0x246e   :  { %v3077_v14 = vpop.permute.xlu0 %3076 }
0x246f   :  { %v6458_v31 = vmul.f32 %v5280_v62, %v3077_v14 }
0x2471   :  { %v3085_v18 = vrot.slane %v6458_v31, 2 }
0x2472   :  { %v2312_v19 = vpop.permute.xlu0 %2311 }
0x2473   :  { %2314 = vst.msk [vmem:[#allocation2 + $0x8] sm:$0x30] %vm1874_vm10, %v2312_v19  ;;  %3086 = vrot.lane.b32.xlu0 %v3085_v18, %s5637_s18 }
0x2476   :  { %v2639_v60 = vpop.permute.xlu0 %2638 }
0x2477   :  { %2641 = vst.msk [vmem:[#allocation2 + $0x10] sm:$0xc] %vm1762_vm8, %v2639_v60 }
0x247a   :  { %v2764_v20 = vld [vmem:[#allocation2 + $0x8] sm:$0xff] }
0x247b   :  { %4994 = vmatmul.mubr.msk.f32.gmra.mxu1 %vm1546_vm6, %v2764_v20 }
0x247c   :  { %4996 = vmatprep.mubr.msk.f32.mxu1 %vm5636_vm0, %v5635_v0 }
0x247e   :  { %v2765_v55 = vld [vmem:[#allocation2 + $0x10] sm:$0x3f] }
0x247f   :  { %4997 = vmatmul.mubr.msk.f32.gmra.mxu1 %vm1546_vm6, %v2765_v55 }
0x2480   :  { %5029 = vmatprep.mubr.msk.f32.mxu1 %vm5636_vm0, %v5635_v0 }
0x24e5   :  { %v3087_v61 = vpop.permute.xlu0 %3086 }
0x24e6   :  { %5030 = vmatmul.mubr.msk.f32.vlgmr.msra.gmra.mxu1 %vm1546_vm6, %v3087_v61 }
0x24e7   :  { %5044 = vmatpush3.msra.mxu1 %v6357_v3  ;;  %5051 = vmatprep.mubr.msk.f32.mxu1 %vm5636_vm0, %v5635_v0 }
0x24e8   :  { %5045 = vmatprep.subr.mxu1 %v5635_v0 }
0x24e9   :  { %5046 = vmatpush3.msra.mxu1 %v6362_v30 }
0x24ea   :  { %5047 = vmatprep.subr.mxu1 %v5635_v0 }
0x24eb   :  { %5048 = vmatpush3.msra.mxu1 %v6366_v4 }
0x24ec   :  { %5049 = vmatprep.subr.mxu1 %v5635_v0 }
0x24ed   :  { %5050 = vmatpush3.msra.mxu1 %v6370_v5 }
0x24ee   :  { %5065 = vmatprep.subr.mxu1 %v5635_v0 }
0x253b   :  { %v6481_v21 = vpop.f32.mrf.mxu1 }
0x253c   :  { %v6525_v6 = vadd.f32 %v6407_v15, %v6481_v21 }
0x253d   :  { %v4995_v22 = vpop.f32.mrf.mxu1 }
0x253f   :  { %v6483_v1 = vpop.f32.mrf.mxu1 }
0x2541   :  { %v4998_v23 = vpop.f32.mrf.mxu1 }
0x25a6   :  { %v3156_v8 = vpop.f32.mrf.mxu1 }
0x25a7   :  { %v3161_v24 = vrot.slane %v3156_v8, 4 }
0x25a8   :  { %v5031_v25 = vpop.f32.mrf.mxu1 }
0x25a9   :  { %v3163_v10 = vadd.f32 %v3161_v24, %v6410_v17 }
0x25ab   :  { %5283 = vtanh.f32 %v3163_v10  ;;  %v4396_v28 = vmul.f32 -1.442695, %v3163_v10 }
0x25ad   :  { %5285 = vpow2.f32 %v4396_v28 }
0x25b8   :  { %v5284_v26 = vpop.eup %5283 }
0x25b9   :  { %3176 = vrot.lane.b32.xlu1 %v5284_v26, %s5638_s1 }
0x25ba   :  { %v5286_v29 = vpop.eup %5285 }
0x25bb   :  { %v3167_v32 = vadd.f32 1.0, %v5286_v29 }
0x25bd   :  { %5287 = vrcp.f32 %v3167_v32 }
0x25ca   :  { %v5288_v33 = vpop.eup %5287 }
0x25cb   :  { %v3174_v39 = vmul.f32 %v5288_v33, %v3172_v38 }
0x262b   :  { %v3177_v36 = vpop.permute.xlu1 %3176 }
0x262c   :  { %v3179_v37 = vmul.f32 %v5288_v33, %v3177_v36 }
0x262e   :  { %3181 = vrot.lane.b32.xlu0 %v3179_v37, %s5637_s18 }
0x26a0   :  { %v3182_v40 = vpop.permute.xlu0 %3181 }
0x26a1   :  { %v3184_v41 = vadd.f32 %v3182_v40, %v3174_v39 }
0x26a3   :  { %5289 = vtanh.f32 %v3184_v41  ;;  %v3283_v35 = vrot.slane %v3184_v41, 6 }
0x26b0   :  { %v5290_v42 = vpop.eup %5289 }
0x26b1   :  { %3187 = vrot.lane.b32.xlu1 %v5290_v42, %s5638_s1 }
0x2723   :  { %v3188_v34 = vpop.permute.xlu1 %3187 }
0x2724   :  { %v6489_v43 = vmul.f32 %v5288_v33, %v3188_v34 }
0x2726   :  { %v3196_v44 = vrot.slane %v6489_v43, 4 }
0x2728   :  { %3197 = vrot.lane.b32.xlu0 %v3196_v44, %s5637_s18 }
0x279a   :  { %v3198_v45 = vpop.permute.xlu0 %3197 }
0x279b   :  { %5041 = vmatmul.mubr.msk.f32.vlgmr.msra.gmra.mxu0 %vm1546_vm6, %v3198_v45 }
0x279c   :  { %5055 = vmatpush3.msra.mxu0 %v6357_v3  ;;  %5062 = vmatprep.mubr.msk.f32.mxu0 %vm5636_vm0, %v5635_v0 }
0x279d   :  { %5056 = vmatprep.subr.mxu0 %v5635_v0 }
0x279e   :  { %5057 = vmatpush3.msra.mxu0 %v6362_v30 }
0x279f   :  { %5058 = vmatprep.subr.mxu0 %v5635_v0 }
0x27a0   :  { %5059 = vmatpush3.msra.mxu0 %v6366_v4 }
0x27a1   :  { %5060 = vmatprep.subr.mxu0 %v5635_v0 }
0x27a2   :  { %5061 = vmatpush3.msra.mxu0 %v6370_v5 }
0x27a3   :  { %5076 = vmatprep.subr.mxu0 %v5635_v0 }
0x285b   :  { %v3267_v46 = vpop.f32.mrf.mxu0 }
0x285c   :  { %v3272_v47 = vrot.slane %v3267_v46, 2 }
0x285d   :  { %v5042_v49 = vpop.f32.mrf.mxu0 }
0x285e   :  { %v3274_v27 = vadd.f32 %v3272_v47, %v6410_v17 }
0x2860   :  { %5291 = vtanh.f32 %v3274_v27  ;;  %v4398_v52 = vmul.f32 -1.442695, %v3274_v27 }
0x2862   :  { %5293 = vpow2.f32 %v4398_v52 }
0x286d   :  { %v5292_v50 = vpop.eup %5291 }
0x286e   :  { %3287 = vrot.lane.b32.xlu1 %v5292_v50, %s5638_s1 }
0x286f   :  { %v5294_v53 = vpop.eup %5293 }
0x2870   :  { %v3278_v54 = vadd.f32 1.0, %v5294_v53 }
0x2872   :  { %5295 = vrcp.f32 %v3278_v54 }
0x287f   :  { %v5296_v56 = vpop.eup %5295 }
0x2880   :  { %v3285_v16 = vmul.f32 %v5296_v56, %v3283_v35 }
0x28e0   :  { %v3288_v57 = vpop.permute.xlu1 %3287 }
0x28e1   :  { %v3290_v7 = vmul.f32 %v5296_v56, %v3288_v57 }
0x28e3   :  { %3292 = vrot.lane.b32.xlu0 %v3290_v7, %s5637_s18 }
0x2955   :  { %v3293_v51 = vpop.permute.xlu0 %3292 }
0x2956   :  { %v3295_v58 = vadd.f32 %v3293_v51, %v3285_v16 }
0x2958   :  { %5297 = vtanh.f32 %v3295_v58  ;;  %v3391_v61 = vrot.slane %v3295_v58, 6 }
0x2965   :  { %v5298_v17 = vpop.eup %5297 }
0x2966   :  { %3298 = vrot.lane.b32.xlu1 %v5298_v17, %s5638_s1 }
0x29d8   :  { %v3299_v59 = vpop.permute.xlu1 %3298 }
0x29d9   :  { %v6508_v62 = vmul.f32 %v5296_v56, %v3299_v59 }
0x29db   :  { %v3307_v63 = vrot.slane %v6508_v62, 6 }
0x29dd   :  { %3308 = vrot.lane.b32.xlu0 %v3307_v63, %s5637_s18 }
0x2a4f   :  { %v3309_v2 = vpop.permute.xlu0 %3308 }
0x2a50   :  { %5052 = vmatmul.mubr.msk.f32.vlgmr.msra.gmra.mxu1 %vm1546_vm6, %v3309_v2 }
0x2a51   :  { %5066 = vmatpush3.msra.mxu1 %v6357_v3  ;;  %5073 = vmatprep.mubr.msk.f32.mxu1 %vm5636_vm0, %v5635_v0 }
0x2a52   :  { %5067 = vmatprep.subr.mxu1 %v5635_v0 }
0x2a53   :  { %5068 = vmatpush3.msra.mxu1 %v6362_v30 }
0x2a54   :  { %5069 = vmatprep.subr.mxu1 %v5635_v0 }
0x2a55   :  { %5070 = vmatpush3.msra.mxu1 %v6366_v4 }
0x2a56   :  { %5071 = vmatprep.subr.mxu1 %v5635_v0 }
0x2a57   :  { %5072 = vmatpush3.msra.mxu1 %v6370_v5 }
0x2a58   :  { %5087 = vmatprep.subr.mxu1 %v5635_v0 }
0x2b10   :  { %v3378_v9 = vpop.f32.mrf.mxu1 }
0x2b11   :  { %v3382_v11 = vadd.f32 %v3378_v9, %v6525_v6 }
0x2b12   :  { %v5053_v12 = vpop.f32.mrf.mxu1 }
0x2b13   :  { %5299 = vtanh.f32 %v3382_v11  ;;  %v4400_v14 = vmul.f32 -1.442695, %v3382_v11 }
0x2b15   :  { %5301 = vpow2.f32 %v4400_v14 }
0x2b20   :  { %v5300_v13 = vpop.eup %5299 }
0x2b21   :  { %3395 = vrot.lane.b32.xlu1 %v5300_v13, %s5638_s1 }
0x2b22   :  { %v5302_v18 = vpop.eup %5301 }
0x2b23   :  { %v3386_v19 = vadd.f32 1.0, %v5302_v18 }
0x2b25   :  { %5303 = vrcp.f32 %v3386_v19 }
0x2b32   :  { %v5304_v60 = vpop.eup %5303 }
0x2b33   :  { %v3393_v21 = vmul.f32 %v5304_v60, %v3391_v61 }
0x2b93   :  { %v3396_v20 = vpop.permute.xlu1 %3395 }
0x2b94   :  { %v3398_v55 = vmul.f32 %v5304_v60, %v3396_v20 }
0x2b96   :  { %3400 = vrot.lane.b32.xlu0 %v3398_v55, %s5637_s18 }
0x2c08   :  { %v3401_v22 = vpop.permute.xlu0 %3400 }
0x2c09   :  { %v3403_v23 = vadd.f32 %v3401_v22, %v3393_v21 }
0x2c0b   :  { %5305 = vtanh.f32 %v3403_v23  ;;  %v3499_v42 = vrot.slane %v3403_v23, 6 }
0x2c18   :  { %v5306_v8 = vpop.eup %5305 }
0x2c19   :  { %3406 = vrot.lane.b32.xlu1 %v5306_v8, %s5638_s1 }
0x2c8b   :  { %v3407_v24 = vpop.permute.xlu1 %3406 }
0x2c8c   :  { %v3409_v25 = vmul.f32 %v5304_v60, %v3407_v24 }
0x2c8e   :  { %3411 = vrot.lane.b32.xlu0 %v3409_v25, %s5637_s18 }
0x2d00   :  { %v3412_v10 = vpop.permute.xlu0 %3411 }
0x2d01   :  { %3414 = vst.msk [vmem:[#allocation3 + $0x8] sm:$0x3] %vm1653_vm7, %v3412_v10  ;;  %5063 = vmatmul.mubr.msk.f32.vlgmr.msra.gmra.mxu0 %vm1546_vm6, %v3412_v10 }
0x2d02   :  { %5077 = vmatpush3.msra.mxu0 %v6357_v3  ;;  %5084 = vmatprep.mubr.msk.f32.mxu0 %vm5636_vm0, %v5635_v0 }
0x2d03   :  { %5078 = vmatprep.subr.mxu0 %v5635_v0 }
0x2d04   :  { %5079 = vmatpush3.msra.mxu0 %v6362_v30 }
0x2d05   :  { %5080 = vmatprep.subr.mxu0 %v5635_v0 }
0x2d06   :  { %5081 = vmatpush3.msra.mxu0 %v6366_v4 }
0x2d07   :  { %5082 = vmatprep.subr.mxu0 %v5635_v0 }
0x2d08   :  { %5083 = vmatpush3.msra.mxu0 %v6370_v5 }
0x2d09   :  { %5098 = vmatprep.subr.mxu0 %v5635_v0 }
0x2dc1   :  { %v3483_v26 = vpop.f32.mrf.mxu0 }
0x2dc2   :  { %v3488_v28 = vrot.slane %v3483_v26, 6 }
0x2dc3   :  { %v5064_v29 = vpop.f32.mrf.mxu0 }
0x2dc4   :  { %v3490_v32 = vadd.f32 %v3488_v28, %v6525_v6 }
0x2dc6   :  { %5307 = vtanh.f32 %v3490_v32  ;;  %v4402_v36 = vmul.f32 -1.442695, %v3490_v32 }
0x2dc8   :  { %5309 = vpow2.f32 %v4402_v36 }
0x2dd3   :  { %v5308_v33 = vpop.eup %5307 }
0x2dd4   :  { %3503 = vrot.lane.b32.xlu1 %v5308_v33, %s5638_s1 }
0x2dd5   :  { %v5310_v37 = vpop.eup %5309 }
0x2dd6   :  { %v3494_v38 = vadd.f32 1.0, %v5310_v37 }
0x2dd8   :  { %5311 = vrcp.f32 %v3494_v38  ;;  %v2863_v38 = vadd.f32 %v6407_v15, %v6483_v1 }
0x2de5   :  { %v5312_v39 = vpop.eup %5311 }
0x2de6   :  { %v3501_v34 = vmul.f32 %v5312_v39, %v3499_v42 }
0x2e46   :  { %v3504_v40 = vpop.permute.xlu1 %3503 }
0x2e47   :  { %v3506_v41 = vmul.f32 %v5312_v39, %v3504_v40 }
0x2e49   :  { %3508 = vrot.lane.b32.xlu0 %v3506_v41, %s5637_s18 }
0x2ebb   :  { %v3509_v44 = vpop.permute.xlu0 %3508 }
0x2ebc   :  { %v3511_v45 = vadd.f32 %v3509_v44, %v3501_v34 }
0x2ebe   :  { %5313 = vtanh.f32 %v3511_v45  ;;  %v3610_v59 = vrot.slane %v3511_v45, 6 }
0x2ecb   :  { %v5314_v46 = vpop.eup %5313 }
0x2ecc   :  { %3514 = vrot.lane.b32.xlu1 %v5314_v46, %s5638_s1 }
0x2f3e   :  { %v3515_v47 = vpop.permute.xlu1 %3514 }
0x2f3f   :  { %v6548_v49 = vmul.f32 %v5312_v39, %v3515_v47 }
0x2f41   :  { %v3523_v27 = vrot.slane %v6548_v49, 2 }
0x2f43   :  { %3524 = vrot.lane.b32.xlu0 %v3523_v27, %s5637_s18 }
0x2fb5   :  { %v3525_v50 = vpop.permute.xlu0 %3524 }
0x2fb6   :  { %5074 = vmatmul.mubr.msk.f32.vlgmr.msra.gmra.mxu1 %vm1546_vm6, %v3525_v50 }
0x2fb7   :  { %5088 = vmatpush3.msra.mxu1 %v6357_v3  ;;  %5095 = vmatprep.mubr.msk.f32.mxu1 %vm5636_vm0, %v5635_v0 }
0x2fb8   :  { %5089 = vmatprep.subr.mxu1 %v5635_v0 }
0x2fb9   :  { %5090 = vmatpush3.msra.mxu1 %v6362_v30 }
0x2fba   :  { %5091 = vmatprep.subr.mxu1 %v5635_v0 }
0x2fbb   :  { %5092 = vmatpush3.msra.mxu1 %v6366_v4 }
0x2fbc   :  { %5093 = vmatprep.subr.mxu1 %v5635_v0 }
0x2fbd   :  { %5094 = vmatpush3.msra.mxu1 %v6370_v5 }
0x2fbe   :  { %5109 = vmatprep.subr.mxu1 %v5635_v0 }
0x3076   :  { %v3594_v52 = vpop.f32.mrf.mxu1 }
0x3077   :  { %v3599_v53 = vrot.slane %v3594_v52, 4 }
0x3078   :  { %v5075_v54 = vpop.f32.mrf.mxu1 }
0x3079   :  { %v3601_v56 = vadd.f32 %v3599_v53, %v6525_v6 }
0x307b   :  { %5315 = vtanh.f32 %v3601_v56  ;;  %v4404_v7 = vmul.f32 -1.442695, %v3601_v56 }
0x307d   :  { %5317 = vpow2.f32 %v4404_v7 }
0x3088   :  { %v5316_v57 = vpop.eup %5315 }
0x3089   :  { %3614 = vrot.lane.b32.xlu1 %v5316_v57, %s5638_s1 }
0x308a   :  { %v5318_v35 = vpop.eup %5317 }
0x308b   :  { %v3605_v16 = vadd.f32 1.0, %v5318_v35 }
0x308d   :  { %5319 = vrcp.f32 %v3605_v16 }
0x309a   :  { %v5320_v51 = vpop.eup %5319 }
0x309b   :  { %v3612_v63 = vmul.f32 %v5320_v51, %v3610_v59 }
0x30fb   :  { %v3615_v58 = vpop.permute.xlu1 %3614 }
0x30fc   :  { %v3617_v17 = vmul.f32 %v5320_v51, %v3615_v58 }
0x30fe   :  { %3619 = vrot.lane.b32.xlu0 %v3617_v17, %s5637_s18 }
0x3170   :  { %v3620_v2 = vpop.permute.xlu0 %3619 }
0x3171   :  { %v3622_v9 = vadd.f32 %v3620_v2, %v3612_v63 }
0x3173   :  { %5321 = vtanh.f32 %v3622_v9  ;;  %v3721_v10 = vrot.slane %v3622_v9, 6 }
0x3180   :  { %v5322_v11 = vpop.eup %5321 }
0x3181   :  { %3625 = vrot.lane.b32.xlu1 %v5322_v11, %s5638_s1 }
0x31f3   :  { %v3626_v12 = vpop.permute.xlu1 %3625 }
0x31f4   :  { %v6567_v13 = vmul.f32 %v5320_v51, %v3626_v12 }
0x31f6   :  { %v3634_v14 = vrot.slane %v6567_v13, 4 }
0x31f8   :  { %3635 = vrot.lane.b32.xlu0 %v3634_v14, %s5637_s18 }
0x326a   :  { %v3636_v18 = vpop.permute.xlu0 %3635 }
0x326b   :  { %5085 = vmatmul.mubr.msk.f32.vlgmr.msra.gmra.mxu0 %vm1546_vm6, %v3636_v18 }
0x326c   :  { %5099 = vmatpush3.msra.mxu0 %v6357_v3  ;;  %5106 = vmatprep.mubr.msk.f32.mxu0 %vm5636_vm0, %v5635_v0 }
0x326d   :  { %5100 = vmatprep.subr.mxu0 %v5635_v0 }
0x326e   :  { %5101 = vmatpush3.msra.mxu0 %v6362_v30 }
0x326f   :  { %5102 = vmatprep.subr.mxu0 %v5635_v0 }
0x3270   :  { %5103 = vmatpush3.msra.mxu0 %v6366_v4 }
0x3271   :  { %5104 = vmatprep.subr.mxu0 %v5635_v0 }
0x3272   :  { %5105 = vmatpush3.msra.mxu0 %v6370_v5 }
0x3273   :  { %5120 = vmatprep.subr.mxu0 %v5635_v0 }
0x332b   :  { %v3705_v19 = vpop.f32.mrf.mxu0 }
0x332c   :  { %v3710_v60 = vrot.slane %v3705_v19, 2 }
0x332d   :  { %v5086_v20 = vpop.f32.mrf.mxu0 }
0x332e   :  { %v3712_v55 = vadd.f32 %v3710_v60, %v6525_v6 }
0x3330   :  { %5323 = vtanh.f32 %v3712_v55  ;;  %v4406_v21 = vmul.f32 -1.442695, %v3712_v55 }
0x3332   :  { %5325 = vpow2.f32 %v4406_v21 }
0x333d   :  { %v5324_v61 = vpop.eup %5323 }
0x333e   :  { %3725 = vrot.lane.b32.xlu1 %v5324_v61, %s5638_s1 }
0x333f   :  { %v5326_v22 = vpop.eup %5325 }
0x3340   :  { %v3716_v23 = vadd.f32 1.0, %v5326_v22 }
0x3342   :  { %5327 = vrcp.f32 %v3716_v23 }
0x334f   :  { %v5328_v8 = vpop.eup %5327 }
0x3350   :  { %v3723_v26 = vmul.f32 %v5328_v8, %v3721_v10 }
0x33b0   :  { %v3726_v24 = vpop.permute.xlu1 %3725 }
0x33b1   :  { %v3728_v25 = vmul.f32 %v5328_v8, %v3726_v24 }
0x33b3   :  { %3730 = vrot.lane.b32.xlu0 %v3728_v25, %s5637_s18 }
0x3425   :  { %v3731_v28 = vpop.permute.xlu0 %3730 }
0x3426   :  { %v3733_v29 = vadd.f32 %v3731_v28, %v3723_v26 }
0x3428   :  { %5329 = vtanh.f32 %v3733_v29 }
0x3435   :  { %v5330_v6 = vpop.eup %5329 }
0x3436   :  { %3736 = vrot.lane.b32.xlu1 %v5330_v6, %s5638_s1 }
0x34a8   :  { %v3737_v32 = vpop.permute.xlu1 %3736 }
0x34a9   :  { %v6586_v33 = vmul.f32 %v5328_v8, %v3737_v32 }
0x34ab   :  { %v3745_v36 = vrot.slane %v6586_v33, 6 }
0x34ad   :  { %3746 = vrot.lane.b32.xlu0 %v3745_v36, %s5637_s18 }
0x351f   :  { %v3747_v37 = vpop.permute.xlu0 %3746 }
0x3520   :  { %5096 = vmatmul.mubr.msk.f32.vlgmr.msra.gmra.mxu1 %vm1546_vm6, %v3747_v37 }
0x3521   :  { %5110 = vmatpush3.msra.mxu1 %v6357_v3  ;;  %5117 = vmatprep.mubr.msk.f32.mxu1 %vm5636_vm0, %v5635_v0 }
0x3522   :  { %5111 = vmatprep.subr.mxu1 %v5635_v0 }
0x3523   :  { %5112 = vmatpush3.msra.mxu1 %v6362_v30 }
0x3524   :  { %5113 = vmatprep.subr.mxu1 %v5635_v0 }
0x3525   :  { %5114 = vmatpush3.msra.mxu1 %v6366_v4 }
0x3526   :  { %5115 = vmatprep.subr.mxu1 %v5635_v0 }
0x3527   :  { %5116 = vmatpush3.msra.mxu1 %v6370_v5  ;;  %v3829_v5 = vrot.slane %v3733_v29, 6 }
0x35e0   :  { %v3816_v39 = vpop.f32.mrf.mxu1 }
0x35e1   :  { %v3820_v3 = vadd.f32 %v3816_v39, %v2863_v38 }
0x35e2   :  { %v5097_v40 = vpop.f32.mrf.mxu1 }
0x35e3   :  { %5331 = vtanh.f32 %v3820_v3  ;;  %v4408_v42 = vmul.f32 -1.442695, %v3820_v3 }
0x35e5   :  { %5333 = vpow2.f32 %v4408_v42 }
0x35f0   :  { %v5332_v41 = vpop.eup %5331 }
0x35f1   :  { %3833 = vrot.lane.b32.xlu1 %v5332_v41, %s5638_s1 }
0x35f2   :  { %v5334_v30 = vpop.eup %5333 }
0x35f3   :  { %v3824_v34 = vadd.f32 1.0, %v5334_v30 }
0x35f5   :  { %5335 = vrcp.f32 %v3824_v34 }
0x3602   :  { %v5336_v4 = vpop.eup %5335 }
0x3603   :  { %v3831_v46 = vmul.f32 %v5336_v4, %v3829_v5 }
0x3663   :  { %v3834_v44 = vpop.permute.xlu1 %3833 }
0x3664   :  { %v3836_v45 = vmul.f32 %v5336_v4, %v3834_v44 }
0x3666   :  { %3838 = vrot.lane.b32.xlu0 %v3836_v45, %s5637_s18 }
0x36d8   :  { %v3839_v15 = vpop.permute.xlu0 %3838 }
0x36d9   :  { %v3841_v1 = vadd.f32 %v3839_v15, %v3831_v46 }
0x36db   :  { %5337 = vtanh.f32 %v3841_v1  ;;  %v3937_v63 = vrot.slane %v3841_v1, 6 }
0x36e8   :  { %v5338_v47 = vpop.eup %5337 }
0x36e9   :  { %3844 = vrot.lane.b32.xlu1 %v5338_v47, %s5638_s1 }
0x375b   :  { %v3845_v27 = vpop.permute.xlu1 %3844 }
0x375c   :  { %v3847_v50 = vmul.f32 %v5336_v4, %v3845_v27 }
0x375e   :  { %3849 = vrot.lane.b32.xlu0 %v3847_v50, %s5637_s18 }
0x37d0   :  { %v3850_v52 = vpop.permute.xlu0 %3849 }
0x37d1   :  { %3852 = vst.msk [vmem:[#allocation3 + $0x10] sm:$0x3] %vm1653_vm7, %v3850_v52  ;;  %5107 = vmatmul.mubr.msk.f32.vlgmr.msra.gmra.mxu0 %vm1546_vm6, %v3850_v52 }
0x37d2   :  { %5128 = vmatprep.mubr.msk.f32.mxu0 %vm5636_vm0, %v5635_v0 }
0x3891   :  { %v3921_v53 = vpop.f32.mrf.mxu0 }
0x3892   :  { %v3926_v54 = vrot.slane %v3921_v53, 6  ;;  %v4162_v53 = vld [vmem:[%s6718_s17 + $0x18] sm:$0xff] }
0x3893   :  { %v5108_v56 = vpop.f32.mrf.mxu0  ;;  %5121 = vmatpush3.msra.mxu0 %v4162_v53 }
0x3894   :  { %v3928_v57 = vadd.f32 %v3926_v54, %v2863_v38  ;;  %v4161_v54 = vld [vmem:[%s6718_s17 + $0x10] sm:$0xff]  ;;  %5122 = vmatprep.subr.mxu0 %v5635_v0  ;;  %v4160_v56 = vld [vmem:[%s6718_s17 + $0x8] sm:$0xff] }
0x3895   :  { %5123 = vmatpush3.msra.mxu0 %v4161_v54 }
0x3896   :  { %5339 = vtanh.f32 %v3928_v57  ;;  %v4410_v35 = vmul.f32 -1.442695, %v3928_v57  ;;  %5124 = vmatprep.subr.mxu0 %v5635_v0  ;;  %v4159_v57 = vld [vmem:[%s6718_s17] sm:$0xff] }
0x3897   :  { %5125 = vmatpush3.msra.mxu0 %v4160_v56 }
0x3898   :  { %5341 = vpow2.f32 %v4410_v35  ;;  %5126 = vmatprep.subr.mxu0 %v5635_v0 }
0x3899   :  { %5127 = vmatpush3.msra.mxu0 %v4159_v57 }
0x38a3   :  { %v5340_v7 = vpop.eup %5339 }
0x38a4   :  { %3941 = vrot.lane.b32.xlu1 %v5340_v7, %s5638_s1 }
0x38a5   :  { %v5342_v16 = vpop.eup %5341 }
0x38a6   :  { %v3932_v51 = vadd.f32 1.0, %v5342_v16 }
0x38a8   :  { %5343 = vrcp.f32 %v3932_v51 }
0x38b5   :  { %v5344_v58 = vpop.eup %5343 }
0x38b6   :  { %v3939_v2 = vmul.f32 %v5344_v58, %v3937_v63 }
0x3916   :  { %v3942_v17 = vpop.permute.xlu1 %3941 }
0x3917   :  { %v3944_v59 = vmul.f32 %v5344_v58, %v3942_v17 }
0x3919   :  { %3946 = vrot.lane.b32.xlu0 %v3944_v59, %s5637_s18 }
0x398b   :  { %v3947_v9 = vpop.permute.xlu0 %3946 }
0x398c   :  { %v3949_v11 = vadd.f32 %v3947_v9, %v3939_v2  ;;  %v4413_v9 = vld [vmem:[%s6716_s15] ss:$0 sm:$0xff]  ;;  %s5640_s15 = smov [#allocation21]  }
0x398e   :  { %5345 = vtanh.f32 %v3949_v11  ;;  %v4048_v28 = vrot.slane %v3949_v11, 6 }
0x399b   :  { %v5346_v12 = vpop.eup %5345 }
0x399c   :  { %3952 = vrot.lane.b32.xlu1 %v5346_v12, %s5638_s1 }
0x3a0e   :  { %v3953_v14 = vpop.permute.xlu1 %3952 }
0x3a0f   :  { %v3955_v18 = vmul.f32 %v5344_v58, %v3953_v14 }
0x3a11   :  { %v3961_v19 = vrot.slane %v3955_v18, 2 }
0x3a13   :  { %3962 = vrot.lane.b32.xlu0 %v3961_v19, %s5637_s18 }
0x3a85   :  { %v3963_v60 = vpop.permute.xlu0 %3962 }
0x3a86   :  { %5118 = vmatmul.mubr.msk.f32.vlgmr.msra.gmra.mxu1 %vm1546_vm6, %v3963_v60 }
0x3b46   :  { %v4032_v20 = vpop.f32.mrf.mxu1 }
0x3b47   :  { %v4037_v55 = vrot.slane %v4032_v20, 4 }
0x3b48   :  { %v5119_v61 = vpop.f32.mrf.mxu1 }
0x3b49   :  { %v4039_v21 = vadd.f32 %v4037_v55, %v2863_v38 }
0x3b4b   :  { %5347 = vtanh.f32 %v4039_v21  ;;  %v4412_v23 = vmul.f32 -1.442695, %v4039_v21 }
0x3b4d   :  { %5349 = vpow2.f32 %v4412_v23 }
0x3b58   :  { %v5348_v22 = vpop.eup %5347 }
0x3b59   :  { %4052 = vrot.lane.b32.xlu1 %v5348_v22, %s5638_s1 }
0x3b5a   :  { %v5350_v8 = vpop.eup %5349 }
0x3b5b   :  { %v4043_v24 = vadd.f32 1.0, %v5350_v8 }
0x3b5d   :  { %5351 = vrcp.f32 %v4043_v24 }
0x3b6a   :  { %v5352_v25 = vpop.eup %5351 }
0x3b6b   :  { %v4050_v29 = vmul.f32 %v5352_v25, %v4048_v28 }
0x3bcb   :  { %v4053_v10 = vpop.permute.xlu1 %4052 }
0x3bcc   :  { %v4055_v26 = vmul.f32 %v5352_v25, %v4053_v10 }
0x3bce   :  { %4057 = vrot.lane.b32.xlu0 %v4055_v26, %s5637_s18 }
0x3bd2   :  { %3081 = vrot.lane.b32.xlu0 %v6458_v31, %s5637_s18 }
0x3bd6   :  { %3303 = vrot.lane.b32.xlu0 %v6508_v62, %s5637_s18 }
0x3bda   :  { %3630 = vrot.lane.b32.xlu0 %v6567_v13, %s5637_s18 }
0x3bde   :  { %3957 = vrot.lane.b32.xlu0 %v3955_v18, %s5637_s18 }
0x3c40   :  { %v4058_v6 = vpop.permute.xlu0 %4057 }
0x3c41   :  { %v6624_v32 = vadd.f32 %v4058_v6, %v4050_v29 }
0x3c43   :  { %5353 = vtanh.f32 %v6624_v32 }
0x3c44   :  { %v3082_v36 = vpop.permute.xlu0 %3081 }
0x3c45   :  { %3084 = vst.msk [vmem:[#allocation3] sm:$0xc] %vm1762_vm8, %v3082_v36 }
0x3c48   :  { %v3304_v37 = vpop.permute.xlu0 %3303 }
0x3c49   :  { %3306 = vst.msk [vmem:[#allocation3] sm:$0xc0] %vm1986_vm9, %v3304_v37 }
0x3c4c   :  { %v3631_v31 = vpop.permute.xlu0 %3630 }
0x3c4d   :  { %3633 = vst.msk [vmem:[#allocation3 + $0x8] sm:$0x30] %vm1874_vm10, %v3631_v31 }
0x3c50   :  { %v5354_v62 = vpop.eup %5353  ;;  %v3958_v13 = vpop.permute.xlu0 %3957 }
0x3c51   :  { %3960 = vst.msk [vmem:[#allocation3 + $0x10] sm:$0xc] %vm1762_vm8, %v3958_v13  ;;  %4063 = vrot.lane.b32.xlu1 %v5354_v62, %s5638_s1 }
0x3c55   :  { %3192 = vrot.lane.b32.xlu1 %v6489_v43, %s5637_s18 }
0x3c59   :  { %3519 = vrot.lane.b32.xlu1 %v6548_v49, %s5637_s18 }
0x3c5d   :  { %3741 = vrot.lane.b32.xlu1 %v6586_v33, %s5637_s18 }
0x3cc3   :  { %v4064_v38 = vpop.permute.xlu1 %4063 }
0x3cc4   :  { %v4066_v39 = vmul.f32 %v5352_v25, %v4064_v38 }
0x3cc6   :  { %4068 = vrot.lane.b32.xlu1 %v4066_v39, %s5637_s18 }
0x3cc7   :  { %v3193_v3 = vpop.permute.xlu1 %3192 }
0x3cc8   :  { %3195 = vst.msk [vmem:[#allocation3] sm:$0x30] %vm1874_vm10, %v3193_v3 }
0x3ccb   :  { %v3520_v40 = vpop.permute.xlu1 %3519 }
0x3ccc   :  { %3522 = vst.msk [vmem:[#allocation3 + $0x8] sm:$0xc] %vm1762_vm8, %v3520_v40 }
0x3ccf   :  { %v3742_v41 = vpop.permute.xlu1 %3741  ;;  %v4080_v42 = vld [vmem:[#allocation3] sm:$0xff] }
0x3cd0   :  { %3744 = vst.msk [vmem:[#allocation3 + $0x8] sm:$0xc0] %vm1986_vm9, %v3742_v41  ;;  %v4085_v43 = vsel %vm1546_vm6, %v4080_v42, 0.0 }
0x3cd1   :  { %4086 = vadd.xlane.f32.xlu0 %v4085_v43 }
0x3cd7   :  { %v4081_v49 = vld [vmem:[#allocation3 + $0x8] sm:$0xff] }
0x3cd8   :  { %v4088_v33 = vsel %vm1546_vm6, %v4081_v49, 0.0 }
0x3cea   :  { %4089 = vadd.xlane.f32.xlu1 %v4088_v33 }
0x3d38   :  { %v4069_v30 = vpop.permute.xlu1 %4068 }
0x3d39   :  { %4071 = vst.msk [vmem:[#allocation3 + $0x10] sm:$0x30] %vm1874_vm10, %v4069_v30  ;;  %4073 = vst.msk [vmem:[#allocation21 - $0x2] sm:$0x30] %vm1874_vm10, %v4069_v30 }
0x3d40   :  { %v4082_v34 = vld [vmem:[#allocation3 + $0x10] sm:$0x3f] }
0x3d41   :  { %v4092_v4 = vsel %vm4091_vm11, %v4082_v34, 0.0 }
0x3d42   :  { %4093 = vadd.xlane.f32.xlu0 %v4092_v4 }
0x3d5a   :  { %v4087_v44 = vpop.xlane.xlu0 %4086 }
0x3d5b   :  { %v4096_v45 = vmul.f32 0.03125, %v4087_v44 }
0x3d5d   :  { %v4099_v5 = vsub.f32 %v4080_v42, %v4096_v45 }
0x3d5f   :  { %v4102_v46 = vmul.f32 %v4099_v5, %v4099_v5 }
0x3d61   :  { %v4105_v15 = vsel %vm1546_vm6, %v4102_v46, 0.0 }
0x3d62   :  { %4106 = vadd.xlane.f32.xlu0 %v4105_v15 }
0x3d73   :  { %v4090_v1 = vpop.xlane.xlu1 %4089 }
0x3d74   :  { %v4097_v47 = vmul.f32 0.03125, %v4090_v1 }
0x3d76   :  { %v4100_v27 = vsub.f32 %v4081_v49, %v4097_v47 }
0x3d78   :  { %v4103_v50 = vmul.f32 %v4100_v27, %v4100_v27 }
0x3d7a   :  { %v4108_v52 = vsel %vm1546_vm6, %v4103_v50, 0.0 }
0x3d7b   :  { %4109 = vadd.xlane.f32.xlu0 %v4108_v52 }
0x3d91   :  { %2755 = vrot.lane.b32.xlu0 %v6431_v48, %s5639_s5  ;;  %v4414_v48 = vld [vmem:[%s6717_s16] ss:$0 sm:$0xff]  ;;  %s4271_s16 = sshll.u32 %s5640_s15, 4  ;;  %s4272_s16 = int_to_ptr.vmem [resolvable:$true] %s4271_s16 }
0x3d92   :  { %s5567_s2 = scalar_lea.vmem %s4272_s16, 64  ;;  %p5572_p9 = scmp.lt.s32.totalorder %s4272_s16, %s4272_s16 }
0x3d93   :  { %p5568_p8 = scmp.ne.s32.totalorder %s4272_s16, %s5567_s2  ;;  %p5573_p10 = scmp.lt.s32.totalorder %s5567_s2, %s5567_s2 }
0x3d95   :  { %p5574_p11 = por %p5573_p10, %p5572_p9 }
0x3d97   :  { %p5575_p12 = pnand %p5574_p11, %p5568_p8 }
0x3dcb   :  { %v4094_v7 = vpop.xlane.xlu0 %4093 }
0x3dcc   :  { %v4098_v35 = vmul.f32 0.03125, %v4094_v7 }
0x3dce   :  { %v4101_v16 = vsub.f32 %v4082_v34, %v4098_v35 }
0x3dd0   :  { %v4104_v51 = vmul.f32 %v4101_v16, %v4101_v16 }
0x3dd2   :  { %v4111_v58 = vsel %vm4091_vm11, %v4104_v51, 0.0 }
0x3dd3   :  { %4112 = vadd.xlane.f32.xlu1 %v4111_v58 }
0x3de4   :  { %4075 = vrot.lane.b32.xlu1 %v6624_v32, %s5639_s5 }
0x3deb   :  { %v4107_v17 = vpop.xlane.xlu0 %4106 }
0x3dec   :  { %v4114_v59 = vmul.f32 0.03125, %v4107_v17 }
0x3dee   :  { %v4117_v63 = vadd.f32 1e-05, %v4114_v59 }
0x3df0   :  { %5355 = vrsqrt.f32 %v4117_v63 }
0x3dfd   :  { %v5356_v2 = vpop.eup %5355 }
0x3dfe   :  { %v4123_v11 = vmul.f32 %v5356_v2, %v4099_v5 }
0x3e00   :  { %v4132_v12 = vmul.f32 %v4413_v9, %v4123_v11 }
0x3e02   :  { %v4141_v14 = vadd.f32 %v4414_v48, %v4132_v12 }
0x3e04   :  { %v4110_v18 = vpop.xlane.xlu0 %4109  ;;  %v4147_v19 = vmul.f32 0.70710677, %v4141_v14  ;;  %v4144_v21 = vmul.f32 0.5, %v4141_v14 }
0x3e05   :  { %v4115_v60 = vmul.f32 0.03125, %v4110_v18 }
0x3e06   :  { %5357 = verf.f32 %v4147_v19 }
0x3e07   :  { %v4118_v20 = vadd.f32 1e-05, %v4115_v60 }
0x3e08   :  { %v2756_v55 = vpop.permute.xlu0 %2755 }
0x3e09   :  { %5359 = vrsqrt.f32 %v4118_v20  ;;  %2758 = vst.msk [vmem:[#allocation22 - $0x4] sm:$0x30] %vm1874_vm10, %v2756_v55 }
0x3e13   :  { %v5358_v61 = vpop.eup %5357 }
0x3e14   :  { %v4153_v22 = vadd.f32 1.0, %v5358_v61 }
0x3e16   :  { %v5360_v23 = vpop.eup %5359  ;;  %v4156_v8 = vmul.f32 %v4153_v22, %v4144_v21 }
0x3e17   :  { %v4124_v24 = vmul.f32 %v5360_v23, %v4100_v27 }
0x3e18   :  { %5129 = vmatmul.mubr.msk.f32.vlgmr.msra.gmra.mxu0 %vm1546_vm6, %v4156_v8 }
0x3e19   :  { %5131 = vmatprep.mubr.msk.f32.mxu0 %vm5636_vm0, %v5635_v0  ;;  %v4133_v25 = vmul.f32 %v4413_v9, %v4124_v24 }
0x3e1b   :  { %v4142_v10 = vadd.f32 %v4414_v48, %v4133_v25 }
0x3e1d   :  { %v4148_v26 = vmul.f32 0.70710677, %v4142_v10  ;;  %v4145_v29 = vmul.f32 0.5, %v4142_v10 }
0x3e1f   :  { %5361 = verf.f32 %v4148_v26 }
0x3e2c   :  { %v5362_v28 = vpop.eup %5361 }
0x3e2d   :  { %v4154_v6 = vadd.f32 1.0, %v5362_v28 }
0x3e2f   :  { %v4157_v32 = vmul.f32 %v4154_v6, %v4145_v29 }
0x3e31   :  { %5132 = vmatmul.mubr.msk.f32.gmra.mxu0 %vm1546_vm6, %v4157_v32 }
0x3e32   :  { %5134 = vmatprep.mubr.msk.f32.mxu0 %vm5636_vm0, %v5635_v0 }
0x3e5c   :  { %v4113_v36 = vpop.xlane.xlu1 %4112 }
0x3e5d   :  { %v4116_v37 = vmul.f32 0.03125, %v4113_v36 }
0x3e5f   :  { %v4119_v31 = vadd.f32 1e-05, %v4116_v37 }
0x3e60   :  { %v4076_v62 = vpop.permute.xlu1 %4075 }
0x3e61   :  { %5363 = vrsqrt.f32 %v4119_v31  ;;  %4079 = vst.msk [vmem:[#allocation22 - $0x2] sm:$0x30] %vm1874_vm10, %v4076_v62 }
0x3e6e   :  { %v5364_v13 = vpop.eup %5363 }
0x3e6f   :  { %v4125_v38 = vmul.f32 %v5364_v13, %v4101_v16 }
0x3e71   :  { %v4134_v39 = vmul.f32 %v4413_v9, %v4125_v38 }
0x3e73   :  { %v4143_v3 = vadd.f32 %v4414_v48, %v4134_v39 }
0x3e75   :  { %v4149_v40 = vmul.f32 0.70710677, %v4143_v3  ;;  %v4146_v42 = vmul.f32 0.5, %v4143_v3 }
0x3e77   :  { %5365 = verf.f32 %v4149_v40 }
0x3e84   :  { %v5366_v41 = vpop.eup %5365 }
0x3e85   :  { %v4155_v43 = vadd.f32 1.0, %v5366_v41 }
0x3e87   :  { %v4158_v49 = vmul.f32 %v4155_v43, %v4146_v42 }
0x3e89   :  { %5135 = vmatmul.mubr.msk.f32.gmra.mxu0 %vm1546_vm6, %v4158_v49 }
0x3e8a   :  { %5578 = shalt.err (!%p5575_p12)
}
0x3e8b   :  { %s5642_s6 = smov 2   ;;  %s5587_s27 = scalar_lea.vmem %s4284_s25, 64 }
0x3e8c   :  { %4277 = dma.vmem_to_hbm [thread:$0]  %s4272_s16, 64, %s6723_s22, [#allocation6], %s5637_s18, %s5637_s18, %s5642_s6  }
0x3e8d   :  { %p5588_p13 = scmp.ne.s32.totalorder %s4284_s25, %s5587_s27  ;;  %p5592_p0 = scmp.lt.s32.totalorder %s4284_s25, %s4284_s25 }
0x3e8e   :  { %p5593_p1 = scmp.lt.s32.totalorder %s5587_s27, %s5587_s27 }
0x3e90   :  { %p5594_p2 = por %p5593_p1, %p5592_p0 }
0x3e92   :  { %p5595_p3 = pnand %p5594_p2, %p5588_p13 }
0x3e94   :  { %5598 = shalt.err (!%p5595_p3)
}
0x3e95   :  { %4289 = dma.vmem_to_hbm [thread:$0]  %s4284_s25, 64, %s6724_s23, [#allocation23], %s5637_s18, %s5637_s18, %s5642_s6   ;;  %v4415_v0 = vld [vmem:[#allocation19] ss:$0 sm:$0xff]  ;;  %vm4259_vm12 = vcmask 80896   ;;  %vm4262_vm13 = vcmask 78848  }
0x3ed8   :  { %v4245_v33 = vpop.f32.mrf.mxu0 }
0x3ed9   :  { %v4246_v30 = vadd.f32 %v4415_v0, %v4245_v33 }
0x3eda   :  { %v5130_v34 = vpop.f32.mrf.mxu0 }
0x3edb   :  { %4260 = vst.msk [vmem:[%s6722_s21] sm:$0xff] %vm4259_vm12, %v4246_v30 }
0x3ef1   :  { %v4250_v4 = vpop.f32.mrf.mxu0 }
0x3ef2   :  { %v4251_v44 = vadd.f32 %v4415_v0, %v4250_v4 }
0x3ef3   :  { %v5133_v45 = vpop.f32.mrf.mxu0 }
0x3ef4   :  { %4261 = vst.msk [vmem:[%s6722_s21 + $0x8] sm:$0xff] %vm4259_vm12, %v4251_v44 }
0x3f49   :  { %v4255_v5 = vpop.f32.mrf.mxu0 }
0x3f4a   :  { %v4256_v46 = vadd.f32 %v4415_v0, %v4255_v5 }
0x3f4b   :  { %v5136_v15 = vpop.f32.mrf.mxu0 }
0x3f4c   :  { %4263 = vst.msk [vmem:[%s6722_s21 + $0x10] sm:$0x3f] %vm4262_vm13, %v4256_v46 }
0x3f4d   :  { %5619 = dma.done.wait [#allocation6], 64  }
0x3f4e   :  { %5620 = vsyncadd [#allocation6], 4294967232 }
0x3f4f   :  { %5621 = dma.done.wait [#allocation23], 64  }
0x3f50   :  { %5622 = vsyncadd [#allocation23], 4294967232 }
0x3f51   :  { %4298 = vsyncpa [#allocation5], 1 }
0x3f52   :  { %4299 = vsyncpa [#allocation8], 1 }
0x3f53   :  { %4300 = vsyncpa [#allocation11], 1 }
0x3f54   :  { %4301 = vsyncpa [#allocation14], 1 }
0x3f55   :  { %4302 = vsyncpa [#allocation17], 1 }
0x3f56   :  { %4303 = vsyncpa [#allocation20], 1 }
0x3f57   :  { %4304 = vsyncpa [#allocation6], 1 }
0x3f58   :  { %4305 = vsyncpa [#allocation23], 1 }

</bundles_post_ra>
